<compile_context>
chip_gen: v7x
topology: tpu7x:2x2x1
jax: 0.10.0
libtpu: 0.0.40
codegen_flags: <defaults>
</compile_context>

<pallas_src>
import jax
import jax.numpy as jnp
from jax import lax
from jax.experimental import pallas as pl
from jax.experimental.pallas import tpu as pltpu

# ----------------------------- configuration --------------------------------
B = 4                 # batch
B2 = 2 * B            # fused rollout batch (teacher rows + free rows)
S_DIM = 32            # cfg.s_dim
H_DIM = 64            # cfg.h_dim
DH = H_DIM // 2       # decoder_hidden = 32
A_DIM = 16            # cfg.a_dim
EMBED = 16            # cfg.embed_size
MAX_LEN = 8           # cfg.max_len
Q = A_DIM // 4        # per pair-head hidden width
PATHS = 2             # args.paths (all paths identical -> computed once)
OUT_W = 128           # lane-dense output slab width

# Packed-operand layouts (shared by the host-side packer and the kernel).
W_BLOCKS = {'W1': 0, 'W2': 1, 'WFUSE': 2, 'EMBWIH': 3, 'WTA': 4,
            'WR1': 5, 'WR2': 6, 'WL1': 7, 'WL2': 8}
NUM_W_BLOCKS = len(W_BLOCKS)
W_SLAB_SHAPE = (64, NUM_W_BLOCKS * 128)        # bf16, 128-lane-aligned blocks

B_ROWS = {'FUSE': 0, 'IH': 1, 'B1': 2, 'B2': 3, 'BT': 4,
          'BR1': 5, 'BR2': 6, 'BL1': 7, 'BL2': 8}
B_SLAB_SHAPE = (16, 128)                        # f32, one bias per row


# ------------------------------- the kernel ---------------------------------
def _pedp_kernel(x_ref, w_ref, b_ref, out_ref):
  f32 = jnp.float32
  bf16 = jnp.bfloat16

  def dotf(a, w_bf):
    return jnp.dot(a.astype(bf16), w_bf, preferred_element_type=f32)

  def wblk(name, rows, cols):     # static slice load from the bf16 weight slab
    c = W_BLOCKS[name] * 128
    return w_ref[0:rows, c:c + cols]

  def brow(name, cols):           # static slice load from the f32 bias slab
    r = B_ROWS[name]
    return b_ref[r:r + 1, 0:cols]

  def sum2(x):  # full sum, kept 2D (1,1) to stay on safe reduction paths
    return jnp.sum(jnp.sum(x, axis=-1, keepdims=True), axis=0, keepdims=True)

  def bce_sum(x, y):  # elementwise BCE-with-logits, summed -> (1,1)
    v = jnp.maximum(x, 0.0) - x * y + jnp.log(1.0 + jnp.exp(-jnp.abs(x)))
    return sum2(v)

  # ---- packed inputs (rows 0:B teacher copy, rows B:2B free copy) -----------
  X = x_ref[...]                                        # (2B, 128) f32
  s2 = X[:, 0:S_DIM]
  atf2 = X[:, 64:64 + MAX_LEN].astype(jnp.int32)
  spos2 = X[:, 80:81].astype(jnp.int32)
  apos2 = X[:, 81:82].astype(jnp.int32)

  a_iota2 = lax.broadcasted_iota(jnp.int32, (B2, A_DIM), 1)
  row2 = lax.broadcasted_iota(jnp.int32, (B2, 1), 0)
  is_tf = row2 < B                                      # top rows = teacher-forced

  # ---- state encoder (dropout == identity in eval) ---------------------------
  h1 = jnp.maximum(dotf(s2, wblk('W1', S_DIM, H_DIM)) + brow('B1', H_DIM), 0.0)
  h0_2 = dotf(h1, wblk('W2', H_DIM, DH)) + brow('B2', DH)            # (2B, DH)

  # loop-invariant half of the term head: h0 @ Wta + bt
  h0t = dotf(h0_2, wblk('WTA', DH, 2)) + brow('BT', 2)               # (2B, 2)

  # only the rollout-loop weights / bias broadcasts are hoisted
  NF = 3 * DH + A_DIM + 2                                            # 114
  w_fuse = wblk('WFUSE', DH, NF)                                     # (DH, 114)
  emb_wih = wblk('EMBWIH', EMBED, 3 * DH)                            # (16, 96)
  bfuse_b = jnp.broadcast_to(brow('FUSE', NF), (B2, NF))
  bih_b = jnp.broadcast_to(brow('IH', 3 * DH), (B2, 3 * DH))

  # ---- fused rollout: rows 0:B teacher-forced, rows B:2B free-running --------
  HS = h0_2
  sel_acc = jnp.zeros((B2, DH), f32)                  # teacher pre-step state @ spos
  ce_plan_acc = jnp.zeros((B2, 1), f32)
  ce_term_acc = jnp.zeros((B2, 1), f32)
  first_one = jnp.full((B2, 1), MAX_LEN, jnp.int32)
  noted = jnp.zeros((B2, 1), jnp.int32)
  psf = jnp.zeros((B2, DH), f32)                      # plan_state_full (free rows)
  plan_act_acc = jnp.zeros((B2, A_DIM), f32)
  prev_onehot = jnp.zeros((B2, A_DIM), f32)

  def term_step(step, wtbp, hs_post, prev_oh, st):
    ce_term_acc, first_one, noted, psf, plan_act_acc = st
    TW = h0t + wtbp                                            # (2B, 2)
    tw0 = TW[:, 0:1]
    tw1 = TW[:, 1:2]
    mx = jnp.maximum(tw0, tw1)
    lse_t = mx + jnp.log(jnp.exp(tw0 - mx) + jnp.exp(tw1 - mx))
    tgt1 = (spos2 == step + 1).astype(f32)                     # term_target_gold[:, step]
    picked_t = tgt1 * tw1 + (1.0 - tgt1) * tw0
    mask_t = (apos2 > step).astype(f32)
    ce_term_acc = ce_term_acc + (lse_t - picked_t) * mask_t
    a01 = tw1 > tw0                                            # term argmax (tie -> 0)
    first_one = jnp.minimum(first_one, jnp.where(a01, step, MAX_LEN))
    a01f = a01.astype(f32)
    noted = noted + a01.astype(jnp.int32)
    sel1 = (noted == 1).astype(f32)
    psf = psf * (1.0 - sel1) + hs_post * sel1
    noted = noted * 2
    plan_act_acc = plan_act_acc + prev_oh * a01f
    return ce_term_acc, first_one, noted, psf, plan_act_acc

  term_st = (ce_term_acc, first_one, noted, psf, plan_act_acc)

  for t in range(MAX_LEN):
    # single HS-consuming matmul: [gh(0:96) | plan logits(96:112) | Wtb prod(112:114)]
    F = dotf(HS, w_fuse) + bfuse_b
    gh = F[:, 0:3 * DH]
    AW = F[:, 3 * DH:3 * DH + A_DIM]
    wtbp = F[:, 3 * DH + A_DIM:NF]

    # deferred term-head accounting for step t-1 (current HS == its post state)
    if t > 0:
      term_st = term_step(t - 1, wtbp, HS, prev_onehot, term_st)

    # pre-step teacher state selection for the reconstruction target
    sel_acc = sel_acc + HS * (spos2 == t).astype(f32)

    # plan head: teacher CE + free-rollout argmax
    m = jnp.max(AW, axis=-1, keepdims=True)
    first_idx = jnp.min(jnp.where(AW == m, a_iota2, A_DIM),
                        axis=-1, keepdims=True)                # free argmax (first tie)
    tgt_idx = jnp.where(is_tf, atf2[:, t:t + 1], first_idx)
    onehot = (a_iota2 == tgt_idx).astype(f32)                  # (2B, A)
    lse = m + jnp.log(jnp.sum(jnp.exp(AW - m), axis=-1, keepdims=True))
    picked = jnp.sum(AW * onehot, axis=-1, keepdims=True)
    mask_t = (apos2 > t).astype(f32)
    ce_plan_acc = ce_plan_acc + (lse - picked) * mask_t

    # GRU step (PyTorch gate order r, z, n); Emb folded into Wih host-side
    gi = dotf(onehot, emb_wih) + bih_b                         # (2B, 96)
    G = gi + gh
    rz = jax.nn.sigmoid(G[:, 0:2 * DH])
    r = rz[:, 0:DH]
    z = rz[:, DH:2 * DH]
    n = jnp.tanh(gi[:, 2 * DH:3 * DH] + r * gh[:, 2 * DH:3 * DH])
    HS = (1.0 - z) * n + z * HS

    prev_onehot = onehot

  # term-head accounting for the final step (tiny epilogue matmul)
  wtbp_last = dotf(HS, w_fuse[:, 3 * DH + A_DIM:NF])
  term_st = term_step(MAX_LEN - 1, wtbp_last, HS, prev_onehot, term_st)
  ce_term_acc, first_one, noted, psf, plan_act_acc = term_st

  # ---- split the fused batch --------------------------------------------------
  s_B = X[0:B, 0:S_DIM]
  stg_B = X[0:B, S_DIM:2 * S_DIM]
  agold_B = X[0:B, 72:72 + MAX_LEN].astype(jnp.int32)
  spos_B = spos2[0:B]
  apos_B = apos2[0:B]
  h0_B = h0_2[0:B]
  sel_state = sel_acc[0:B]
  plan_state_full = psf[B:B2]
  plan_act = (plan_act_acc[B:B2] >= 1.0).astype(f32)

  # ---- reconstruction head (s_0 and h_s batched together) ---------------------
  rec_in = jnp.concatenate([h0_B, sel_state], axis=0)                # (2B, DH)
  r1 = jnp.maximum(dotf(rec_in, wblk('WR1', DH, H_DIM)) + brow('BR1', H_DIM), 0.0)
  rec = dotf(r1, wblk('WR2', H_DIM, S_DIM)) + brow('BR2', S_DIM)     # (2B, S)
  h_s_rec = rec[B:B2]
  loss_state = (bce_sum(rec[0:B], s_B) + bce_sum(h_s_rec, stg_B)) * (
      1.0 / (B * S_DIM))                                             # sum of two means

  # ---- plan / term losses (teacher rows) --------------------------------------
  apos_f = jnp.minimum(jnp.maximum(apos_B.astype(f32), 0.0), float(MAX_LEN))
  denom = sum2(apos_f)                                               # == sum(mask)
  loss_plan = sum2(ce_plan_acc[0:B]) / denom
  loss_term = sum2(ce_term_acc[0:B]) / denom

  pt = first_one[0:B]
  plan_term = jnp.where(pt >= MAX_LEN, 0, pt).astype(f32)            # (B, 1)
  g = spos_B - 1
  gold_term = jnp.where((g >= 0) & (g < MAX_LEN), g, 0).astype(f32)

  # ---- pair-wise heads: merged first linear, fused [off | on] second ----------
  hcat = jnp.concatenate([h0_B, plan_state_full], axis=1)            # (B, 2*DH)
  hid = jnp.maximum(
      dotf(hcat, wblk('WL1', 2 * DH, A_DIM * Q)) + brow('BL1', A_DIM * Q), 0.0)
  logits2 = dotf(hid, wblk('WL2', A_DIM * Q, 2 * A_DIM)) + brow('BL2', 2 * A_DIM)
  logits_off = logits2[:, 0:A_DIM]
  logits_on = logits2[:, A_DIM:2 * A_DIM]
  # TODO(synk): onehot2id/id2onehot not defined in the source; [off, on] assumed.
  pred_act = (logits_on > logits_off).astype(f32)

  # proc_tgt_tsr: union of gold actions within the mask
  a_iota_B = lax.broadcasted_iota(jnp.int32, (B, A_DIM), 1)
  acc = jnp.zeros((B, A_DIM), f32)
  for i in range(MAX_LEN):
    acc = acc + ((a_iota_B == agold_B[:, i:i + 1]) & (apos_B > i)).astype(f32)
  proc = (acc >= 1.0).astype(f32)
  loss_pred = (bce_sum(logits_off, 1.0 - proc) + bce_sum(logits_on, proc)) * (
      1.0 / (B * 2 * A_DIM))

  # ---- single lane-dense output store -----------------------------------------
  scal_b = jnp.broadcast_to(
      jnp.concatenate([loss_plan, loss_pred, loss_state, loss_term], axis=1),
      (B, 4))
  pad = jnp.zeros((B, OUT_W - (S_DIM + 2 * A_DIM + 6)), f32)
  out_ref[...] = jnp.concatenate(
      [h_s_rec, plan_act, pred_act, plan_term, gold_term, scal_b, pad], axis=1)


# ------------------------------ parameters ----------------------------------
def make_params(key):
  ks = list(jax.random.split(key, 16))
  it = iter(ks)

  def w(shape, scale=0.2):
    return (scale * jax.random.normal(next(it), shape)).astype(jnp.float32)

  z = lambda *shape: jnp.zeros(shape, jnp.float32)
  params = dict(
      W1=w((S_DIM, H_DIM)), b1=z(1, H_DIM),
      W2=w((H_DIM, DH)), b2=z(1, DH),
      Wr1=w((DH, H_DIM)), br1=z(1, H_DIM),
      Wr2=w((H_DIM, S_DIM)), br2=z(1, S_DIM),
      Wp=w((DH, A_DIM)), bp=z(1, A_DIM),
      Wta=w((DH, 2)), Wtb=w((DH, 2)), bt=z(1, 2),
      Wih=w((EMBED, 3 * DH)), Whh=w((DH, 3 * DH)),
      bih=w((1, 3 * DH), 0.05), bhh=w((1, 3 * DH), 0.05),
      Emb=w((A_DIM, EMBED)),
      WL1a=w((DH, A_DIM * Q)), WL1b=w((DH, A_DIM * Q)), bL1=z(1, A_DIM * Q),
      bL2=z(1, 2 * A_DIM),
  )
  # Stack the A_DIM independent pair heads' second linear into one
  # block-diagonal matmul (exactly equivalent to per-head Linear(Q, 2)).
  wl2_per = w((A_DIM, Q, 2))
  blk = jnp.zeros((A_DIM * Q, 2 * A_DIM), jnp.float32)
  for j in range(A_DIM):
    blk = blk.at[j * Q:(j + 1) * Q, 2 * j:2 * j + 2].set(wl2_per[j])
  params['WL2'] = blk
  return params


def pack_params(p):
  """One-time host-side packing: fold Emb@Wih, fuse Whh|Wp|Wtb, concat the
  pair-head linears, cast weights to bf16 and lay everything out in two slabs.
  Called ONCE outside the jitted per-call path."""
  # --- bf16 weight slab: one 128-lane-aligned column block per matrix ---------
  wslab = jnp.zeros(W_SLAB_SHAPE, jnp.float32)

  def put_w(acc, name, w):
    r, c = w.shape
    col = W_BLOCKS[name] * 128
    return acc.at[0:r, col:col + c].set(w)

  emb_wih = p['Emb'] @ p['Wih']                                    # (16, 96)
  wfuse = jnp.concatenate([p['Whh'], p['Wp'], p['Wtb']], axis=1)   # (32, 114)
  wl1 = jnp.concatenate([p['WL1a'], p['WL1b']], axis=0)            # (64, 64)
  wl2 = jnp.concatenate([p['WL2'][:, 0::2], p['WL2'][:, 1::2]], axis=1)  # (64, 32)

  for name, w in [('W1', p['W1']), ('W2', p['W2']), ('WFUSE', wfuse),
                  ('EMBWIH', emb_wih), ('WTA', p['Wta']), ('WR1', p['Wr1']),
                  ('WR2', p['Wr2']), ('WL1', wl1), ('WL2', wl2)]:
    wslab = put_w(wslab, name, w)
  wslab = wslab.astype(jnp.bfloat16)

  # --- f32 bias slab: one bias (pre-combined where needed) per row ------------
  bslab = jnp.zeros(B_SLAB_SHAPE, jnp.float32)

  def put_b(acc, name, b):
    b = b.reshape(1, -1)
    r = B_ROWS[name]
    return acc.at[r:r + 1, 0:b.shape[1]].set(b)

  bfuse = jnp.concatenate([p['bhh'], p['bp']], axis=1)             # (1, 112)
  bl2 = jnp.concatenate([p['bL2'][:, 0::2], p['bL2'][:, 1::2]], axis=1)
  for name, b in [('FUSE', bfuse), ('IH', p['bih']), ('B1', p['b1']),
                  ('B2', p['b2']), ('BT', p['bt']), ('BR1', p['br1']),
                  ('BR2', p['br2']), ('BL1', p['bL1']), ('BL2', bl2)]:
    bslab = put_b(bslab, name, b)
  return wslab, bslab


# ------------------------------- wrapper -------------------------------------
def _full_spec(shape):
  nd = len(shape)
  return pl.BlockSpec(shape, lambda i, nd=nd: (0,) * nd)


@jax.jit
def pedp_forward(w_slab, b_slab, s, a_target_gold, beta, s_target_gold,
                 s_target_pos, a_target_full, a_target_pos):
  """Return tuple matches PEDP_model.forward (train_type forced to 'valid')."""
  del beta  # teacher-forcing gate is dead code under the forced 'valid' path
  f32 = jnp.float32

  # Pack all data inputs into one lane-dense slab; duplicate rows (teacher|free).
  x = jnp.concatenate([
      s.astype(f32),
      s_target_gold.astype(f32),
      a_target_full.astype(f32),
      a_target_gold.astype(f32),
      s_target_pos.reshape(B, 1).astype(f32),
      a_target_pos.reshape(B, 1).astype(f32),
      jnp.zeros((B, 128 - (2 * S_DIM + 2 * MAX_LEN + 2)), f32),
  ], axis=1)
  x2 = jnp.concatenate([x, x], axis=0)                    # (2B, 128)

  slab = pl.pallas_call(
      _pedp_kernel,
      out_shape=jax.ShapeDtypeStruct((B, OUT_W), jnp.float32),
      grid=(1,),
      in_specs=[_full_spec(x2.shape), _full_spec(W_SLAB_SHAPE),
                _full_spec(B_SLAB_SHAPE)],
      out_specs=_full_spec((B, OUT_W)),
      compiler_params=pltpu.CompilerParams(dimension_semantics=("arbitrary",)),
  )(x2, w_slab, b_slab)

  # Pure slicing of the lane-dense slab (no follow-up compute in the wrapper).
  h_s_rec = slab[:, 0:S_DIM]
  plan_act_tsr = slab[:, 32:32 + A_DIM]
  pred_act_tsr = slab[:, 48:48 + A_DIM]
  plan_term_tsr = slab[:, 64].astype(jnp.int32)
  gold_term_tsr = slab[:, 65].astype(jnp.int32)
  loss_plan = slab[0, 66]
  loss_pred = slab[0, 67]
  loss_state = slab[0:1, 68]
  loss_term = slab[0, 69]
  loss_kl = jnp.zeros((1,), jnp.float32)

  return (loss_plan, plan_act_tsr, loss_pred, pred_act_tsr, loss_state, h_s_rec,
          loss_kl, loss_term, plan_term_tsr, gold_term_tsr)


# --------------------------------- main --------------------------------------
if __name__ == "__main__":
  key = jax.random.PRNGKey(0)
  kp, k1, k2, k3, k4, k5, k6 = jax.random.split(key, 7)
  params = make_params(kp)
  w_slab, b_slab = pack_params(params)       # one-time host-side folding/packing

  s = jax.random.uniform(k1, (B, S_DIM), jnp.float32)             # BCE target in [0,1]
  s_target_gold = jax.random.uniform(k2, (B, S_DIM), jnp.float32)
  a_target_gold = jax.random.randint(k3, (B, MAX_LEN), 0, A_DIM)
  a_target_full = jax.random.randint(k4, (B, MAX_LEN), 0, A_DIM)
  s_target_pos = jax.random.randint(k5, (B, 1), 1, MAX_LEN)
  a_target_pos = jax.random.randint(k6, (B, 1), 1, MAX_LEN + 1)
  beta = 0.5

  outs = pedp_forward(w_slab, b_slab, s, a_target_gold, beta, s_target_gold,
                      s_target_pos, a_target_full, a_target_pos)
  jax.block_until_ready(outs)
  print("KERNEL_OK")
</pallas_src>

<mosaic_0001>
module attributes {stable_mosaic.version = 11 : i64} {
  func.func @_pedp_kernel(%arg0: i32, %arg1: memref<8x128xf32, #tpu.memory_space<vmem>>, %arg2: memref<64x1152xbf16, #tpu.memory_space<vmem>>, %arg3: memref<16x128xf32, #tpu.memory_space<vmem>>, %arg4: memref<4x128xf32, #tpu.memory_space<vmem>>) attributes {dimension_semantics = [#tpu.dimension_semantics<arbitrary>], iteration_bounds = array<i64: 1>, scalar_prefetch = 0 : i64, scratch_operands = 0 : i64, tpu.core_type = #tpu.core_type<tc>, window_params = [{pipeline_mode = #tpu.pipeline_mode<synchronous>, transform_indices = @transform_0, window_bounds = array<i64: 8, 128>}, {pipeline_mode = #tpu.pipeline_mode<synchronous>, transform_indices = @transform_1, window_bounds = array<i64: 64, 1152>}, {pipeline_mode = #tpu.pipeline_mode<synchronous>, transform_indices = @transform_2, window_bounds = array<i64: 16, 128>}, {pipeline_mode = #tpu.pipeline_mode<synchronous>, transform_indices = @transform_3, window_bounds = array<i64: 4, 128>}]} {
    %c0 = arith.constant 0 : index
    %c0_0 = arith.constant 0 : index
    %0 = vector.load %arg1[%c0, %c0_0] : memref<8x128xf32, #tpu.memory_space<vmem>>, vector<8x128xf32>
    %1 = vector.extract_strided_slice %0 {offsets = [0, 0], sizes = [8, 32], strides = [1, 1]} : vector<8x128xf32> to vector<8x32xf32>
    %2 = vector.extract_strided_slice %0 {offsets = [0, 64], sizes = [8, 8], strides = [1, 1]} : vector<8x128xf32> to vector<8x8xf32>
    %3 = arith.fptosi %2 : vector<8x8xf32> to vector<8x8xi32>
    %4 = vector.extract_strided_slice %0 {offsets = [0, 80], sizes = [8, 1], strides = [1, 1]} : vector<8x128xf32> to vector<8x1xf32>
    %5 = arith.fptosi %4 : vector<8x1xf32> to vector<8x1xi32>
    %6 = vector.extract_strided_slice %0 {offsets = [0, 81], sizes = [8, 1], strides = [1, 1]} : vector<8x128xf32> to vector<8x1xf32>
    %7 = arith.fptosi %6 : vector<8x1xf32> to vector<8x1xi32>
    %8 = tpu.iota {dimensions = array<i32: 1>} : vector<8x16xi32>
    %9 = tpu.iota {dimensions = array<i32: 0>} : vector<8x1xi32>
    %c4_i32 = arith.constant 4 : i32
    %10 = vector.broadcast %c4_i32 : i32 to vector<8x1xi32>
    %11 = arith.cmpi slt, %9, %10 : vector<8x1xi32>
    %c0_1 = arith.constant 0 : index
    %c0_2 = arith.constant 0 : index
    %12 = vector.load %arg2[%c0_1, %c0_2] : memref<64x1152xbf16, #tpu.memory_space<vmem>>, vector<32x64xbf16>
    %13 = arith.truncf %1 : vector<8x32xf32> to vector<8x32xbf16>
    %cst = arith.constant dense<0.000000e+00> : vector<8x64xf32>
    %14 = tpu.matmul %13, %12, %cst {dimension_numbers = #tpu.dot_dimension_numbers<[1], [0], [0], [1], [0, 0, 1, 1], [], []>} : vector<8x32xbf16>, vector<32x64xbf16>, vector<8x64xf32> -> vector<8x64xf32>
    %c2 = arith.constant 2 : index
    %c0_3 = arith.constant 0 : index
    %15 = vector.load %arg3[%c2, %c0_3] : memref<16x128xf32, #tpu.memory_space<vmem>>, vector<1x64xf32>
    %16 = vector.broadcast %15 : vector<1x64xf32> to vector<8x64xf32>
    %17 = arith.addf %14, %16 : vector<8x64xf32>
    %cst_4 = arith.constant 0.000000e+00 : f32
    %18 = vector.broadcast %cst_4 : f32 to vector<8x64xf32>
    %19 = arith.maximumf %17, %18 : vector<8x64xf32>
    %c0_5 = arith.constant 0 : index
    %c128 = arith.constant 128 : index
    %20 = vector.load %arg2[%c0_5, %c128] : memref<64x1152xbf16, #tpu.memory_space<vmem>>, vector<64x32xbf16>
    %21 = arith.truncf %19 : vector<8x64xf32> to vector<8x64xbf16>
    %cst_6 = arith.constant dense<0.000000e+00> : vector<8x32xf32>
    %22 = tpu.matmul %21, %20, %cst_6 {dimension_numbers = #tpu.dot_dimension_numbers<[1], [0], [0], [1], [0, 0, 1, 1], [], []>} : vector<8x64xbf16>, vector<64x32xbf16>, vector<8x32xf32> -> vector<8x32xf32>
    %c3 = arith.constant 3 : index
    %c0_7 = arith.constant 0 : index
    %23 = vector.load %arg3[%c3, %c0_7] : memref<16x128xf32, #tpu.memory_space<vmem>>, vector<1x32xf32>
    %24 = vector.broadcast %23 : vector<1x32xf32> to vector<8x32xf32>
    %25 = arith.addf %22, %24 : vector<8x32xf32>
    %c0_8 = arith.constant 0 : index
    %c512 = arith.constant 512 : index
    %26 = vector.load %arg2[%c0_8, %c512] : memref<64x1152xbf16, #tpu.memory_space<vmem>>, vector<32x2xbf16>
    %27 = arith.truncf %25 : vector<8x32xf32> to vector<8x32xbf16>
    %cst_9 = arith.constant dense<0.000000e+00> : vector<8x2xf32>
    %28 = tpu.matmul %27, %26, %cst_9 {dimension_numbers = #tpu.dot_dimension_numbers<[1], [0], [0], [1], [0, 0, 1, 1], [], []>} : vector<8x32xbf16>, vector<32x2xbf16>, vector<8x2xf32> -> vector<8x2xf32>
    %c4 = arith.constant 4 : index
    %c0_10 = arith.constant 0 : index
    %29 = vector.load %arg3[%c4, %c0_10] : memref<16x128xf32, #tpu.memory_space<vmem>>, vector<1x2xf32>
    %30 = vector.broadcast %29 : vector<1x2xf32> to vector<8x2xf32>
    %31 = arith.addf %28, %30 : vector<8x2xf32>
    %c0_11 = arith.constant 0 : index
    %c256 = arith.constant 256 : index
    %32 = vector.load %arg2[%c0_11, %c256] : memref<64x1152xbf16, #tpu.memory_space<vmem>>, vector<32x114xbf16>
    %c0_12 = arith.constant 0 : index
    %c384 = arith.constant 384 : index
    %33 = vector.load %arg2[%c0_12, %c384] : memref<64x1152xbf16, #tpu.memory_space<vmem>>, vector<16x96xbf16>
    %c0_13 = arith.constant 0 : index
    %c0_14 = arith.constant 0 : index
    %34 = vector.load %arg3[%c0_13, %c0_14] : memref<16x128xf32, #tpu.memory_space<vmem>>, vector<1x114xf32>
    %35 = vector.shape_cast %34 : vector<1x114xf32> to vector<1x114xf32>
    %36 = vector.broadcast %35 : vector<1x114xf32> to vector<8x114xf32>
    %c1 = arith.constant 1 : index
    %c0_15 = arith.constant 0 : index
    %37 = vector.load %arg3[%c1, %c0_15] : memref<16x128xf32, #tpu.memory_space<vmem>>, vector<1x96xf32>
    %38 = vector.shape_cast %37 : vector<1x96xf32> to vector<1x96xf32>
    %39 = vector.broadcast %38 : vector<1x96xf32> to vector<8x96xf32>
    %cst_16 = arith.constant 0.000000e+00 : f32
    %40 = vector.broadcast %cst_16 : f32 to vector<8x32xf32>
    %cst_17 = arith.constant 0.000000e+00 : f32
    %41 = vector.broadcast %cst_17 : f32 to vector<8x1xf32>
    %cst_18 = arith.constant 0.000000e+00 : f32
    %42 = vector.broadcast %cst_18 : f32 to vector<8x1xf32>
    %c8_i32 = arith.constant 8 : i32
    %43 = vector.broadcast %c8_i32 : i32 to vector<8x1xi32>
    %c0_i32 = arith.constant 0 : i32
    %44 = vector.broadcast %c0_i32 : i32 to vector<8x1xi32>
    %cst_19 = arith.constant 0.000000e+00 : f32
    %45 = vector.broadcast %cst_19 : f32 to vector<8x32xf32>
    %cst_20 = arith.constant 0.000000e+00 : f32
    %46 = vector.broadcast %cst_20 : f32 to vector<8x16xf32>
    %47 = arith.truncf %25 : vector<8x32xf32> to vector<8x32xbf16>
    %cst_21 = arith.constant dense<0.000000e+00> : vector<8x114xf32>
    %48 = tpu.matmul %47, %32, %cst_21 {dimension_numbers = #tpu.dot_dimension_numbers<[1], [0], [0], [1], [0, 0, 1, 1], [], []>} : vector<8x32xbf16>, vector<32x114xbf16>, vector<8x114xf32> -> vector<8x114xf32>
    %49 = arith.addf %48, %36 : vector<8x114xf32>
    %50 = vector.extract_strided_slice %49 {offsets = [0, 0], sizes = [8, 96], strides = [1, 1]} : vector<8x114xf32> to vector<8x96xf32>
    %51 = vector.extract_strided_slice %49 {offsets = [0, 96], sizes = [8, 16], strides = [1, 1]} : vector<8x114xf32> to vector<8x16xf32>
    %c0_i32_22 = arith.constant 0 : i32
    %52 = vector.broadcast %c0_i32_22 : i32 to vector<8x1xi32>
    %53 = arith.cmpi eq, %5, %52 : vector<8x1xi32>
    %54 = arith.extui %53 : vector<8x1xi1> to vector<8x1xi32>
    %55 = arith.sitofp %54 : vector<8x1xi32> to vector<8x1xf32>
    %56 = vector.broadcast %55 : vector<8x1xf32> to vector<8x32xf32>
    %57 = arith.mulf %25, %56 : vector<8x32xf32>
    %58 = arith.addf %40, %57 : vector<8x32xf32>
    %cst_23 = arith.constant dense<0xFF800000> : vector<8xf32>
    %59 = vector.multi_reduction <maximumf>, %51, %cst_23 [1] : vector<8x16xf32> to vector<8xf32>
    %60 = vector.shape_cast %59 : vector<8xf32> to vector<8x1xf32>
    %61 = vector.broadcast %60 : vector<8x1xf32> to vector<8x16xf32>
    %62 = arith.cmpf oeq, %51, %61 : vector<8x16xf32>
    %c16_i32 = arith.constant 16 : i32
    %63 = vector.broadcast %c16_i32 : i32 to vector<8x16xi32>
    %64 = arith.select %62, %8, %63 : vector<8x16xi1>, vector<8x16xi32>
    %cst_24 = arith.constant dense<2147483647> : vector<8xi32>
    %65 = vector.multi_reduction <minsi>, %64, %cst_24 [1] : vector<8x16xi32> to vector<8xi32>
    %66 = vector.shape_cast %65 : vector<8xi32> to vector<8x1xi32>
    %67 = vector.extract_strided_slice %3 {offsets = [0, 0], sizes = [8, 1], strides = [1, 1]} : vector<8x8xi32> to vector<8x1xi32>
    %68 = arith.select %11, %67, %66 : vector<8x1xi1>, vector<8x1xi32>
    %69 = vector.broadcast %68 : vector<8x1xi32> to vector<8x16xi32>
    %70 = arith.cmpi eq, %8, %69 : vector<8x16xi32>
    %71 = arith.extui %70 : vector<8x16xi1> to vector<8x16xi32>
    %72 = arith.sitofp %71 : vector<8x16xi32> to vector<8x16xf32>
    %73 = vector.broadcast %60 : vector<8x1xf32> to vector<8x16xf32>
    %74 = arith.subf %51, %73 : vector<8x16xf32>
    %75 = math.exp %74 : vector<8x16xf32>
    %cst_25 = arith.constant dense<0.000000e+00> : vector<8xf32>
    %76 = vector.multi_reduction <add>, %75, %cst_25 [1] : vector<8x16xf32> to vector<8xf32>
    %77 = vector.shape_cast %76 : vector<8xf32> to vector<8x1xf32>
    %78 = math.log %77 : vector<8x1xf32>
    %79 = arith.addf %60, %78 : vector<8x1xf32>
    %80 = arith.mulf %51, %72 : vector<8x16xf32>
    %cst_26 = arith.constant dense<0.000000e+00> : vector<8xf32>
    %81 = vector.multi_reduction <add>, %80, %cst_26 [1] : vector<8x16xf32> to vector<8xf32>
    %82 = vector.shape_cast %81 : vector<8xf32> to vector<8x1xf32>
    %c0_i32_27 = arith.constant 0 : i32
    %83 = vector.broadcast %c0_i32_27 : i32 to vector<8x1xi32>
    %84 = arith.cmpi sgt, %7, %83 : vector<8x1xi32>
    %85 = arith.extui %84 : vector<8x1xi1> to vector<8x1xi32>
    %86 = arith.sitofp %85 : vector<8x1xi32> to vector<8x1xf32>
    %87 = arith.subf %79, %82 : vector<8x1xf32>
    %88 = arith.mulf %87, %86 : vector<8x1xf32>
    %89 = arith.addf %41, %88 : vector<8x1xf32>
    %90 = arith.truncf %72 : vector<8x16xf32> to vector<8x16xbf16>
    %cst_28 = arith.constant dense<0.000000e+00> : vector<8x96xf32>
    %91 = tpu.matmul %90, %33, %cst_28 {dimension_numbers = #tpu.dot_dimension_numbers<[1], [0], [0], [1], [0, 0, 1, 1], [], []>} : vector<8x16xbf16>, vector<16x96xbf16>, vector<8x96xf32> -> vector<8x96xf32>
    %92 = arith.addf %91, %39 : vector<8x96xf32>
    %93 = arith.addf %92, %50 : vector<8x96xf32>
    %94 = vector.extract_strided_slice %93 {offsets = [0, 0], sizes = [8, 64], strides = [1, 1]} : vector<8x96xf32> to vector<8x64xf32>
    %95 = arith.negf %94 : vector<8x64xf32>
    %96 = math.exp %95 : vector<8x64xf32>
    %cst_29 = arith.constant 1.000000e+00 : f32
    %97 = vector.broadcast %cst_29 : f32 to vector<8x64xf32>
    %98 = arith.addf %97, %96 : vector<8x64xf32>
    %99 = arith.divf %97, %98 : vector<8x64xf32>
    %100 = vector.extract_strided_slice %99 {offsets = [0, 0], sizes = [8, 32], strides = [1, 1]} : vector<8x64xf32> to vector<8x32xf32>
    %101 = vector.extract_strided_slice %99 {offsets = [0, 32], sizes = [8, 32], strides = [1, 1]} : vector<8x64xf32> to vector<8x32xf32>
    %102 = vector.extract_strided_slice %92 {offsets = [0, 64], sizes = [8, 32], strides = [1, 1]} : vector<8x96xf32> to vector<8x32xf32>
    %103 = vector.extract_strided_slice %50 {offsets = [0, 64], sizes = [8, 32], strides = [1, 1]} : vector<8x96xf32> to vector<8x32xf32>
    %104 = arith.mulf %100, %103 : vector<8x32xf32>
    %105 = arith.addf %102, %104 : vector<8x32xf32>
    %106 = math.tanh %105 : vector<8x32xf32>
    %cst_30 = arith.constant 1.000000e+00 : f32
    %107 = vector.broadcast %cst_30 : f32 to vector<8x32xf32>
    %108 = arith.subf %107, %101 : vector<8x32xf32>
    %109 = arith.mulf %108, %106 : vector<8x32xf32>
    %110 = arith.mulf %101, %25 : vector<8x32xf32>
    %111 = arith.addf %109, %110 : vector<8x32xf32>
    %112 = arith.truncf %111 : vector<8x32xf32> to vector<8x32xbf16>
    %cst_31 = arith.constant dense<0.000000e+00> : vector<8x114xf32>
    %113 = tpu.matmul %112, %32, %cst_31 {dimension_numbers = #tpu.dot_dimension_numbers<[1], [0], [0], [1], [0, 0, 1, 1], [], []>} : vector<8x32xbf16>, vector<32x114xbf16>, vector<8x114xf32> -> vector<8x114xf32>
    %114 = arith.addf %113, %36 : vector<8x114xf32>
    %115 = vector.extract_strided_slice %114 {offsets = [0, 0], sizes = [8, 96], strides = [1, 1]} : vector<8x114xf32> to vector<8x96xf32>
    %116 = vector.extract_strided_slice %114 {offsets = [0, 96], sizes = [8, 16], strides = [1, 1]} : vector<8x114xf32> to vector<8x16xf32>
    %117 = vector.extract_strided_slice %114 {offsets = [0, 112], sizes = [8, 2], strides = [1, 1]} : vector<8x114xf32> to vector<8x2xf32>
    %118 = arith.addf %31, %117 : vector<8x2xf32>
    %119 = vector.extract_strided_slice %118 {offsets = [0, 0], sizes = [8, 1], strides = [1, 1]} : vector<8x2xf32> to vector<8x1xf32>
    %120 = vector.extract_strided_slice %118 {offsets = [0, 1], sizes = [8, 1], strides = [1, 1]} : vector<8x2xf32> to vector<8x1xf32>
    %121 = arith.maximumf %119, %120 : vector<8x1xf32>
    %122 = arith.subf %119, %121 : vector<8x1xf32>
    %123 = math.exp %122 : vector<8x1xf32>
    %124 = arith.subf %120, %121 : vector<8x1xf32>
    %125 = math.exp %124 : vector<8x1xf32>
    %126 = arith.addf %123, %125 : vector<8x1xf32>
    %127 = math.log %126 : vector<8x1xf32>
    %128 = arith.addf %121, %127 : vector<8x1xf32>
    %c1_i32 = arith.constant 1 : i32
    %129 = vector.broadcast %c1_i32 : i32 to vector<8x1xi32>
    %130 = arith.cmpi eq, %5, %129 : vector<8x1xi32>
    %131 = arith.extui %130 : vector<8x1xi1> to vector<8x1xi32>
    %132 = arith.sitofp %131 : vector<8x1xi32> to vector<8x1xf32>
    %133 = arith.mulf %132, %120 : vector<8x1xf32>
    %cst_32 = arith.constant 1.000000e+00 : f32
    %134 = vector.broadcast %cst_32 : f32 to vector<8x1xf32>
    %135 = arith.subf %134, %132 : vector<8x1xf32>
    %136 = arith.mulf %135, %119 : vector<8x1xf32>
    %137 = arith.addf %133, %136 : vector<8x1xf32>
    %c0_i32_33 = arith.constant 0 : i32
    %138 = vector.broadcast %c0_i32_33 : i32 to vector<8x1xi32>
    %139 = arith.cmpi sgt, %7, %138 : vector<8x1xi32>
    %140 = arith.extui %139 : vector<8x1xi1> to vector<8x1xi32>
    %141 = arith.sitofp %140 : vector<8x1xi32> to vector<8x1xf32>
    %142 = arith.subf %128, %137 : vector<8x1xf32>
    %143 = arith.mulf %142, %141 : vector<8x1xf32>
    %144 = arith.addf %42, %143 : vector<8x1xf32>
    %145 = arith.cmpf ogt, %120, %119 : vector<8x1xf32>
    %c0_i32_34 = arith.constant 0 : i32
    %c8_i32_35 = arith.constant 8 : i32
    %146 = vector.broadcast %c0_i32_34 : i32 to vector<8x1xi32>
    %147 = vector.broadcast %c8_i32_35 : i32 to vector<8x1xi32>
    %148 = arith.select %145, %146, %147 : vector<8x1xi1>, vector<8x1xi32>
    %149 = arith.minsi %43, %148 : vector<8x1xi32>
    %150 = arith.extui %145 : vector<8x1xi1> to vector<8x1xi32>
    %151 = arith.sitofp %150 : vector<8x1xi32> to vector<8x1xf32>
    %152 = arith.extui %145 : vector<8x1xi1> to vector<8x1xi32>
    %153 = arith.addi %44, %152 : vector<8x1xi32>
    %c1_i32_36 = arith.constant 1 : i32
    %154 = vector.broadcast %c1_i32_36 : i32 to vector<8x1xi32>
    %155 = arith.cmpi eq, %153, %154 : vector<8x1xi32>
    %156 = arith.extui %155 : vector<8x1xi1> to vector<8x1xi32>
    %157 = arith.sitofp %156 : vector<8x1xi32> to vector<8x1xf32>
    %cst_37 = arith.constant 1.000000e+00 : f32
    %158 = vector.broadcast %cst_37 : f32 to vector<8x1xf32>
    %159 = arith.subf %158, %157 : vector<8x1xf32>
    %160 = vector.broadcast %159 : vector<8x1xf32> to vector<8x32xf32>
    %161 = arith.mulf %45, %160 : vector<8x32xf32>
    %162 = vector.broadcast %157 : vector<8x1xf32> to vector<8x32xf32>
    %163 = arith.mulf %111, %162 : vector<8x32xf32>
    %164 = arith.addf %161, %163 : vector<8x32xf32>
    %c2_i32 = arith.constant 2 : i32
    %165 = vector.broadcast %c2_i32 : i32 to vector<8x1xi32>
    %166 = arith.muli %153, %165 : vector<8x1xi32>
    %167 = vector.broadcast %151 : vector<8x1xf32> to vector<8x16xf32>
    %168 = arith.mulf %72, %167 : vector<8x16xf32>
    %169 = arith.addf %46, %168 : vector<8x16xf32>
    %c1_i32_38 = arith.constant 1 : i32
    %170 = vector.broadcast %c1_i32_38 : i32 to vector<8x1xi32>
    %171 = arith.cmpi eq, %5, %170 : vector<8x1xi32>
    %172 = arith.extui %171 : vector<8x1xi1> to vector<8x1xi32>
    %173 = arith.sitofp %172 : vector<8x1xi32> to vector<8x1xf32>
    %174 = vector.broadcast %173 : vector<8x1xf32> to vector<8x32xf32>
    %175 = arith.mulf %111, %174 : vector<8x32xf32>
    %176 = arith.addf %58, %175 : vector<8x32xf32>
    %cst_39 = arith.constant dense<0xFF800000> : vector<8xf32>
    %177 = vector.multi_reduction <maximumf>, %116, %cst_39 [1] : vector<8x16xf32> to vector<8xf32>
    %178 = vector.shape_cast %177 : vector<8xf32> to vector<8x1xf32>
    %179 = vector.broadcast %178 : vector<8x1xf32> to vector<8x16xf32>
    %180 = arith.cmpf oeq, %116, %179 : vector<8x16xf32>
    %c16_i32_40 = arith.constant 16 : i32
    %181 = vector.broadcast %c16_i32_40 : i32 to vector<8x16xi32>
    %182 = arith.select %180, %8, %181 : vector<8x16xi1>, vector<8x16xi32>
    %cst_41 = arith.constant dense<2147483647> : vector<8xi32>
    %183 = vector.multi_reduction <minsi>, %182, %cst_41 [1] : vector<8x16xi32> to vector<8xi32>
    %184 = vector.shape_cast %183 : vector<8xi32> to vector<8x1xi32>
    %185 = vector.extract_strided_slice %3 {offsets = [0, 1], sizes = [8, 1], strides = [1, 1]} : vector<8x8xi32> to vector<8x1xi32>
    %186 = arith.select %11, %185, %184 : vector<8x1xi1>, vector<8x1xi32>
    %187 = vector.broadcast %186 : vector<8x1xi32> to vector<8x16xi32>
    %188 = arith.cmpi eq, %8, %187 : vector<8x16xi32>
    %189 = arith.extui %188 : vector<8x16xi1> to vector<8x16xi32>
    %190 = arith.sitofp %189 : vector<8x16xi32> to vector<8x16xf32>
    %191 = vector.broadcast %178 : vector<8x1xf32> to vector<8x16xf32>
    %192 = arith.subf %116, %191 : vector<8x16xf32>
    %193 = math.exp %192 : vector<8x16xf32>
    %cst_42 = arith.constant dense<0.000000e+00> : vector<8xf32>
    %194 = vector.multi_reduction <add>, %193, %cst_42 [1] : vector<8x16xf32> to vector<8xf32>
    %195 = vector.shape_cast %194 : vector<8xf32> to vector<8x1xf32>
    %196 = math.log %195 : vector<8x1xf32>
    %197 = arith.addf %178, %196 : vector<8x1xf32>
    %198 = arith.mulf %116, %190 : vector<8x16xf32>
    %cst_43 = arith.constant dense<0.000000e+00> : vector<8xf32>
    %199 = vector.multi_reduction <add>, %198, %cst_43 [1] : vector<8x16xf32> to vector<8xf32>
    %200 = vector.shape_cast %199 : vector<8xf32> to vector<8x1xf32>
    %c1_i32_44 = arith.constant 1 : i32
    %201 = vector.broadcast %c1_i32_44 : i32 to vector<8x1xi32>
    %202 = arith.cmpi sgt, %7, %201 : vector<8x1xi32>
    %203 = arith.extui %202 : vector<8x1xi1> to vector<8x1xi32>
    %204 = arith.sitofp %203 : vector<8x1xi32> to vector<8x1xf32>
    %205 = arith.subf %197, %200 : vector<8x1xf32>
    %206 = arith.mulf %205, %204 : vector<8x1xf32>
    %207 = arith.addf %89, %206 : vector<8x1xf32>
    %208 = arith.truncf %190 : vector<8x16xf32> to vector<8x16xbf16>
    %cst_45 = arith.constant dense<0.000000e+00> : vector<8x96xf32>
    %209 = tpu.matmul %208, %33, %cst_45 {dimension_numbers = #tpu.dot_dimension_numbers<[1], [0], [0], [1], [0, 0, 1, 1], [], []>} : vector<8x16xbf16>, vector<16x96xbf16>, vector<8x96xf32> -> vector<8x96xf32>
    %210 = arith.addf %209, %39 : vector<8x96xf32>
    %211 = arith.addf %210, %115 : vector<8x96xf32>
    %212 = vector.extract_strided_slice %211 {offsets = [0, 0], sizes = [8, 64], strides = [1, 1]} : vector<8x96xf32> to vector<8x64xf32>
    %213 = arith.negf %212 : vector<8x64xf32>
    %214 = math.exp %213 : vector<8x64xf32>
    %cst_46 = arith.constant 1.000000e+00 : f32
    %215 = vector.broadcast %cst_46 : f32 to vector<8x64xf32>
    %216 = arith.addf %215, %214 : vector<8x64xf32>
    %217 = arith.divf %215, %216 : vector<8x64xf32>
    %218 = vector.extract_strided_slice %217 {offsets = [0, 0], sizes = [8, 32], strides = [1, 1]} : vector<8x64xf32> to vector<8x32xf32>
    %219 = vector.extract_strided_slice %217 {offsets = [0, 32], sizes = [8, 32], strides = [1, 1]} : vector<8x64xf32> to vector<8x32xf32>
    %220 = vector.extract_strided_slice %210 {offsets = [0, 64], sizes = [8, 32], strides = [1, 1]} : vector<8x96xf32> to vector<8x32xf32>
    %221 = vector.extract_strided_slice %115 {offsets = [0, 64], sizes = [8, 32], strides = [1, 1]} : vector<8x96xf32> to vector<8x32xf32>
    %222 = arith.mulf %218, %221 : vector<8x32xf32>
    %223 = arith.addf %220, %222 : vector<8x32xf32>
    %224 = math.tanh %223 : vector<8x32xf32>
    %cst_47 = arith.constant 1.000000e+00 : f32
    %225 = vector.broadcast %cst_47 : f32 to vector<8x32xf32>
    %226 = arith.subf %225, %219 : vector<8x32xf32>
    %227 = arith.mulf %226, %224 : vector<8x32xf32>
    %228 = arith.mulf %219, %111 : vector<8x32xf32>
    %229 = arith.addf %227, %228 : vector<8x32xf32>
    %230 = arith.truncf %229 : vector<8x32xf32> to vector<8x32xbf16>
    %cst_48 = arith.constant dense<0.000000e+00> : vector<8x114xf32>
    %231 = tpu.matmul %230, %32, %cst_48 {dimension_numbers = #tpu.dot_dimension_numbers<[1], [0], [0], [1], [0, 0, 1, 1], [], []>} : vector<8x32xbf16>, vector<32x114xbf16>, vector<8x114xf32> -> vector<8x114xf32>
    %232 = arith.addf %231, %36 : vector<8x114xf32>
    %233 = vector.extract_strided_slice %232 {offsets = [0, 0], sizes = [8, 96], strides = [1, 1]} : vector<8x114xf32> to vector<8x96xf32>
    %234 = vector.extract_strided_slice %232 {offsets = [0, 96], sizes = [8, 16], strides = [1, 1]} : vector<8x114xf32> to vector<8x16xf32>
    %235 = vector.extract_strided_slice %232 {offsets = [0, 112], sizes = [8, 2], strides = [1, 1]} : vector<8x114xf32> to vector<8x2xf32>
    %236 = arith.addf %31, %235 : vector<8x2xf32>
    %237 = vector.extract_strided_slice %236 {offsets = [0, 0], sizes = [8, 1], strides = [1, 1]} : vector<8x2xf32> to vector<8x1xf32>
    %238 = vector.extract_strided_slice %236 {offsets = [0, 1], sizes = [8, 1], strides = [1, 1]} : vector<8x2xf32> to vector<8x1xf32>
    %239 = arith.maximumf %237, %238 : vector<8x1xf32>
    %240 = arith.subf %237, %239 : vector<8x1xf32>
    %241 = math.exp %240 : vector<8x1xf32>
    %242 = arith.subf %238, %239 : vector<8x1xf32>
    %243 = math.exp %242 : vector<8x1xf32>
    %244 = arith.addf %241, %243 : vector<8x1xf32>
    %245 = math.log %244 : vector<8x1xf32>
    %246 = arith.addf %239, %245 : vector<8x1xf32>
    %c2_i32_49 = arith.constant 2 : i32
    %247 = vector.broadcast %c2_i32_49 : i32 to vector<8x1xi32>
    %248 = arith.cmpi eq, %5, %247 : vector<8x1xi32>
    %249 = arith.extui %248 : vector<8x1xi1> to vector<8x1xi32>
    %250 = arith.sitofp %249 : vector<8x1xi32> to vector<8x1xf32>
    %251 = arith.mulf %250, %238 : vector<8x1xf32>
    %cst_50 = arith.constant 1.000000e+00 : f32
    %252 = vector.broadcast %cst_50 : f32 to vector<8x1xf32>
    %253 = arith.subf %252, %250 : vector<8x1xf32>
    %254 = arith.mulf %253, %237 : vector<8x1xf32>
    %255 = arith.addf %251, %254 : vector<8x1xf32>
    %c1_i32_51 = arith.constant 1 : i32
    %256 = vector.broadcast %c1_i32_51 : i32 to vector<8x1xi32>
    %257 = arith.cmpi sgt, %7, %256 : vector<8x1xi32>
    %258 = arith.extui %257 : vector<8x1xi1> to vector<8x1xi32>
    %259 = arith.sitofp %258 : vector<8x1xi32> to vector<8x1xf32>
    %260 = arith.subf %246, %255 : vector<8x1xf32>
    %261 = arith.mulf %260, %259 : vector<8x1xf32>
    %262 = arith.addf %144, %261 : vector<8x1xf32>
    %263 = arith.cmpf ogt, %238, %237 : vector<8x1xf32>
    %c1_i32_52 = arith.constant 1 : i32
    %c8_i32_53 = arith.constant 8 : i32
    %264 = vector.broadcast %c1_i32_52 : i32 to vector<8x1xi32>
    %265 = vector.broadcast %c8_i32_53 : i32 to vector<8x1xi32>
    %266 = arith.select %263, %264, %265 : vector<8x1xi1>, vector<8x1xi32>
    %267 = arith.minsi %149, %266 : vector<8x1xi32>
    %268 = arith.extui %263 : vector<8x1xi1> to vector<8x1xi32>
    %269 = arith.sitofp %268 : vector<8x1xi32> to vector<8x1xf32>
    %270 = arith.extui %263 : vector<8x1xi1> to vector<8x1xi32>
    %271 = arith.addi %166, %270 : vector<8x1xi32>
    %c1_i32_54 = arith.constant 1 : i32
    %272 = vector.broadcast %c1_i32_54 : i32 to vector<8x1xi32>
    %273 = arith.cmpi eq, %271, %272 : vector<8x1xi32>
    %274 = arith.extui %273 : vector<8x1xi1> to vector<8x1xi32>
    %275 = arith.sitofp %274 : vector<8x1xi32> to vector<8x1xf32>
    %cst_55 = arith.constant 1.000000e+00 : f32
    %276 = vector.broadcast %cst_55 : f32 to vector<8x1xf32>
    %277 = arith.subf %276, %275 : vector<8x1xf32>
    %278 = vector.broadcast %277 : vector<8x1xf32> to vector<8x32xf32>
    %279 = arith.mulf %164, %278 : vector<8x32xf32>
    %280 = vector.broadcast %275 : vector<8x1xf32> to vector<8x32xf32>
    %281 = arith.mulf %229, %280 : vector<8x32xf32>
    %282 = arith.addf %279, %281 : vector<8x32xf32>
    %c2_i32_56 = arith.constant 2 : i32
    %283 = vector.broadcast %c2_i32_56 : i32 to vector<8x1xi32>
    %284 = arith.muli %271, %283 : vector<8x1xi32>
    %285 = vector.broadcast %269 : vector<8x1xf32> to vector<8x16xf32>
    %286 = arith.mulf %190, %285 : vector<8x16xf32>
    %287 = arith.addf %169, %286 : vector<8x16xf32>
    %c2_i32_57 = arith.constant 2 : i32
    %288 = vector.broadcast %c2_i32_57 : i32 to vector<8x1xi32>
    %289 = arith.cmpi eq, %5, %288 : vector<8x1xi32>
    %290 = arith.extui %289 : vector<8x1xi1> to vector<8x1xi32>
    %291 = arith.sitofp %290 : vector<8x1xi32> to vector<8x1xf32>
    %292 = vector.broadcast %291 : vector<8x1xf32> to vector<8x32xf32>
    %293 = arith.mulf %229, %292 : vector<8x32xf32>
    %294 = arith.addf %176, %293 : vector<8x32xf32>
    %cst_58 = arith.constant dense<0xFF800000> : vector<8xf32>
    %295 = vector.multi_reduction <maximumf>, %234, %cst_58 [1] : vector<8x16xf32> to vector<8xf32>
    %296 = vector.shape_cast %295 : vector<8xf32> to vector<8x1xf32>
    %297 = vector.broadcast %296 : vector<8x1xf32> to vector<8x16xf32>
    %298 = arith.cmpf oeq, %234, %297 : vector<8x16xf32>
    %c16_i32_59 = arith.constant 16 : i32
    %299 = vector.broadcast %c16_i32_59 : i32 to vector<8x16xi32>
    %300 = arith.select %298, %8, %299 : vector<8x16xi1>, vector<8x16xi32>
    %cst_60 = arith.constant dense<2147483647> : vector<8xi32>
    %301 = vector.multi_reduction <minsi>, %300, %cst_60 [1] : vector<8x16xi32> to vector<8xi32>
    %302 = vector.shape_cast %301 : vector<8xi32> to vector<8x1xi32>
    %303 = vector.extract_strided_slice %3 {offsets = [0, 2], sizes = [8, 1], strides = [1, 1]} : vector<8x8xi32> to vector<8x1xi32>
    %304 = arith.select %11, %303, %302 : vector<8x1xi1>, vector<8x1xi32>
    %305 = vector.broadcast %304 : vector<8x1xi32> to vector<8x16xi32>
    %306 = arith.cmpi eq, %8, %305 : vector<8x16xi32>
    %307 = arith.extui %306 : vector<8x16xi1> to vector<8x16xi32>
    %308 = arith.sitofp %307 : vector<8x16xi32> to vector<8x16xf32>
    %309 = vector.broadcast %296 : vector<8x1xf32> to vector<8x16xf32>
    %310 = arith.subf %234, %309 : vector<8x16xf32>
    %311 = math.exp %310 : vector<8x16xf32>
    %cst_61 = arith.constant dense<0.000000e+00> : vector<8xf32>
    %312 = vector.multi_reduction <add>, %311, %cst_61 [1] : vector<8x16xf32> to vector<8xf32>
    %313 = vector.shape_cast %312 : vector<8xf32> to vector<8x1xf32>
    %314 = math.log %313 : vector<8x1xf32>
    %315 = arith.addf %296, %314 : vector<8x1xf32>
    %316 = arith.mulf %234, %308 : vector<8x16xf32>
    %cst_62 = arith.constant dense<0.000000e+00> : vector<8xf32>
    %317 = vector.multi_reduction <add>, %316, %cst_62 [1] : vector<8x16xf32> to vector<8xf32>
    %318 = vector.shape_cast %317 : vector<8xf32> to vector<8x1xf32>
    %c2_i32_63 = arith.constant 2 : i32
    %319 = vector.broadcast %c2_i32_63 : i32 to vector<8x1xi32>
    %320 = arith.cmpi sgt, %7, %319 : vector<8x1xi32>
    %321 = arith.extui %320 : vector<8x1xi1> to vector<8x1xi32>
    %322 = arith.sitofp %321 : vector<8x1xi32> to vector<8x1xf32>
    %323 = arith.subf %315, %318 : vector<8x1xf32>
    %324 = arith.mulf %323, %322 : vector<8x1xf32>
    %325 = arith.addf %207, %324 : vector<8x1xf32>
    %326 = arith.truncf %308 : vector<8x16xf32> to vector<8x16xbf16>
    %cst_64 = arith.constant dense<0.000000e+00> : vector<8x96xf32>
    %327 = tpu.matmul %326, %33, %cst_64 {dimension_numbers = #tpu.dot_dimension_numbers<[1], [0], [0], [1], [0, 0, 1, 1], [], []>} : vector<8x16xbf16>, vector<16x96xbf16>, vector<8x96xf32> -> vector<8x96xf32>
    %328 = arith.addf %327, %39 : vector<8x96xf32>
    %329 = arith.addf %328, %233 : vector<8x96xf32>
    %330 = vector.extract_strided_slice %329 {offsets = [0, 0], sizes = [8, 64], strides = [1, 1]} : vector<8x96xf32> to vector<8x64xf32>
    %331 = arith.negf %330 : vector<8x64xf32>
    %332 = math.exp %331 : vector<8x64xf32>
    %cst_65 = arith.constant 1.000000e+00 : f32
    %333 = vector.broadcast %cst_65 : f32 to vector<8x64xf32>
    %334 = arith.addf %333, %332 : vector<8x64xf32>
    %335 = arith.divf %333, %334 : vector<8x64xf32>
    %336 = vector.extract_strided_slice %335 {offsets = [0, 0], sizes = [8, 32], strides = [1, 1]} : vector<8x64xf32> to vector<8x32xf32>
    %337 = vector.extract_strided_slice %335 {offsets = [0, 32], sizes = [8, 32], strides = [1, 1]} : vector<8x64xf32> to vector<8x32xf32>
    %338 = vector.extract_strided_slice %328 {offsets = [0, 64], sizes = [8, 32], strides = [1, 1]} : vector<8x96xf32> to vector<8x32xf32>
    %339 = vector.extract_strided_slice %233 {offsets = [0, 64], sizes = [8, 32], strides = [1, 1]} : vector<8x96xf32> to vector<8x32xf32>
    %340 = arith.mulf %336, %339 : vector<8x32xf32>
    %341 = arith.addf %338, %340 : vector<8x32xf32>
    %342 = math.tanh %341 : vector<8x32xf32>
    %cst_66 = arith.constant 1.000000e+00 : f32
    %343 = vector.broadcast %cst_66 : f32 to vector<8x32xf32>
    %344 = arith.subf %343, %337 : vector<8x32xf32>
    %345 = arith.mulf %344, %342 : vector<8x32xf32>
    %346 = arith.mulf %337, %229 : vector<8x32xf32>
    %347 = arith.addf %345, %346 : vector<8x32xf32>
    %348 = arith.truncf %347 : vector<8x32xf32> to vector<8x32xbf16>
    %cst_67 = arith.constant dense<0.000000e+00> : vector<8x114xf32>
    %349 = tpu.matmul %348, %32, %cst_67 {dimension_numbers = #tpu.dot_dimension_numbers<[1], [0], [0], [1], [0, 0, 1, 1], [], []>} : vector<8x32xbf16>, vector<32x114xbf16>, vector<8x114xf32> -> vector<8x114xf32>
    %350 = arith.addf %349, %36 : vector<8x114xf32>
    %351 = vector.extract_strided_slice %350 {offsets = [0, 0], sizes = [8, 96], strides = [1, 1]} : vector<8x114xf32> to vector<8x96xf32>
    %352 = vector.extract_strided_slice %350 {offsets = [0, 96], sizes = [8, 16], strides = [1, 1]} : vector<8x114xf32> to vector<8x16xf32>
    %353 = vector.extract_strided_slice %350 {offsets = [0, 112], sizes = [8, 2], strides = [1, 1]} : vector<8x114xf32> to vector<8x2xf32>
    %354 = arith.addf %31, %353 : vector<8x2xf32>
    %355 = vector.extract_strided_slice %354 {offsets = [0, 0], sizes = [8, 1], strides = [1, 1]} : vector<8x2xf32> to vector<8x1xf32>
    %356 = vector.extract_strided_slice %354 {offsets = [0, 1], sizes = [8, 1], strides = [1, 1]} : vector<8x2xf32> to vector<8x1xf32>
    %357 = arith.maximumf %355, %356 : vector<8x1xf32>
    %358 = arith.subf %355, %357 : vector<8x1xf32>
    %359 = math.exp %358 : vector<8x1xf32>
    %360 = arith.subf %356, %357 : vector<8x1xf32>
    %361 = math.exp %360 : vector<8x1xf32>
    %362 = arith.addf %359, %361 : vector<8x1xf32>
    %363 = math.log %362 : vector<8x1xf32>
    %364 = arith.addf %357, %363 : vector<8x1xf32>
    %c3_i32 = arith.constant 3 : i32
    %365 = vector.broadcast %c3_i32 : i32 to vector<8x1xi32>
    %366 = arith.cmpi eq, %5, %365 : vector<8x1xi32>
    %367 = arith.extui %366 : vector<8x1xi1> to vector<8x1xi32>
    %368 = arith.sitofp %367 : vector<8x1xi32> to vector<8x1xf32>
    %369 = arith.mulf %368, %356 : vector<8x1xf32>
    %cst_68 = arith.constant 1.000000e+00 : f32
    %370 = vector.broadcast %cst_68 : f32 to vector<8x1xf32>
    %371 = arith.subf %370, %368 : vector<8x1xf32>
    %372 = arith.mulf %371, %355 : vector<8x1xf32>
    %373 = arith.addf %369, %372 : vector<8x1xf32>
    %c2_i32_69 = arith.constant 2 : i32
    %374 = vector.broadcast %c2_i32_69 : i32 to vector<8x1xi32>
    %375 = arith.cmpi sgt, %7, %374 : vector<8x1xi32>
    %376 = arith.extui %375 : vector<8x1xi1> to vector<8x1xi32>
    %377 = arith.sitofp %376 : vector<8x1xi32> to vector<8x1xf32>
    %378 = arith.subf %364, %373 : vector<8x1xf32>
    %379 = arith.mulf %378, %377 : vector<8x1xf32>
    %380 = arith.addf %262, %379 : vector<8x1xf32>
    %381 = arith.cmpf ogt, %356, %355 : vector<8x1xf32>
    %c2_i32_70 = arith.constant 2 : i32
    %c8_i32_71 = arith.constant 8 : i32
    %382 = vector.broadcast %c2_i32_70 : i32 to vector<8x1xi32>
    %383 = vector.broadcast %c8_i32_71 : i32 to vector<8x1xi32>
    %384 = arith.select %381, %382, %383 : vector<8x1xi1>, vector<8x1xi32>
    %385 = arith.minsi %267, %384 : vector<8x1xi32>
    %386 = arith.extui %381 : vector<8x1xi1> to vector<8x1xi32>
    %387 = arith.sitofp %386 : vector<8x1xi32> to vector<8x1xf32>
    %388 = arith.extui %381 : vector<8x1xi1> to vector<8x1xi32>
    %389 = arith.addi %284, %388 : vector<8x1xi32>
    %c1_i32_72 = arith.constant 1 : i32
    %390 = vector.broadcast %c1_i32_72 : i32 to vector<8x1xi32>
    %391 = arith.cmpi eq, %389, %390 : vector<8x1xi32>
    %392 = arith.extui %391 : vector<8x1xi1> to vector<8x1xi32>
    %393 = arith.sitofp %392 : vector<8x1xi32> to vector<8x1xf32>
    %cst_73 = arith.constant 1.000000e+00 : f32
    %394 = vector.broadcast %cst_73 : f32 to vector<8x1xf32>
    %395 = arith.subf %394, %393 : vector<8x1xf32>
    %396 = vector.broadcast %395 : vector<8x1xf32> to vector<8x32xf32>
    %397 = arith.mulf %282, %396 : vector<8x32xf32>
    %398 = vector.broadcast %393 : vector<8x1xf32> to vector<8x32xf32>
    %399 = arith.mulf %347, %398 : vector<8x32xf32>
    %400 = arith.addf %397, %399 : vector<8x32xf32>
    %c2_i32_74 = arith.constant 2 : i32
    %401 = vector.broadcast %c2_i32_74 : i32 to vector<8x1xi32>
    %402 = arith.muli %389, %401 : vector<8x1xi32>
    %403 = vector.broadcast %387 : vector<8x1xf32> to vector<8x16xf32>
    %404 = arith.mulf %308, %403 : vector<8x16xf32>
    %405 = arith.addf %287, %404 : vector<8x16xf32>
    %c3_i32_75 = arith.constant 3 : i32
    %406 = vector.broadcast %c3_i32_75 : i32 to vector<8x1xi32>
    %407 = arith.cmpi eq, %5, %406 : vector<8x1xi32>
    %408 = arith.extui %407 : vector<8x1xi1> to vector<8x1xi32>
    %409 = arith.sitofp %408 : vector<8x1xi32> to vector<8x1xf32>
    %410 = vector.broadcast %409 : vector<8x1xf32> to vector<8x32xf32>
    %411 = arith.mulf %347, %410 : vector<8x32xf32>
    %412 = arith.addf %294, %411 : vector<8x32xf32>
    %cst_76 = arith.constant dense<0xFF800000> : vector<8xf32>
    %413 = vector.multi_reduction <maximumf>, %352, %cst_76 [1] : vector<8x16xf32> to vector<8xf32>
    %414 = vector.shape_cast %413 : vector<8xf32> to vector<8x1xf32>
    %415 = vector.broadcast %414 : vector<8x1xf32> to vector<8x16xf32>
    %416 = arith.cmpf oeq, %352, %415 : vector<8x16xf32>
    %c16_i32_77 = arith.constant 16 : i32
    %417 = vector.broadcast %c16_i32_77 : i32 to vector<8x16xi32>
    %418 = arith.select %416, %8, %417 : vector<8x16xi1>, vector<8x16xi32>
    %cst_78 = arith.constant dense<2147483647> : vector<8xi32>
    %419 = vector.multi_reduction <minsi>, %418, %cst_78 [1] : vector<8x16xi32> to vector<8xi32>
    %420 = vector.shape_cast %419 : vector<8xi32> to vector<8x1xi32>
    %421 = vector.extract_strided_slice %3 {offsets = [0, 3], sizes = [8, 1], strides = [1, 1]} : vector<8x8xi32> to vector<8x1xi32>
    %422 = arith.select %11, %421, %420 : vector<8x1xi1>, vector<8x1xi32>
    %423 = vector.broadcast %422 : vector<8x1xi32> to vector<8x16xi32>
    %424 = arith.cmpi eq, %8, %423 : vector<8x16xi32>
    %425 = arith.extui %424 : vector<8x16xi1> to vector<8x16xi32>
    %426 = arith.sitofp %425 : vector<8x16xi32> to vector<8x16xf32>
    %427 = vector.broadcast %414 : vector<8x1xf32> to vector<8x16xf32>
    %428 = arith.subf %352, %427 : vector<8x16xf32>
    %429 = math.exp %428 : vector<8x16xf32>
    %cst_79 = arith.constant dense<0.000000e+00> : vector<8xf32>
    %430 = vector.multi_reduction <add>, %429, %cst_79 [1] : vector<8x16xf32> to vector<8xf32>
    %431 = vector.shape_cast %430 : vector<8xf32> to vector<8x1xf32>
    %432 = math.log %431 : vector<8x1xf32>
    %433 = arith.addf %414, %432 : vector<8x1xf32>
    %434 = arith.mulf %352, %426 : vector<8x16xf32>
    %cst_80 = arith.constant dense<0.000000e+00> : vector<8xf32>
    %435 = vector.multi_reduction <add>, %434, %cst_80 [1] : vector<8x16xf32> to vector<8xf32>
    %436 = vector.shape_cast %435 : vector<8xf32> to vector<8x1xf32>
    %c3_i32_81 = arith.constant 3 : i32
    %437 = vector.broadcast %c3_i32_81 : i32 to vector<8x1xi32>
    %438 = arith.cmpi sgt, %7, %437 : vector<8x1xi32>
    %439 = arith.extui %438 : vector<8x1xi1> to vector<8x1xi32>
    %440 = arith.sitofp %439 : vector<8x1xi32> to vector<8x1xf32>
    %441 = arith.subf %433, %436 : vector<8x1xf32>
    %442 = arith.mulf %441, %440 : vector<8x1xf32>
    %443 = arith.addf %325, %442 : vector<8x1xf32>
    %444 = arith.truncf %426 : vector<8x16xf32> to vector<8x16xbf16>
    %cst_82 = arith.constant dense<0.000000e+00> : vector<8x96xf32>
    %445 = tpu.matmul %444, %33, %cst_82 {dimension_numbers = #tpu.dot_dimension_numbers<[1], [0], [0], [1], [0, 0, 1, 1], [], []>} : vector<8x16xbf16>, vector<16x96xbf16>, vector<8x96xf32> -> vector<8x96xf32>
    %446 = arith.addf %445, %39 : vector<8x96xf32>
    %447 = arith.addf %446, %351 : vector<8x96xf32>
    %448 = vector.extract_strided_slice %447 {offsets = [0, 0], sizes = [8, 64], strides = [1, 1]} : vector<8x96xf32> to vector<8x64xf32>
    %449 = arith.negf %448 : vector<8x64xf32>
    %450 = math.exp %449 : vector<8x64xf32>
    %cst_83 = arith.constant 1.000000e+00 : f32
    %451 = vector.broadcast %cst_83 : f32 to vector<8x64xf32>
    %452 = arith.addf %451, %450 : vector<8x64xf32>
    %453 = arith.divf %451, %452 : vector<8x64xf32>
    %454 = vector.extract_strided_slice %453 {offsets = [0, 0], sizes = [8, 32], strides = [1, 1]} : vector<8x64xf32> to vector<8x32xf32>
    %455 = vector.extract_strided_slice %453 {offsets = [0, 32], sizes = [8, 32], strides = [1, 1]} : vector<8x64xf32> to vector<8x32xf32>
    %456 = vector.extract_strided_slice %446 {offsets = [0, 64], sizes = [8, 32], strides = [1, 1]} : vector<8x96xf32> to vector<8x32xf32>
    %457 = vector.extract_strided_slice %351 {offsets = [0, 64], sizes = [8, 32], strides = [1, 1]} : vector<8x96xf32> to vector<8x32xf32>
    %458 = arith.mulf %454, %457 : vector<8x32xf32>
    %459 = arith.addf %456, %458 : vector<8x32xf32>
    %460 = math.tanh %459 : vector<8x32xf32>
    %cst_84 = arith.constant 1.000000e+00 : f32
    %461 = vector.broadcast %cst_84 : f32 to vector<8x32xf32>
    %462 = arith.subf %461, %455 : vector<8x32xf32>
    %463 = arith.mulf %462, %460 : vector<8x32xf32>
    %464 = arith.mulf %455, %347 : vector<8x32xf32>
    %465 = arith.addf %463, %464 : vector<8x32xf32>
    %466 = arith.truncf %465 : vector<8x32xf32> to vector<8x32xbf16>
    %cst_85 = arith.constant dense<0.000000e+00> : vector<8x114xf32>
    %467 = tpu.matmul %466, %32, %cst_85 {dimension_numbers = #tpu.dot_dimension_numbers<[1], [0], [0], [1], [0, 0, 1, 1], [], []>} : vector<8x32xbf16>, vector<32x114xbf16>, vector<8x114xf32> -> vector<8x114xf32>
    %468 = arith.addf %467, %36 : vector<8x114xf32>
    %469 = vector.extract_strided_slice %468 {offsets = [0, 0], sizes = [8, 96], strides = [1, 1]} : vector<8x114xf32> to vector<8x96xf32>
    %470 = vector.extract_strided_slice %468 {offsets = [0, 96], sizes = [8, 16], strides = [1, 1]} : vector<8x114xf32> to vector<8x16xf32>
    %471 = vector.extract_strided_slice %468 {offsets = [0, 112], sizes = [8, 2], strides = [1, 1]} : vector<8x114xf32> to vector<8x2xf32>
    %472 = arith.addf %31, %471 : vector<8x2xf32>
    %473 = vector.extract_strided_slice %472 {offsets = [0, 0], sizes = [8, 1], strides = [1, 1]} : vector<8x2xf32> to vector<8x1xf32>
    %474 = vector.extract_strided_slice %472 {offsets = [0, 1], sizes = [8, 1], strides = [1, 1]} : vector<8x2xf32> to vector<8x1xf32>
    %475 = arith.maximumf %473, %474 : vector<8x1xf32>
    %476 = arith.subf %473, %475 : vector<8x1xf32>
    %477 = math.exp %476 : vector<8x1xf32>
    %478 = arith.subf %474, %475 : vector<8x1xf32>
    %479 = math.exp %478 : vector<8x1xf32>
    %480 = arith.addf %477, %479 : vector<8x1xf32>
    %481 = math.log %480 : vector<8x1xf32>
    %482 = arith.addf %475, %481 : vector<8x1xf32>
    %c4_i32_86 = arith.constant 4 : i32
    %483 = vector.broadcast %c4_i32_86 : i32 to vector<8x1xi32>
    %484 = arith.cmpi eq, %5, %483 : vector<8x1xi32>
    %485 = arith.extui %484 : vector<8x1xi1> to vector<8x1xi32>
    %486 = arith.sitofp %485 : vector<8x1xi32> to vector<8x1xf32>
    %487 = arith.mulf %486, %474 : vector<8x1xf32>
    %cst_87 = arith.constant 1.000000e+00 : f32
    %488 = vector.broadcast %cst_87 : f32 to vector<8x1xf32>
    %489 = arith.subf %488, %486 : vector<8x1xf32>
    %490 = arith.mulf %489, %473 : vector<8x1xf32>
    %491 = arith.addf %487, %490 : vector<8x1xf32>
    %c3_i32_88 = arith.constant 3 : i32
    %492 = vector.broadcast %c3_i32_88 : i32 to vector<8x1xi32>
    %493 = arith.cmpi sgt, %7, %492 : vector<8x1xi32>
    %494 = arith.extui %493 : vector<8x1xi1> to vector<8x1xi32>
    %495 = arith.sitofp %494 : vector<8x1xi32> to vector<8x1xf32>
    %496 = arith.subf %482, %491 : vector<8x1xf32>
    %497 = arith.mulf %496, %495 : vector<8x1xf32>
    %498 = arith.addf %380, %497 : vector<8x1xf32>
    %499 = arith.cmpf ogt, %474, %473 : vector<8x1xf32>
    %c3_i32_89 = arith.constant 3 : i32
    %c8_i32_90 = arith.constant 8 : i32
    %500 = vector.broadcast %c3_i32_89 : i32 to vector<8x1xi32>
    %501 = vector.broadcast %c8_i32_90 : i32 to vector<8x1xi32>
    %502 = arith.select %499, %500, %501 : vector<8x1xi1>, vector<8x1xi32>
    %503 = arith.minsi %385, %502 : vector<8x1xi32>
    %504 = arith.extui %499 : vector<8x1xi1> to vector<8x1xi32>
    %505 = arith.sitofp %504 : vector<8x1xi32> to vector<8x1xf32>
    %506 = arith.extui %499 : vector<8x1xi1> to vector<8x1xi32>
    %507 = arith.addi %402, %506 : vector<8x1xi32>
    %c1_i32_91 = arith.constant 1 : i32
    %508 = vector.broadcast %c1_i32_91 : i32 to vector<8x1xi32>
    %509 = arith.cmpi eq, %507, %508 : vector<8x1xi32>
    %510 = arith.extui %509 : vector<8x1xi1> to vector<8x1xi32>
    %511 = arith.sitofp %510 : vector<8x1xi32> to vector<8x1xf32>
    %cst_92 = arith.constant 1.000000e+00 : f32
    %512 = vector.broadcast %cst_92 : f32 to vector<8x1xf32>
    %513 = arith.subf %512, %511 : vector<8x1xf32>
    %514 = vector.broadcast %513 : vector<8x1xf32> to vector<8x32xf32>
    %515 = arith.mulf %400, %514 : vector<8x32xf32>
    %516 = vector.broadcast %511 : vector<8x1xf32> to vector<8x32xf32>
    %517 = arith.mulf %465, %516 : vector<8x32xf32>
    %518 = arith.addf %515, %517 : vector<8x32xf32>
    %c2_i32_93 = arith.constant 2 : i32
    %519 = vector.broadcast %c2_i32_93 : i32 to vector<8x1xi32>
    %520 = arith.muli %507, %519 : vector<8x1xi32>
    %521 = vector.broadcast %505 : vector<8x1xf32> to vector<8x16xf32>
    %522 = arith.mulf %426, %521 : vector<8x16xf32>
    %523 = arith.addf %405, %522 : vector<8x16xf32>
    %c4_i32_94 = arith.constant 4 : i32
    %524 = vector.broadcast %c4_i32_94 : i32 to vector<8x1xi32>
    %525 = arith.cmpi eq, %5, %524 : vector<8x1xi32>
    %526 = arith.extui %525 : vector<8x1xi1> to vector<8x1xi32>
    %527 = arith.sitofp %526 : vector<8x1xi32> to vector<8x1xf32>
    %528 = vector.broadcast %527 : vector<8x1xf32> to vector<8x32xf32>
    %529 = arith.mulf %465, %528 : vector<8x32xf32>
    %530 = arith.addf %412, %529 : vector<8x32xf32>
    %cst_95 = arith.constant dense<0xFF800000> : vector<8xf32>
    %531 = vector.multi_reduction <maximumf>, %470, %cst_95 [1] : vector<8x16xf32> to vector<8xf32>
    %532 = vector.shape_cast %531 : vector<8xf32> to vector<8x1xf32>
    %533 = vector.broadcast %532 : vector<8x1xf32> to vector<8x16xf32>
    %534 = arith.cmpf oeq, %470, %533 : vector<8x16xf32>
    %c16_i32_96 = arith.constant 16 : i32
    %535 = vector.broadcast %c16_i32_96 : i32 to vector<8x16xi32>
    %536 = arith.select %534, %8, %535 : vector<8x16xi1>, vector<8x16xi32>
    %cst_97 = arith.constant dense<2147483647> : vector<8xi32>
    %537 = vector.multi_reduction <minsi>, %536, %cst_97 [1] : vector<8x16xi32> to vector<8xi32>
    %538 = vector.shape_cast %537 : vector<8xi32> to vector<8x1xi32>
    %539 = vector.extract_strided_slice %3 {offsets = [0, 4], sizes = [8, 1], strides = [1, 1]} : vector<8x8xi32> to vector<8x1xi32>
    %540 = arith.select %11, %539, %538 : vector<8x1xi1>, vector<8x1xi32>
    %541 = vector.broadcast %540 : vector<8x1xi32> to vector<8x16xi32>
    %542 = arith.cmpi eq, %8, %541 : vector<8x16xi32>
    %543 = arith.extui %542 : vector<8x16xi1> to vector<8x16xi32>
    %544 = arith.sitofp %543 : vector<8x16xi32> to vector<8x16xf32>
    %545 = vector.broadcast %532 : vector<8x1xf32> to vector<8x16xf32>
    %546 = arith.subf %470, %545 : vector<8x16xf32>
    %547 = math.exp %546 : vector<8x16xf32>
    %cst_98 = arith.constant dense<0.000000e+00> : vector<8xf32>
    %548 = vector.multi_reduction <add>, %547, %cst_98 [1] : vector<8x16xf32> to vector<8xf32>
    %549 = vector.shape_cast %548 : vector<8xf32> to vector<8x1xf32>
    %550 = math.log %549 : vector<8x1xf32>
    %551 = arith.addf %532, %550 : vector<8x1xf32>
    %552 = arith.mulf %470, %544 : vector<8x16xf32>
    %cst_99 = arith.constant dense<0.000000e+00> : vector<8xf32>
    %553 = vector.multi_reduction <add>, %552, %cst_99 [1] : vector<8x16xf32> to vector<8xf32>
    %554 = vector.shape_cast %553 : vector<8xf32> to vector<8x1xf32>
    %c4_i32_100 = arith.constant 4 : i32
    %555 = vector.broadcast %c4_i32_100 : i32 to vector<8x1xi32>
    %556 = arith.cmpi sgt, %7, %555 : vector<8x1xi32>
    %557 = arith.extui %556 : vector<8x1xi1> to vector<8x1xi32>
    %558 = arith.sitofp %557 : vector<8x1xi32> to vector<8x1xf32>
    %559 = arith.subf %551, %554 : vector<8x1xf32>
    %560 = arith.mulf %559, %558 : vector<8x1xf32>
    %561 = arith.addf %443, %560 : vector<8x1xf32>
    %562 = arith.truncf %544 : vector<8x16xf32> to vector<8x16xbf16>
    %cst_101 = arith.constant dense<0.000000e+00> : vector<8x96xf32>
    %563 = tpu.matmul %562, %33, %cst_101 {dimension_numbers = #tpu.dot_dimension_numbers<[1], [0], [0], [1], [0, 0, 1, 1], [], []>} : vector<8x16xbf16>, vector<16x96xbf16>, vector<8x96xf32> -> vector<8x96xf32>
    %564 = arith.addf %563, %39 : vector<8x96xf32>
    %565 = arith.addf %564, %469 : vector<8x96xf32>
    %566 = vector.extract_strided_slice %565 {offsets = [0, 0], sizes = [8, 64], strides = [1, 1]} : vector<8x96xf32> to vector<8x64xf32>
    %567 = arith.negf %566 : vector<8x64xf32>
    %568 = math.exp %567 : vector<8x64xf32>
    %cst_102 = arith.constant 1.000000e+00 : f32
    %569 = vector.broadcast %cst_102 : f32 to vector<8x64xf32>
    %570 = arith.addf %569, %568 : vector<8x64xf32>
    %571 = arith.divf %569, %570 : vector<8x64xf32>
    %572 = vector.extract_strided_slice %571 {offsets = [0, 0], sizes = [8, 32], strides = [1, 1]} : vector<8x64xf32> to vector<8x32xf32>
    %573 = vector.extract_strided_slice %571 {offsets = [0, 32], sizes = [8, 32], strides = [1, 1]} : vector<8x64xf32> to vector<8x32xf32>
    %574 = vector.extract_strided_slice %564 {offsets = [0, 64], sizes = [8, 32], strides = [1, 1]} : vector<8x96xf32> to vector<8x32xf32>
    %575 = vector.extract_strided_slice %469 {offsets = [0, 64], sizes = [8, 32], strides = [1, 1]} : vector<8x96xf32> to vector<8x32xf32>
    %576 = arith.mulf %572, %575 : vector<8x32xf32>
    %577 = arith.addf %574, %576 : vector<8x32xf32>
    %578 = math.tanh %577 : vector<8x32xf32>
    %cst_103 = arith.constant 1.000000e+00 : f32
    %579 = vector.broadcast %cst_103 : f32 to vector<8x32xf32>
    %580 = arith.subf %579, %573 : vector<8x32xf32>
    %581 = arith.mulf %580, %578 : vector<8x32xf32>
    %582 = arith.mulf %573, %465 : vector<8x32xf32>
    %583 = arith.addf %581, %582 : vector<8x32xf32>
    %584 = arith.truncf %583 : vector<8x32xf32> to vector<8x32xbf16>
    %cst_104 = arith.constant dense<0.000000e+00> : vector<8x114xf32>
    %585 = tpu.matmul %584, %32, %cst_104 {dimension_numbers = #tpu.dot_dimension_numbers<[1], [0], [0], [1], [0, 0, 1, 1], [], []>} : vector<8x32xbf16>, vector<32x114xbf16>, vector<8x114xf32> -> vector<8x114xf32>
    %586 = arith.addf %585, %36 : vector<8x114xf32>
    %587 = vector.extract_strided_slice %586 {offsets = [0, 0], sizes = [8, 96], strides = [1, 1]} : vector<8x114xf32> to vector<8x96xf32>
    %588 = vector.extract_strided_slice %586 {offsets = [0, 96], sizes = [8, 16], strides = [1, 1]} : vector<8x114xf32> to vector<8x16xf32>
    %589 = vector.extract_strided_slice %586 {offsets = [0, 112], sizes = [8, 2], strides = [1, 1]} : vector<8x114xf32> to vector<8x2xf32>
    %590 = arith.addf %31, %589 : vector<8x2xf32>
    %591 = vector.extract_strided_slice %590 {offsets = [0, 0], sizes = [8, 1], strides = [1, 1]} : vector<8x2xf32> to vector<8x1xf32>
    %592 = vector.extract_strided_slice %590 {offsets = [0, 1], sizes = [8, 1], strides = [1, 1]} : vector<8x2xf32> to vector<8x1xf32>
    %593 = arith.maximumf %591, %592 : vector<8x1xf32>
    %594 = arith.subf %591, %593 : vector<8x1xf32>
    %595 = math.exp %594 : vector<8x1xf32>
    %596 = arith.subf %592, %593 : vector<8x1xf32>
    %597 = math.exp %596 : vector<8x1xf32>
    %598 = arith.addf %595, %597 : vector<8x1xf32>
    %599 = math.log %598 : vector<8x1xf32>
    %600 = arith.addf %593, %599 : vector<8x1xf32>
    %c5_i32 = arith.constant 5 : i32
    %601 = vector.broadcast %c5_i32 : i32 to vector<8x1xi32>
    %602 = arith.cmpi eq, %5, %601 : vector<8x1xi32>
    %603 = arith.extui %602 : vector<8x1xi1> to vector<8x1xi32>
    %604 = arith.sitofp %603 : vector<8x1xi32> to vector<8x1xf32>
    %605 = arith.mulf %604, %592 : vector<8x1xf32>
    %cst_105 = arith.constant 1.000000e+00 : f32
    %606 = vector.broadcast %cst_105 : f32 to vector<8x1xf32>
    %607 = arith.subf %606, %604 : vector<8x1xf32>
    %608 = arith.mulf %607, %591 : vector<8x1xf32>
    %609 = arith.addf %605, %608 : vector<8x1xf32>
    %c4_i32_106 = arith.constant 4 : i32
    %610 = vector.broadcast %c4_i32_106 : i32 to vector<8x1xi32>
    %611 = arith.cmpi sgt, %7, %610 : vector<8x1xi32>
    %612 = arith.extui %611 : vector<8x1xi1> to vector<8x1xi32>
    %613 = arith.sitofp %612 : vector<8x1xi32> to vector<8x1xf32>
    %614 = arith.subf %600, %609 : vector<8x1xf32>
    %615 = arith.mulf %614, %613 : vector<8x1xf32>
    %616 = arith.addf %498, %615 : vector<8x1xf32>
    %617 = arith.cmpf ogt, %592, %591 : vector<8x1xf32>
    %c4_i32_107 = arith.constant 4 : i32
    %c8_i32_108 = arith.constant 8 : i32
    %618 = vector.broadcast %c4_i32_107 : i32 to vector<8x1xi32>
    %619 = vector.broadcast %c8_i32_108 : i32 to vector<8x1xi32>
    %620 = arith.select %617, %618, %619 : vector<8x1xi1>, vector<8x1xi32>
    %621 = arith.minsi %503, %620 : vector<8x1xi32>
    %622 = arith.extui %617 : vector<8x1xi1> to vector<8x1xi32>
    %623 = arith.sitofp %622 : vector<8x1xi32> to vector<8x1xf32>
    %624 = arith.extui %617 : vector<8x1xi1> to vector<8x1xi32>
    %625 = arith.addi %520, %624 : vector<8x1xi32>
    %c1_i32_109 = arith.constant 1 : i32
    %626 = vector.broadcast %c1_i32_109 : i32 to vector<8x1xi32>
    %627 = arith.cmpi eq, %625, %626 : vector<8x1xi32>
    %628 = arith.extui %627 : vector<8x1xi1> to vector<8x1xi32>
    %629 = arith.sitofp %628 : vector<8x1xi32> to vector<8x1xf32>
    %cst_110 = arith.constant 1.000000e+00 : f32
    %630 = vector.broadcast %cst_110 : f32 to vector<8x1xf32>
    %631 = arith.subf %630, %629 : vector<8x1xf32>
    %632 = vector.broadcast %631 : vector<8x1xf32> to vector<8x32xf32>
    %633 = arith.mulf %518, %632 : vector<8x32xf32>
    %634 = vector.broadcast %629 : vector<8x1xf32> to vector<8x32xf32>
    %635 = arith.mulf %583, %634 : vector<8x32xf32>
    %636 = arith.addf %633, %635 : vector<8x32xf32>
    %c2_i32_111 = arith.constant 2 : i32
    %637 = vector.broadcast %c2_i32_111 : i32 to vector<8x1xi32>
    %638 = arith.muli %625, %637 : vector<8x1xi32>
    %639 = vector.broadcast %623 : vector<8x1xf32> to vector<8x16xf32>
    %640 = arith.mulf %544, %639 : vector<8x16xf32>
    %641 = arith.addf %523, %640 : vector<8x16xf32>
    %c5_i32_112 = arith.constant 5 : i32
    %642 = vector.broadcast %c5_i32_112 : i32 to vector<8x1xi32>
    %643 = arith.cmpi eq, %5, %642 : vector<8x1xi32>
    %644 = arith.extui %643 : vector<8x1xi1> to vector<8x1xi32>
    %645 = arith.sitofp %644 : vector<8x1xi32> to vector<8x1xf32>
    %646 = vector.broadcast %645 : vector<8x1xf32> to vector<8x32xf32>
    %647 = arith.mulf %583, %646 : vector<8x32xf32>
    %648 = arith.addf %530, %647 : vector<8x32xf32>
    %cst_113 = arith.constant dense<0xFF800000> : vector<8xf32>
    %649 = vector.multi_reduction <maximumf>, %588, %cst_113 [1] : vector<8x16xf32> to vector<8xf32>
    %650 = vector.shape_cast %649 : vector<8xf32> to vector<8x1xf32>
    %651 = vector.broadcast %650 : vector<8x1xf32> to vector<8x16xf32>
    %652 = arith.cmpf oeq, %588, %651 : vector<8x16xf32>
    %c16_i32_114 = arith.constant 16 : i32
    %653 = vector.broadcast %c16_i32_114 : i32 to vector<8x16xi32>
    %654 = arith.select %652, %8, %653 : vector<8x16xi1>, vector<8x16xi32>
    %cst_115 = arith.constant dense<2147483647> : vector<8xi32>
    %655 = vector.multi_reduction <minsi>, %654, %cst_115 [1] : vector<8x16xi32> to vector<8xi32>
    %656 = vector.shape_cast %655 : vector<8xi32> to vector<8x1xi32>
    %657 = vector.extract_strided_slice %3 {offsets = [0, 5], sizes = [8, 1], strides = [1, 1]} : vector<8x8xi32> to vector<8x1xi32>
    %658 = arith.select %11, %657, %656 : vector<8x1xi1>, vector<8x1xi32>
    %659 = vector.broadcast %658 : vector<8x1xi32> to vector<8x16xi32>
    %660 = arith.cmpi eq, %8, %659 : vector<8x16xi32>
    %661 = arith.extui %660 : vector<8x16xi1> to vector<8x16xi32>
    %662 = arith.sitofp %661 : vector<8x16xi32> to vector<8x16xf32>
    %663 = vector.broadcast %650 : vector<8x1xf32> to vector<8x16xf32>
    %664 = arith.subf %588, %663 : vector<8x16xf32>
    %665 = math.exp %664 : vector<8x16xf32>
    %cst_116 = arith.constant dense<0.000000e+00> : vector<8xf32>
    %666 = vector.multi_reduction <add>, %665, %cst_116 [1] : vector<8x16xf32> to vector<8xf32>
    %667 = vector.shape_cast %666 : vector<8xf32> to vector<8x1xf32>
    %668 = math.log %667 : vector<8x1xf32>
    %669 = arith.addf %650, %668 : vector<8x1xf32>
    %670 = arith.mulf %588, %662 : vector<8x16xf32>
    %cst_117 = arith.constant dense<0.000000e+00> : vector<8xf32>
    %671 = vector.multi_reduction <add>, %670, %cst_117 [1] : vector<8x16xf32> to vector<8xf32>
    %672 = vector.shape_cast %671 : vector<8xf32> to vector<8x1xf32>
    %c5_i32_118 = arith.constant 5 : i32
    %673 = vector.broadcast %c5_i32_118 : i32 to vector<8x1xi32>
    %674 = arith.cmpi sgt, %7, %673 : vector<8x1xi32>
    %675 = arith.extui %674 : vector<8x1xi1> to vector<8x1xi32>
    %676 = arith.sitofp %675 : vector<8x1xi32> to vector<8x1xf32>
    %677 = arith.subf %669, %672 : vector<8x1xf32>
    %678 = arith.mulf %677, %676 : vector<8x1xf32>
    %679 = arith.addf %561, %678 : vector<8x1xf32>
    %680 = arith.truncf %662 : vector<8x16xf32> to vector<8x16xbf16>
    %cst_119 = arith.constant dense<0.000000e+00> : vector<8x96xf32>
    %681 = tpu.matmul %680, %33, %cst_119 {dimension_numbers = #tpu.dot_dimension_numbers<[1], [0], [0], [1], [0, 0, 1, 1], [], []>} : vector<8x16xbf16>, vector<16x96xbf16>, vector<8x96xf32> -> vector<8x96xf32>
    %682 = arith.addf %681, %39 : vector<8x96xf32>
    %683 = arith.addf %682, %587 : vector<8x96xf32>
    %684 = vector.extract_strided_slice %683 {offsets = [0, 0], sizes = [8, 64], strides = [1, 1]} : vector<8x96xf32> to vector<8x64xf32>
    %685 = arith.negf %684 : vector<8x64xf32>
    %686 = math.exp %685 : vector<8x64xf32>
    %cst_120 = arith.constant 1.000000e+00 : f32
    %687 = vector.broadcast %cst_120 : f32 to vector<8x64xf32>
    %688 = arith.addf %687, %686 : vector<8x64xf32>
    %689 = arith.divf %687, %688 : vector<8x64xf32>
    %690 = vector.extract_strided_slice %689 {offsets = [0, 0], sizes = [8, 32], strides = [1, 1]} : vector<8x64xf32> to vector<8x32xf32>
    %691 = vector.extract_strided_slice %689 {offsets = [0, 32], sizes = [8, 32], strides = [1, 1]} : vector<8x64xf32> to vector<8x32xf32>
    %692 = vector.extract_strided_slice %682 {offsets = [0, 64], sizes = [8, 32], strides = [1, 1]} : vector<8x96xf32> to vector<8x32xf32>
    %693 = vector.extract_strided_slice %587 {offsets = [0, 64], sizes = [8, 32], strides = [1, 1]} : vector<8x96xf32> to vector<8x32xf32>
    %694 = arith.mulf %690, %693 : vector<8x32xf32>
    %695 = arith.addf %692, %694 : vector<8x32xf32>
    %696 = math.tanh %695 : vector<8x32xf32>
    %cst_121 = arith.constant 1.000000e+00 : f32
    %697 = vector.broadcast %cst_121 : f32 to vector<8x32xf32>
    %698 = arith.subf %697, %691 : vector<8x32xf32>
    %699 = arith.mulf %698, %696 : vector<8x32xf32>
    %700 = arith.mulf %691, %583 : vector<8x32xf32>
    %701 = arith.addf %699, %700 : vector<8x32xf32>
    %702 = arith.truncf %701 : vector<8x32xf32> to vector<8x32xbf16>
    %cst_122 = arith.constant dense<0.000000e+00> : vector<8x114xf32>
    %703 = tpu.matmul %702, %32, %cst_122 {dimension_numbers = #tpu.dot_dimension_numbers<[1], [0], [0], [1], [0, 0, 1, 1], [], []>} : vector<8x32xbf16>, vector<32x114xbf16>, vector<8x114xf32> -> vector<8x114xf32>
    %704 = arith.addf %703, %36 : vector<8x114xf32>
    %705 = vector.extract_strided_slice %704 {offsets = [0, 0], sizes = [8, 96], strides = [1, 1]} : vector<8x114xf32> to vector<8x96xf32>
    %706 = vector.extract_strided_slice %704 {offsets = [0, 96], sizes = [8, 16], strides = [1, 1]} : vector<8x114xf32> to vector<8x16xf32>
    %707 = vector.extract_strided_slice %704 {offsets = [0, 112], sizes = [8, 2], strides = [1, 1]} : vector<8x114xf32> to vector<8x2xf32>
    %708 = arith.addf %31, %707 : vector<8x2xf32>
    %709 = vector.extract_strided_slice %708 {offsets = [0, 0], sizes = [8, 1], strides = [1, 1]} : vector<8x2xf32> to vector<8x1xf32>
    %710 = vector.extract_strided_slice %708 {offsets = [0, 1], sizes = [8, 1], strides = [1, 1]} : vector<8x2xf32> to vector<8x1xf32>
    %711 = arith.maximumf %709, %710 : vector<8x1xf32>
    %712 = arith.subf %709, %711 : vector<8x1xf32>
    %713 = math.exp %712 : vector<8x1xf32>
    %714 = arith.subf %710, %711 : vector<8x1xf32>
    %715 = math.exp %714 : vector<8x1xf32>
    %716 = arith.addf %713, %715 : vector<8x1xf32>
    %717 = math.log %716 : vector<8x1xf32>
    %718 = arith.addf %711, %717 : vector<8x1xf32>
    %c6_i32 = arith.constant 6 : i32
    %719 = vector.broadcast %c6_i32 : i32 to vector<8x1xi32>
    %720 = arith.cmpi eq, %5, %719 : vector<8x1xi32>
    %721 = arith.extui %720 : vector<8x1xi1> to vector<8x1xi32>
    %722 = arith.sitofp %721 : vector<8x1xi32> to vector<8x1xf32>
    %723 = arith.mulf %722, %710 : vector<8x1xf32>
    %cst_123 = arith.constant 1.000000e+00 : f32
    %724 = vector.broadcast %cst_123 : f32 to vector<8x1xf32>
    %725 = arith.subf %724, %722 : vector<8x1xf32>
    %726 = arith.mulf %725, %709 : vector<8x1xf32>
    %727 = arith.addf %723, %726 : vector<8x1xf32>
    %c5_i32_124 = arith.constant 5 : i32
    %728 = vector.broadcast %c5_i32_124 : i32 to vector<8x1xi32>
    %729 = arith.cmpi sgt, %7, %728 : vector<8x1xi32>
    %730 = arith.extui %729 : vector<8x1xi1> to vector<8x1xi32>
    %731 = arith.sitofp %730 : vector<8x1xi32> to vector<8x1xf32>
    %732 = arith.subf %718, %727 : vector<8x1xf32>
    %733 = arith.mulf %732, %731 : vector<8x1xf32>
    %734 = arith.addf %616, %733 : vector<8x1xf32>
    %735 = arith.cmpf ogt, %710, %709 : vector<8x1xf32>
    %c5_i32_125 = arith.constant 5 : i32
    %c8_i32_126 = arith.constant 8 : i32
    %736 = vector.broadcast %c5_i32_125 : i32 to vector<8x1xi32>
    %737 = vector.broadcast %c8_i32_126 : i32 to vector<8x1xi32>
    %738 = arith.select %735, %736, %737 : vector<8x1xi1>, vector<8x1xi32>
    %739 = arith.minsi %621, %738 : vector<8x1xi32>
    %740 = arith.extui %735 : vector<8x1xi1> to vector<8x1xi32>
    %741 = arith.sitofp %740 : vector<8x1xi32> to vector<8x1xf32>
    %742 = arith.extui %735 : vector<8x1xi1> to vector<8x1xi32>
    %743 = arith.addi %638, %742 : vector<8x1xi32>
    %c1_i32_127 = arith.constant 1 : i32
    %744 = vector.broadcast %c1_i32_127 : i32 to vector<8x1xi32>
    %745 = arith.cmpi eq, %743, %744 : vector<8x1xi32>
    %746 = arith.extui %745 : vector<8x1xi1> to vector<8x1xi32>
    %747 = arith.sitofp %746 : vector<8x1xi32> to vector<8x1xf32>
    %cst_128 = arith.constant 1.000000e+00 : f32
    %748 = vector.broadcast %cst_128 : f32 to vector<8x1xf32>
    %749 = arith.subf %748, %747 : vector<8x1xf32>
    %750 = vector.broadcast %749 : vector<8x1xf32> to vector<8x32xf32>
    %751 = arith.mulf %636, %750 : vector<8x32xf32>
    %752 = vector.broadcast %747 : vector<8x1xf32> to vector<8x32xf32>
    %753 = arith.mulf %701, %752 : vector<8x32xf32>
    %754 = arith.addf %751, %753 : vector<8x32xf32>
    %c2_i32_129 = arith.constant 2 : i32
    %755 = vector.broadcast %c2_i32_129 : i32 to vector<8x1xi32>
    %756 = arith.muli %743, %755 : vector<8x1xi32>
    %757 = vector.broadcast %741 : vector<8x1xf32> to vector<8x16xf32>
    %758 = arith.mulf %662, %757 : vector<8x16xf32>
    %759 = arith.addf %641, %758 : vector<8x16xf32>
    %c6_i32_130 = arith.constant 6 : i32
    %760 = vector.broadcast %c6_i32_130 : i32 to vector<8x1xi32>
    %761 = arith.cmpi eq, %5, %760 : vector<8x1xi32>
    %762 = arith.extui %761 : vector<8x1xi1> to vector<8x1xi32>
    %763 = arith.sitofp %762 : vector<8x1xi32> to vector<8x1xf32>
    %764 = vector.broadcast %763 : vector<8x1xf32> to vector<8x32xf32>
    %765 = arith.mulf %701, %764 : vector<8x32xf32>
    %766 = arith.addf %648, %765 : vector<8x32xf32>
    %cst_131 = arith.constant dense<0xFF800000> : vector<8xf32>
    %767 = vector.multi_reduction <maximumf>, %706, %cst_131 [1] : vector<8x16xf32> to vector<8xf32>
    %768 = vector.shape_cast %767 : vector<8xf32> to vector<8x1xf32>
    %769 = vector.broadcast %768 : vector<8x1xf32> to vector<8x16xf32>
    %770 = arith.cmpf oeq, %706, %769 : vector<8x16xf32>
    %c16_i32_132 = arith.constant 16 : i32
    %771 = vector.broadcast %c16_i32_132 : i32 to vector<8x16xi32>
    %772 = arith.select %770, %8, %771 : vector<8x16xi1>, vector<8x16xi32>
    %cst_133 = arith.constant dense<2147483647> : vector<8xi32>
    %773 = vector.multi_reduction <minsi>, %772, %cst_133 [1] : vector<8x16xi32> to vector<8xi32>
    %774 = vector.shape_cast %773 : vector<8xi32> to vector<8x1xi32>
    %775 = vector.extract_strided_slice %3 {offsets = [0, 6], sizes = [8, 1], strides = [1, 1]} : vector<8x8xi32> to vector<8x1xi32>
    %776 = arith.select %11, %775, %774 : vector<8x1xi1>, vector<8x1xi32>
    %777 = vector.broadcast %776 : vector<8x1xi32> to vector<8x16xi32>
    %778 = arith.cmpi eq, %8, %777 : vector<8x16xi32>
    %779 = arith.extui %778 : vector<8x16xi1> to vector<8x16xi32>
    %780 = arith.sitofp %779 : vector<8x16xi32> to vector<8x16xf32>
    %781 = vector.broadcast %768 : vector<8x1xf32> to vector<8x16xf32>
    %782 = arith.subf %706, %781 : vector<8x16xf32>
    %783 = math.exp %782 : vector<8x16xf32>
    %cst_134 = arith.constant dense<0.000000e+00> : vector<8xf32>
    %784 = vector.multi_reduction <add>, %783, %cst_134 [1] : vector<8x16xf32> to vector<8xf32>
    %785 = vector.shape_cast %784 : vector<8xf32> to vector<8x1xf32>
    %786 = math.log %785 : vector<8x1xf32>
    %787 = arith.addf %768, %786 : vector<8x1xf32>
    %788 = arith.mulf %706, %780 : vector<8x16xf32>
    %cst_135 = arith.constant dense<0.000000e+00> : vector<8xf32>
    %789 = vector.multi_reduction <add>, %788, %cst_135 [1] : vector<8x16xf32> to vector<8xf32>
    %790 = vector.shape_cast %789 : vector<8xf32> to vector<8x1xf32>
    %c6_i32_136 = arith.constant 6 : i32
    %791 = vector.broadcast %c6_i32_136 : i32 to vector<8x1xi32>
    %792 = arith.cmpi sgt, %7, %791 : vector<8x1xi32>
    %793 = arith.extui %792 : vector<8x1xi1> to vector<8x1xi32>
    %794 = arith.sitofp %793 : vector<8x1xi32> to vector<8x1xf32>
    %795 = arith.subf %787, %790 : vector<8x1xf32>
    %796 = arith.mulf %795, %794 : vector<8x1xf32>
    %797 = arith.addf %679, %796 : vector<8x1xf32>
    %798 = arith.truncf %780 : vector<8x16xf32> to vector<8x16xbf16>
    %cst_137 = arith.constant dense<0.000000e+00> : vector<8x96xf32>
    %799 = tpu.matmul %798, %33, %cst_137 {dimension_numbers = #tpu.dot_dimension_numbers<[1], [0], [0], [1], [0, 0, 1, 1], [], []>} : vector<8x16xbf16>, vector<16x96xbf16>, vector<8x96xf32> -> vector<8x96xf32>
    %800 = arith.addf %799, %39 : vector<8x96xf32>
    %801 = arith.addf %800, %705 : vector<8x96xf32>
    %802 = vector.extract_strided_slice %801 {offsets = [0, 0], sizes = [8, 64], strides = [1, 1]} : vector<8x96xf32> to vector<8x64xf32>
    %803 = arith.negf %802 : vector<8x64xf32>
    %804 = math.exp %803 : vector<8x64xf32>
    %cst_138 = arith.constant 1.000000e+00 : f32
    %805 = vector.broadcast %cst_138 : f32 to vector<8x64xf32>
    %806 = arith.addf %805, %804 : vector<8x64xf32>
    %807 = arith.divf %805, %806 : vector<8x64xf32>
    %808 = vector.extract_strided_slice %807 {offsets = [0, 0], sizes = [8, 32], strides = [1, 1]} : vector<8x64xf32> to vector<8x32xf32>
    %809 = vector.extract_strided_slice %807 {offsets = [0, 32], sizes = [8, 32], strides = [1, 1]} : vector<8x64xf32> to vector<8x32xf32>
    %810 = vector.extract_strided_slice %800 {offsets = [0, 64], sizes = [8, 32], strides = [1, 1]} : vector<8x96xf32> to vector<8x32xf32>
    %811 = vector.extract_strided_slice %705 {offsets = [0, 64], sizes = [8, 32], strides = [1, 1]} : vector<8x96xf32> to vector<8x32xf32>
    %812 = arith.mulf %808, %811 : vector<8x32xf32>
    %813 = arith.addf %810, %812 : vector<8x32xf32>
    %814 = math.tanh %813 : vector<8x32xf32>
    %cst_139 = arith.constant 1.000000e+00 : f32
    %815 = vector.broadcast %cst_139 : f32 to vector<8x32xf32>
    %816 = arith.subf %815, %809 : vector<8x32xf32>
    %817 = arith.mulf %816, %814 : vector<8x32xf32>
    %818 = arith.mulf %809, %701 : vector<8x32xf32>
    %819 = arith.addf %817, %818 : vector<8x32xf32>
    %820 = arith.truncf %819 : vector<8x32xf32> to vector<8x32xbf16>
    %cst_140 = arith.constant dense<0.000000e+00> : vector<8x114xf32>
    %821 = tpu.matmul %820, %32, %cst_140 {dimension_numbers = #tpu.dot_dimension_numbers<[1], [0], [0], [1], [0, 0, 1, 1], [], []>} : vector<8x32xbf16>, vector<32x114xbf16>, vector<8x114xf32> -> vector<8x114xf32>
    %822 = arith.addf %821, %36 : vector<8x114xf32>
    %823 = vector.extract_strided_slice %822 {offsets = [0, 0], sizes = [8, 96], strides = [1, 1]} : vector<8x114xf32> to vector<8x96xf32>
    %824 = vector.extract_strided_slice %822 {offsets = [0, 96], sizes = [8, 16], strides = [1, 1]} : vector<8x114xf32> to vector<8x16xf32>
    %825 = vector.extract_strided_slice %822 {offsets = [0, 112], sizes = [8, 2], strides = [1, 1]} : vector<8x114xf32> to vector<8x2xf32>
    %826 = arith.addf %31, %825 : vector<8x2xf32>
    %827 = vector.extract_strided_slice %826 {offsets = [0, 0], sizes = [8, 1], strides = [1, 1]} : vector<8x2xf32> to vector<8x1xf32>
    %828 = vector.extract_strided_slice %826 {offsets = [0, 1], sizes = [8, 1], strides = [1, 1]} : vector<8x2xf32> to vector<8x1xf32>
    %829 = arith.maximumf %827, %828 : vector<8x1xf32>
    %830 = arith.subf %827, %829 : vector<8x1xf32>
    %831 = math.exp %830 : vector<8x1xf32>
    %832 = arith.subf %828, %829 : vector<8x1xf32>
    %833 = math.exp %832 : vector<8x1xf32>
    %834 = arith.addf %831, %833 : vector<8x1xf32>
    %835 = math.log %834 : vector<8x1xf32>
    %836 = arith.addf %829, %835 : vector<8x1xf32>
    %c7_i32 = arith.constant 7 : i32
    %837 = vector.broadcast %c7_i32 : i32 to vector<8x1xi32>
    %838 = arith.cmpi eq, %5, %837 : vector<8x1xi32>
    %839 = arith.extui %838 : vector<8x1xi1> to vector<8x1xi32>
    %840 = arith.sitofp %839 : vector<8x1xi32> to vector<8x1xf32>
    %841 = arith.mulf %840, %828 : vector<8x1xf32>
    %cst_141 = arith.constant 1.000000e+00 : f32
    %842 = vector.broadcast %cst_141 : f32 to vector<8x1xf32>
    %843 = arith.subf %842, %840 : vector<8x1xf32>
    %844 = arith.mulf %843, %827 : vector<8x1xf32>
    %845 = arith.addf %841, %844 : vector<8x1xf32>
    %c6_i32_142 = arith.constant 6 : i32
    %846 = vector.broadcast %c6_i32_142 : i32 to vector<8x1xi32>
    %847 = arith.cmpi sgt, %7, %846 : vector<8x1xi32>
    %848 = arith.extui %847 : vector<8x1xi1> to vector<8x1xi32>
    %849 = arith.sitofp %848 : vector<8x1xi32> to vector<8x1xf32>
    %850 = arith.subf %836, %845 : vector<8x1xf32>
    %851 = arith.mulf %850, %849 : vector<8x1xf32>
    %852 = arith.addf %734, %851 : vector<8x1xf32>
    %853 = arith.cmpf ogt, %828, %827 : vector<8x1xf32>
    %c6_i32_143 = arith.constant 6 : i32
    %c8_i32_144 = arith.constant 8 : i32
    %854 = vector.broadcast %c6_i32_143 : i32 to vector<8x1xi32>
    %855 = vector.broadcast %c8_i32_144 : i32 to vector<8x1xi32>
    %856 = arith.select %853, %854, %855 : vector<8x1xi1>, vector<8x1xi32>
    %857 = arith.minsi %739, %856 : vector<8x1xi32>
    %858 = arith.extui %853 : vector<8x1xi1> to vector<8x1xi32>
    %859 = arith.sitofp %858 : vector<8x1xi32> to vector<8x1xf32>
    %860 = arith.extui %853 : vector<8x1xi1> to vector<8x1xi32>
    %861 = arith.addi %756, %860 : vector<8x1xi32>
    %c1_i32_145 = arith.constant 1 : i32
    %862 = vector.broadcast %c1_i32_145 : i32 to vector<8x1xi32>
    %863 = arith.cmpi eq, %861, %862 : vector<8x1xi32>
    %864 = arith.extui %863 : vector<8x1xi1> to vector<8x1xi32>
    %865 = arith.sitofp %864 : vector<8x1xi32> to vector<8x1xf32>
    %cst_146 = arith.constant 1.000000e+00 : f32
    %866 = vector.broadcast %cst_146 : f32 to vector<8x1xf32>
    %867 = arith.subf %866, %865 : vector<8x1xf32>
    %868 = vector.broadcast %867 : vector<8x1xf32> to vector<8x32xf32>
    %869 = arith.mulf %754, %868 : vector<8x32xf32>
    %870 = vector.broadcast %865 : vector<8x1xf32> to vector<8x32xf32>
    %871 = arith.mulf %819, %870 : vector<8x32xf32>
    %872 = arith.addf %869, %871 : vector<8x32xf32>
    %c2_i32_147 = arith.constant 2 : i32
    %873 = vector.broadcast %c2_i32_147 : i32 to vector<8x1xi32>
    %874 = arith.muli %861, %873 : vector<8x1xi32>
    %875 = vector.broadcast %859 : vector<8x1xf32> to vector<8x16xf32>
    %876 = arith.mulf %780, %875 : vector<8x16xf32>
    %877 = arith.addf %759, %876 : vector<8x16xf32>
    %c7_i32_148 = arith.constant 7 : i32
    %878 = vector.broadcast %c7_i32_148 : i32 to vector<8x1xi32>
    %879 = arith.cmpi eq, %5, %878 : vector<8x1xi32>
    %880 = arith.extui %879 : vector<8x1xi1> to vector<8x1xi32>
    %881 = arith.sitofp %880 : vector<8x1xi32> to vector<8x1xf32>
    %882 = vector.broadcast %881 : vector<8x1xf32> to vector<8x32xf32>
    %883 = arith.mulf %819, %882 : vector<8x32xf32>
    %884 = arith.addf %766, %883 : vector<8x32xf32>
    %cst_149 = arith.constant dense<0xFF800000> : vector<8xf32>
    %885 = vector.multi_reduction <maximumf>, %824, %cst_149 [1] : vector<8x16xf32> to vector<8xf32>
    %886 = vector.shape_cast %885 : vector<8xf32> to vector<8x1xf32>
    %887 = vector.broadcast %886 : vector<8x1xf32> to vector<8x16xf32>
    %888 = arith.cmpf oeq, %824, %887 : vector<8x16xf32>
    %c16_i32_150 = arith.constant 16 : i32
    %889 = vector.broadcast %c16_i32_150 : i32 to vector<8x16xi32>
    %890 = arith.select %888, %8, %889 : vector<8x16xi1>, vector<8x16xi32>
    %cst_151 = arith.constant dense<2147483647> : vector<8xi32>
    %891 = vector.multi_reduction <minsi>, %890, %cst_151 [1] : vector<8x16xi32> to vector<8xi32>
    %892 = vector.shape_cast %891 : vector<8xi32> to vector<8x1xi32>
    %893 = vector.extract_strided_slice %3 {offsets = [0, 7], sizes = [8, 1], strides = [1, 1]} : vector<8x8xi32> to vector<8x1xi32>
    %894 = arith.select %11, %893, %892 : vector<8x1xi1>, vector<8x1xi32>
    %895 = vector.broadcast %894 : vector<8x1xi32> to vector<8x16xi32>
    %896 = arith.cmpi eq, %8, %895 : vector<8x16xi32>
    %897 = arith.extui %896 : vector<8x16xi1> to vector<8x16xi32>
    %898 = arith.sitofp %897 : vector<8x16xi32> to vector<8x16xf32>
    %899 = vector.broadcast %886 : vector<8x1xf32> to vector<8x16xf32>
    %900 = arith.subf %824, %899 : vector<8x16xf32>
    %901 = math.exp %900 : vector<8x16xf32>
    %cst_152 = arith.constant dense<0.000000e+00> : vector<8xf32>
    %902 = vector.multi_reduction <add>, %901, %cst_152 [1] : vector<8x16xf32> to vector<8xf32>
    %903 = vector.shape_cast %902 : vector<8xf32> to vector<8x1xf32>
    %904 = math.log %903 : vector<8x1xf32>
    %905 = arith.addf %886, %904 : vector<8x1xf32>
    %906 = arith.mulf %824, %898 : vector<8x16xf32>
    %cst_153 = arith.constant dense<0.000000e+00> : vector<8xf32>
    %907 = vector.multi_reduction <add>, %906, %cst_153 [1] : vector<8x16xf32> to vector<8xf32>
    %908 = vector.shape_cast %907 : vector<8xf32> to vector<8x1xf32>
    %c7_i32_154 = arith.constant 7 : i32
    %909 = vector.broadcast %c7_i32_154 : i32 to vector<8x1xi32>
    %910 = arith.cmpi sgt, %7, %909 : vector<8x1xi32>
    %911 = arith.extui %910 : vector<8x1xi1> to vector<8x1xi32>
    %912 = arith.sitofp %911 : vector<8x1xi32> to vector<8x1xf32>
    %913 = arith.subf %905, %908 : vector<8x1xf32>
    %914 = arith.mulf %913, %912 : vector<8x1xf32>
    %915 = arith.addf %797, %914 : vector<8x1xf32>
    %916 = arith.truncf %898 : vector<8x16xf32> to vector<8x16xbf16>
    %cst_155 = arith.constant dense<0.000000e+00> : vector<8x96xf32>
    %917 = tpu.matmul %916, %33, %cst_155 {dimension_numbers = #tpu.dot_dimension_numbers<[1], [0], [0], [1], [0, 0, 1, 1], [], []>} : vector<8x16xbf16>, vector<16x96xbf16>, vector<8x96xf32> -> vector<8x96xf32>
    %918 = arith.addf %917, %39 : vector<8x96xf32>
    %919 = arith.addf %918, %823 : vector<8x96xf32>
    %920 = vector.extract_strided_slice %919 {offsets = [0, 0], sizes = [8, 64], strides = [1, 1]} : vector<8x96xf32> to vector<8x64xf32>
    %921 = arith.negf %920 : vector<8x64xf32>
    %922 = math.exp %921 : vector<8x64xf32>
    %cst_156 = arith.constant 1.000000e+00 : f32
    %923 = vector.broadcast %cst_156 : f32 to vector<8x64xf32>
    %924 = arith.addf %923, %922 : vector<8x64xf32>
    %925 = arith.divf %923, %924 : vector<8x64xf32>
    %926 = vector.extract_strided_slice %925 {offsets = [0, 0], sizes = [8, 32], strides = [1, 1]} : vector<8x64xf32> to vector<8x32xf32>
    %927 = vector.extract_strided_slice %925 {offsets = [0, 32], sizes = [8, 32], strides = [1, 1]} : vector<8x64xf32> to vector<8x32xf32>
    %928 = vector.extract_strided_slice %918 {offsets = [0, 64], sizes = [8, 32], strides = [1, 1]} : vector<8x96xf32> to vector<8x32xf32>
    %929 = vector.extract_strided_slice %823 {offsets = [0, 64], sizes = [8, 32], strides = [1, 1]} : vector<8x96xf32> to vector<8x32xf32>
    %930 = arith.mulf %926, %929 : vector<8x32xf32>
    %931 = arith.addf %928, %930 : vector<8x32xf32>
    %932 = math.tanh %931 : vector<8x32xf32>
    %cst_157 = arith.constant 1.000000e+00 : f32
    %933 = vector.broadcast %cst_157 : f32 to vector<8x32xf32>
    %934 = arith.subf %933, %927 : vector<8x32xf32>
    %935 = arith.mulf %934, %932 : vector<8x32xf32>
    %936 = arith.mulf %927, %819 : vector<8x32xf32>
    %937 = arith.addf %935, %936 : vector<8x32xf32>
    %938 = vector.extract_strided_slice %32 {offsets = [0, 112], sizes = [32, 2], strides = [1, 1]} : vector<32x114xbf16> to vector<32x2xbf16>
    %939 = arith.truncf %937 : vector<8x32xf32> to vector<8x32xbf16>
    %cst_158 = arith.constant dense<0.000000e+00> : vector<8x2xf32>
    %940 = tpu.matmul %939, %938, %cst_158 {dimension_numbers = #tpu.dot_dimension_numbers<[1], [0], [0], [1], [0, 0, 1, 1], [], []>} : vector<8x32xbf16>, vector<32x2xbf16>, vector<8x2xf32> -> vector<8x2xf32>
    %941 = arith.addf %31, %940 : vector<8x2xf32>
    %942 = vector.extract_strided_slice %941 {offsets = [0, 0], sizes = [8, 1], strides = [1, 1]} : vector<8x2xf32> to vector<8x1xf32>
    %943 = vector.extract_strided_slice %941 {offsets = [0, 1], sizes = [8, 1], strides = [1, 1]} : vector<8x2xf32> to vector<8x1xf32>
    %944 = arith.maximumf %942, %943 : vector<8x1xf32>
    %945 = arith.subf %942, %944 : vector<8x1xf32>
    %946 = math.exp %945 : vector<8x1xf32>
    %947 = arith.subf %943, %944 : vector<8x1xf32>
    %948 = math.exp %947 : vector<8x1xf32>
    %949 = arith.addf %946, %948 : vector<8x1xf32>
    %950 = math.log %949 : vector<8x1xf32>
    %951 = arith.addf %944, %950 : vector<8x1xf32>
    %c8_i32_159 = arith.constant 8 : i32
    %952 = vector.broadcast %c8_i32_159 : i32 to vector<8x1xi32>
    %953 = arith.cmpi eq, %5, %952 : vector<8x1xi32>
    %954 = arith.extui %953 : vector<8x1xi1> to vector<8x1xi32>
    %955 = arith.sitofp %954 : vector<8x1xi32> to vector<8x1xf32>
    %956 = arith.mulf %955, %943 : vector<8x1xf32>
    %cst_160 = arith.constant 1.000000e+00 : f32
    %957 = vector.broadcast %cst_160 : f32 to vector<8x1xf32>
    %958 = arith.subf %957, %955 : vector<8x1xf32>
    %959 = arith.mulf %958, %942 : vector<8x1xf32>
    %960 = arith.addf %956, %959 : vector<8x1xf32>
    %c7_i32_161 = arith.constant 7 : i32
    %961 = vector.broadcast %c7_i32_161 : i32 to vector<8x1xi32>
    %962 = arith.cmpi sgt, %7, %961 : vector<8x1xi32>
    %963 = arith.extui %962 : vector<8x1xi1> to vector<8x1xi32>
    %964 = arith.sitofp %963 : vector<8x1xi32> to vector<8x1xf32>
    %965 = arith.subf %951, %960 : vector<8x1xf32>
    %966 = arith.mulf %965, %964 : vector<8x1xf32>
    %967 = arith.addf %852, %966 : vector<8x1xf32>
    %968 = arith.cmpf ogt, %943, %942 : vector<8x1xf32>
    %c7_i32_162 = arith.constant 7 : i32
    %c8_i32_163 = arith.constant 8 : i32
    %969 = vector.broadcast %c7_i32_162 : i32 to vector<8x1xi32>
    %970 = vector.broadcast %c8_i32_163 : i32 to vector<8x1xi32>
    %971 = arith.select %968, %969, %970 : vector<8x1xi1>, vector<8x1xi32>
    %972 = arith.minsi %857, %971 : vector<8x1xi32>
    %973 = arith.extui %968 : vector<8x1xi1> to vector<8x1xi32>
    %974 = arith.sitofp %973 : vector<8x1xi32> to vector<8x1xf32>
    %975 = arith.extui %968 : vector<8x1xi1> to vector<8x1xi32>
    %976 = arith.addi %874, %975 : vector<8x1xi32>
    %c1_i32_164 = arith.constant 1 : i32
    %977 = vector.broadcast %c1_i32_164 : i32 to vector<8x1xi32>
    %978 = arith.cmpi eq, %976, %977 : vector<8x1xi32>
    %979 = arith.extui %978 : vector<8x1xi1> to vector<8x1xi32>
    %980 = arith.sitofp %979 : vector<8x1xi32> to vector<8x1xf32>
    %cst_165 = arith.constant 1.000000e+00 : f32
    %981 = vector.broadcast %cst_165 : f32 to vector<8x1xf32>
    %982 = arith.subf %981, %980 : vector<8x1xf32>
    %983 = vector.broadcast %982 : vector<8x1xf32> to vector<8x32xf32>
    %984 = arith.mulf %872, %983 : vector<8x32xf32>
    %985 = vector.broadcast %980 : vector<8x1xf32> to vector<8x32xf32>
    %986 = arith.mulf %937, %985 : vector<8x32xf32>
    %987 = arith.addf %984, %986 : vector<8x32xf32>
    %988 = vector.broadcast %974 : vector<8x1xf32> to vector<8x16xf32>
    %989 = arith.mulf %898, %988 : vector<8x16xf32>
    %990 = arith.addf %877, %989 : vector<8x16xf32>
    %991 = vector.extract_strided_slice %0 {offsets = [0, 0], sizes = [4, 32], strides = [1, 1]} : vector<8x128xf32> to vector<4x32xf32>
    %992 = vector.extract_strided_slice %0 {offsets = [0, 32], sizes = [4, 32], strides = [1, 1]} : vector<8x128xf32> to vector<4x32xf32>
    %993 = vector.extract_strided_slice %0 {offsets = [0, 72], sizes = [4, 8], strides = [1, 1]} : vector<8x128xf32> to vector<4x8xf32>
    %994 = arith.fptosi %993 : vector<4x8xf32> to vector<4x8xi32>
    %995 = vector.extract_strided_slice %5 {offsets = [0, 0], sizes = [4, 1], strides = [1, 1]} : vector<8x1xi32> to vector<4x1xi32>
    %996 = vector.extract_strided_slice %7 {offsets = [0, 0], sizes = [4, 1], strides = [1, 1]} : vector<8x1xi32> to vector<4x1xi32>
    %997 = vector.extract_strided_slice %25 {offsets = [0, 0], sizes = [4, 32], strides = [1, 1]} : vector<8x32xf32> to vector<4x32xf32>
    %998 = vector.extract_strided_slice %884 {offsets = [0, 0], sizes = [4, 32], strides = [1, 1]} : vector<8x32xf32> to vector<4x32xf32>
    %999 = vector.extract_strided_slice %987 {offsets = [4, 0], sizes = [4, 32], strides = [1, 1]} : vector<8x32xf32> to vector<4x32xf32>
    %1000 = vector.extract_strided_slice %990 {offsets = [4, 0], sizes = [4, 16], strides = [1, 1]} : vector<8x16xf32> to vector<4x16xf32>
    %cst_166 = arith.constant 1.000000e+00 : f32
    %1001 = vector.broadcast %cst_166 : f32 to vector<4x16xf32>
    %1002 = arith.cmpf oge, %1000, %1001 : vector<4x16xf32>
    %1003 = arith.extui %1002 : vector<4x16xi1> to vector<4x16xi32>
    %1004 = arith.sitofp %1003 : vector<4x16xi32> to vector<4x16xf32>
    %1005 = tpu.concatenate %997, %998 in 0 : vector<4x32xf32>, vector<4x32xf32> -> vector<8x32xf32>
    %c0_167 = arith.constant 0 : index
    %c640 = arith.constant 640 : index
    %1006 = vector.load %arg2[%c0_167, %c640] : memref<64x1152xbf16, #tpu.memory_space<vmem>>, vector<32x64xbf16>
    %1007 = arith.truncf %1005 : vector<8x32xf32> to vector<8x32xbf16>
    %cst_168 = arith.constant dense<0.000000e+00> : vector<8x64xf32>
    %1008 = tpu.matmul %1007, %1006, %cst_168 {dimension_numbers = #tpu.dot_dimension_numbers<[1], [0], [0], [1], [0, 0, 1, 1], [], []>} : vector<8x32xbf16>, vector<32x64xbf16>, vector<8x64xf32> -> vector<8x64xf32>
    %c5 = arith.constant 5 : index
    %c0_169 = arith.constant 0 : index
    %1009 = vector.load %arg3[%c5, %c0_169] : memref<16x128xf32, #tpu.memory_space<vmem>>, vector<1x64xf32>
    %1010 = vector.broadcast %1009 : vector<1x64xf32> to vector<8x64xf32>
    %1011 = arith.addf %1008, %1010 : vector<8x64xf32>
    %cst_170 = arith.constant 0.000000e+00 : f32
    %1012 = vector.broadcast %cst_170 : f32 to vector<8x64xf32>
    %1013 = arith.maximumf %1011, %1012 : vector<8x64xf32>
    %c0_171 = arith.constant 0 : index
    %c768 = arith.constant 768 : index
    %1014 = vector.load %arg2[%c0_171, %c768] : memref<64x1152xbf16, #tpu.memory_space<vmem>>, vector<64x32xbf16>
    %1015 = arith.truncf %1013 : vector<8x64xf32> to vector<8x64xbf16>
    %cst_172 = arith.constant dense<0.000000e+00> : vector<8x32xf32>
    %1016 = tpu.matmul %1015, %1014, %cst_172 {dimension_numbers = #tpu.dot_dimension_numbers<[1], [0], [0], [1], [0, 0, 1, 1], [], []>} : vector<8x64xbf16>, vector<64x32xbf16>, vector<8x32xf32> -> vector<8x32xf32>
    %c6 = arith.constant 6 : index
    %c0_173 = arith.constant 0 : index
    %1017 = vector.load %arg3[%c6, %c0_173] : memref<16x128xf32, #tpu.memory_space<vmem>>, vector<1x32xf32>
    %1018 = vector.broadcast %1017 : vector<1x32xf32> to vector<8x32xf32>
    %1019 = arith.addf %1016, %1018 : vector<8x32xf32>
    %1020 = vector.extract_strided_slice %1019 {offsets = [4, 0], sizes = [4, 32], strides = [1, 1]} : vector<8x32xf32> to vector<4x32xf32>
    %1021 = vector.extract_strided_slice %1019 {offsets = [0, 0], sizes = [4, 32], strides = [1, 1]} : vector<8x32xf32> to vector<4x32xf32>
    %cst_174 = arith.constant 0.000000e+00 : f32
    %1022 = vector.broadcast %cst_174 : f32 to vector<4x32xf32>
    %1023 = arith.maximumf %1021, %1022 : vector<4x32xf32>
    %1024 = arith.mulf %1021, %991 : vector<4x32xf32>
    %1025 = arith.subf %1023, %1024 : vector<4x32xf32>
    %1026 = math.absf %1021 : vector<4x32xf32>
    %cst_175 = arith.constant 0.000000e+00 : f32
    %1027 = vector.broadcast %cst_175 : f32 to vector<4x32xf32>
    %1028 = arith.subf %1027, %1026 : vector<4x32xf32>
    %1029 = math.exp %1028 : vector<4x32xf32>
    %cst_176 = arith.constant 1.000000e+00 : f32
    %1030 = vector.broadcast %cst_176 : f32 to vector<4x32xf32>
    %1031 = arith.addf %1030, %1029 : vector<4x32xf32>
    %1032 = math.log %1031 : vector<4x32xf32>
    %1033 = arith.addf %1025, %1032 : vector<4x32xf32>
    %cst_177 = arith.constant dense<0.000000e+00> : vector<4xf32>
    %1034 = vector.multi_reduction <add>, %1033, %cst_177 [1] : vector<4x32xf32> to vector<4xf32>
    %1035 = vector.shape_cast %1034 : vector<4xf32> to vector<4x1xf32>
    %cst_178 = arith.constant dense<0.000000e+00> : vector<1xf32>
    %1036 = vector.multi_reduction <add>, %1035, %cst_178 [0] : vector<4x1xf32> to vector<1xf32>
    %1037 = vector.shape_cast %1036 : vector<1xf32> to vector<1x1xf32>
    %cst_179 = arith.constant 0.000000e+00 : f32
    %1038 = vector.broadcast %cst_179 : f32 to vector<4x32xf32>
    %1039 = arith.maximumf %1020, %1038 : vector<4x32xf32>
    %1040 = arith.mulf %1020, %992 : vector<4x32xf32>
    %1041 = arith.subf %1039, %1040 : vector<4x32xf32>
    %1042 = math.absf %1020 : vector<4x32xf32>
    %cst_180 = arith.constant 0.000000e+00 : f32
    %1043 = vector.broadcast %cst_180 : f32 to vector<4x32xf32>
    %1044 = arith.subf %1043, %1042 : vector<4x32xf32>
    %1045 = math.exp %1044 : vector<4x32xf32>
    %cst_181 = arith.constant 1.000000e+00 : f32
    %1046 = vector.broadcast %cst_181 : f32 to vector<4x32xf32>
    %1047 = arith.addf %1046, %1045 : vector<4x32xf32>
    %1048 = math.log %1047 : vector<4x32xf32>
    %1049 = arith.addf %1041, %1048 : vector<4x32xf32>
    %cst_182 = arith.constant dense<0.000000e+00> : vector<4xf32>
    %1050 = vector.multi_reduction <add>, %1049, %cst_182 [1] : vector<4x32xf32> to vector<4xf32>
    %1051 = vector.shape_cast %1050 : vector<4xf32> to vector<4x1xf32>
    %cst_183 = arith.constant dense<0.000000e+00> : vector<1xf32>
    %1052 = vector.multi_reduction <add>, %1051, %cst_183 [0] : vector<4x1xf32> to vector<1xf32>
    %1053 = vector.shape_cast %1052 : vector<1xf32> to vector<1x1xf32>
    %1054 = arith.addf %1037, %1053 : vector<1x1xf32>
    %cst_184 = arith.constant 7.812500e-03 : f32
    %1055 = vector.broadcast %cst_184 : f32 to vector<1x1xf32>
    %1056 = arith.mulf %1054, %1055 : vector<1x1xf32>
    %1057 = arith.sitofp %996 : vector<4x1xi32> to vector<4x1xf32>
    %cst_185 = arith.constant 0.000000e+00 : f32
    %1058 = vector.broadcast %cst_185 : f32 to vector<4x1xf32>
    %1059 = arith.maximumf %1057, %1058 : vector<4x1xf32>
    %cst_186 = arith.constant 8.000000e+00 : f32
    %1060 = vector.broadcast %cst_186 : f32 to vector<4x1xf32>
    %1061 = arith.minimumf %1059, %1060 : vector<4x1xf32>
    %cst_187 = arith.constant dense<0.000000e+00> : vector<4xf32>
    %1062 = vector.multi_reduction <add>, %1061, %cst_187 [1] : vector<4x1xf32> to vector<4xf32>
    %1063 = vector.shape_cast %1062 : vector<4xf32> to vector<4x1xf32>
    %cst_188 = arith.constant dense<0.000000e+00> : vector<1xf32>
    %1064 = vector.multi_reduction <add>, %1063, %cst_188 [0] : vector<4x1xf32> to vector<1xf32>
    %1065 = vector.shape_cast %1064 : vector<1xf32> to vector<1x1xf32>
    %1066 = vector.extract_strided_slice %915 {offsets = [0, 0], sizes = [4, 1], strides = [1, 1]} : vector<8x1xf32> to vector<4x1xf32>
    %cst_189 = arith.constant dense<0.000000e+00> : vector<4xf32>
    %1067 = vector.multi_reduction <add>, %1066, %cst_189 [1] : vector<4x1xf32> to vector<4xf32>
    %1068 = vector.shape_cast %1067 : vector<4xf32> to vector<4x1xf32>
    %cst_190 = arith.constant dense<0.000000e+00> : vector<1xf32>
    %1069 = vector.multi_reduction <add>, %1068, %cst_190 [0] : vector<4x1xf32> to vector<1xf32>
    %1070 = vector.shape_cast %1069 : vector<1xf32> to vector<1x1xf32>
    %1071 = arith.divf %1070, %1065 : vector<1x1xf32>
    %1072 = vector.extract_strided_slice %967 {offsets = [0, 0], sizes = [4, 1], strides = [1, 1]} : vector<8x1xf32> to vector<4x1xf32>
    %cst_191 = arith.constant dense<0.000000e+00> : vector<4xf32>
    %1073 = vector.multi_reduction <add>, %1072, %cst_191 [1] : vector<4x1xf32> to vector<4xf32>
    %1074 = vector.shape_cast %1073 : vector<4xf32> to vector<4x1xf32>
    %cst_192 = arith.constant dense<0.000000e+00> : vector<1xf32>
    %1075 = vector.multi_reduction <add>, %1074, %cst_192 [0] : vector<4x1xf32> to vector<1xf32>
    %1076 = vector.shape_cast %1075 : vector<1xf32> to vector<1x1xf32>
    %1077 = arith.divf %1076, %1065 : vector<1x1xf32>
    %1078 = vector.extract_strided_slice %972 {offsets = [0, 0], sizes = [4, 1], strides = [1, 1]} : vector<8x1xi32> to vector<4x1xi32>
    %c8_i32_193 = arith.constant 8 : i32
    %1079 = vector.broadcast %c8_i32_193 : i32 to vector<4x1xi32>
    %1080 = arith.cmpi sge, %1078, %1079 : vector<4x1xi32>
    %c0_i32_194 = arith.constant 0 : i32
    %1081 = vector.broadcast %c0_i32_194 : i32 to vector<4x1xi32>
    %1082 = arith.select %1080, %1081, %1078 : vector<4x1xi1>, vector<4x1xi32>
    %1083 = arith.sitofp %1082 : vector<4x1xi32> to vector<4x1xf32>
    %c1_i32_195 = arith.constant 1 : i32
    %1084 = vector.broadcast %c1_i32_195 : i32 to vector<4x1xi32>
    %1085 = arith.subi %995, %1084 : vector<4x1xi32>
    %c0_i32_196 = arith.constant 0 : i32
    %1086 = vector.broadcast %c0_i32_196 : i32 to vector<4x1xi32>
    %1087 = arith.cmpi sge, %1085, %1086 : vector<4x1xi32>
    %c8_i32_197 = arith.constant 8 : i32
    %1088 = vector.broadcast %c8_i32_197 : i32 to vector<4x1xi32>
    %1089 = arith.cmpi slt, %1085, %1088 : vector<4x1xi32>
    %1090 = arith.andi %1087, %1089 : vector<4x1xi1>
    %c0_i32_198 = arith.constant 0 : i32
    %1091 = vector.broadcast %c0_i32_198 : i32 to vector<4x1xi32>
    %1092 = arith.select %1090, %1085, %1091 : vector<4x1xi1>, vector<4x1xi32>
    %1093 = arith.sitofp %1092 : vector<4x1xi32> to vector<4x1xf32>
    %1094 = tpu.concatenate %997, %999 in 1 : vector<4x32xf32>, vector<4x32xf32> -> vector<4x64xf32>
    %c0_199 = arith.constant 0 : index
    %c896 = arith.constant 896 : index
    %1095 = vector.load %arg2[%c0_199, %c896] : memref<64x1152xbf16, #tpu.memory_space<vmem>>, vector<64x64xbf16>
    %1096 = arith.truncf %1094 : vector<4x64xf32> to vector<4x64xbf16>
    %cst_200 = arith.constant dense<0.000000e+00> : vector<4x64xf32>
    %1097 = tpu.matmul %1096, %1095, %cst_200 {dimension_numbers = #tpu.dot_dimension_numbers<[1], [0], [0], [1], [0, 0, 1, 1], [], []>} : vector<4x64xbf16>, vector<64x64xbf16>, vector<4x64xf32> -> vector<4x64xf32>
    %c7 = arith.constant 7 : index
    %c0_201 = arith.constant 0 : index
    %1098 = vector.load %arg3[%c7, %c0_201] : memref<16x128xf32, #tpu.memory_space<vmem>>, vector<1x64xf32>
    %1099 = vector.broadcast %1098 : vector<1x64xf32> to vector<4x64xf32>
    %1100 = arith.addf %1097, %1099 : vector<4x64xf32>
    %cst_202 = arith.constant 0.000000e+00 : f32
    %1101 = vector.broadcast %cst_202 : f32 to vector<4x64xf32>
    %1102 = arith.maximumf %1100, %1101 : vector<4x64xf32>
    %c0_203 = arith.constant 0 : index
    %c1024 = arith.constant 1024 : index
    %1103 = vector.load %arg2[%c0_203, %c1024] : memref<64x1152xbf16, #tpu.memory_space<vmem>>, vector<64x32xbf16>
    %1104 = arith.truncf %1102 : vector<4x64xf32> to vector<4x64xbf16>
    %cst_204 = arith.constant dense<0.000000e+00> : vector<4x32xf32>
    %1105 = tpu.matmul %1104, %1103, %cst_204 {dimension_numbers = #tpu.dot_dimension_numbers<[1], [0], [0], [1], [0, 0, 1, 1], [], []>} : vector<4x64xbf16>, vector<64x32xbf16>, vector<4x32xf32> -> vector<4x32xf32>
    %c8 = arith.constant 8 : index
    %c0_205 = arith.constant 0 : index
    %1106 = vector.load %arg3[%c8, %c0_205] : memref<16x128xf32, #tpu.memory_space<vmem>>, vector<1x32xf32>
    %1107 = vector.broadcast %1106 : vector<1x32xf32> to vector<4x32xf32>
    %1108 = arith.addf %1105, %1107 : vector<4x32xf32>
    %1109 = vector.extract_strided_slice %1108 {offsets = [0, 0], sizes = [4, 16], strides = [1, 1]} : vector<4x32xf32> to vector<4x16xf32>
    %1110 = vector.extract_strided_slice %1108 {offsets = [0, 16], sizes = [4, 16], strides = [1, 1]} : vector<4x32xf32> to vector<4x16xf32>
    %1111 = arith.cmpf ogt, %1110, %1109 : vector<4x16xf32>
    %1112 = arith.extui %1111 : vector<4x16xi1> to vector<4x16xi32>
    %1113 = arith.sitofp %1112 : vector<4x16xi32> to vector<4x16xf32>
    %1114 = tpu.iota {dimensions = array<i32: 1>} : vector<4x16xi32>
    %cst_206 = arith.constant 0.000000e+00 : f32
    %1115 = vector.broadcast %cst_206 : f32 to vector<4x16xf32>
    %1116 = vector.extract_strided_slice %994 {offsets = [0, 0], sizes = [4, 1], strides = [1, 1]} : vector<4x8xi32> to vector<4x1xi32>
    %1117 = vector.broadcast %1116 : vector<4x1xi32> to vector<4x16xi32>
    %1118 = arith.cmpi eq, %1114, %1117 : vector<4x16xi32>
    %c0_i32_207 = arith.constant 0 : i32
    %1119 = vector.broadcast %c0_i32_207 : i32 to vector<4x1xi32>
    %1120 = arith.cmpi sgt, %996, %1119 : vector<4x1xi32>
    %1121 = vector.broadcast %1120 : vector<4x1xi1> to vector<4x16xi1>
    %1122 = arith.andi %1118, %1121 : vector<4x16xi1>
    %1123 = arith.extui %1122 : vector<4x16xi1> to vector<4x16xi32>
    %1124 = arith.sitofp %1123 : vector<4x16xi32> to vector<4x16xf32>
    %1125 = arith.addf %1115, %1124 : vector<4x16xf32>
    %1126 = vector.extract_strided_slice %994 {offsets = [0, 1], sizes = [4, 1], strides = [1, 1]} : vector<4x8xi32> to vector<4x1xi32>
    %1127 = vector.broadcast %1126 : vector<4x1xi32> to vector<4x16xi32>
    %1128 = arith.cmpi eq, %1114, %1127 : vector<4x16xi32>
    %c1_i32_208 = arith.constant 1 : i32
    %1129 = vector.broadcast %c1_i32_208 : i32 to vector<4x1xi32>
    %1130 = arith.cmpi sgt, %996, %1129 : vector<4x1xi32>
    %1131 = vector.broadcast %1130 : vector<4x1xi1> to vector<4x16xi1>
    %1132 = arith.andi %1128, %1131 : vector<4x16xi1>
    %1133 = arith.extui %1132 : vector<4x16xi1> to vector<4x16xi32>
    %1134 = arith.sitofp %1133 : vector<4x16xi32> to vector<4x16xf32>
    %1135 = arith.addf %1125, %1134 : vector<4x16xf32>
    %1136 = vector.extract_strided_slice %994 {offsets = [0, 2], sizes = [4, 1], strides = [1, 1]} : vector<4x8xi32> to vector<4x1xi32>
    %1137 = vector.broadcast %1136 : vector<4x1xi32> to vector<4x16xi32>
    %1138 = arith.cmpi eq, %1114, %1137 : vector<4x16xi32>
    %c2_i32_209 = arith.constant 2 : i32
    %1139 = vector.broadcast %c2_i32_209 : i32 to vector<4x1xi32>
    %1140 = arith.cmpi sgt, %996, %1139 : vector<4x1xi32>
    %1141 = vector.broadcast %1140 : vector<4x1xi1> to vector<4x16xi1>
    %1142 = arith.andi %1138, %1141 : vector<4x16xi1>
    %1143 = arith.extui %1142 : vector<4x16xi1> to vector<4x16xi32>
    %1144 = arith.sitofp %1143 : vector<4x16xi32> to vector<4x16xf32>
    %1145 = arith.addf %1135, %1144 : vector<4x16xf32>
    %1146 = vector.extract_strided_slice %994 {offsets = [0, 3], sizes = [4, 1], strides = [1, 1]} : vector<4x8xi32> to vector<4x1xi32>
    %1147 = vector.broadcast %1146 : vector<4x1xi32> to vector<4x16xi32>
    %1148 = arith.cmpi eq, %1114, %1147 : vector<4x16xi32>
    %c3_i32_210 = arith.constant 3 : i32
    %1149 = vector.broadcast %c3_i32_210 : i32 to vector<4x1xi32>
    %1150 = arith.cmpi sgt, %996, %1149 : vector<4x1xi32>
    %1151 = vector.broadcast %1150 : vector<4x1xi1> to vector<4x16xi1>
    %1152 = arith.andi %1148, %1151 : vector<4x16xi1>
    %1153 = arith.extui %1152 : vector<4x16xi1> to vector<4x16xi32>
    %1154 = arith.sitofp %1153 : vector<4x16xi32> to vector<4x16xf32>
    %1155 = arith.addf %1145, %1154 : vector<4x16xf32>
    %1156 = vector.extract_strided_slice %994 {offsets = [0, 4], sizes = [4, 1], strides = [1, 1]} : vector<4x8xi32> to vector<4x1xi32>
    %1157 = vector.broadcast %1156 : vector<4x1xi32> to vector<4x16xi32>
    %1158 = arith.cmpi eq, %1114, %1157 : vector<4x16xi32>
    %c4_i32_211 = arith.constant 4 : i32
    %1159 = vector.broadcast %c4_i32_211 : i32 to vector<4x1xi32>
    %1160 = arith.cmpi sgt, %996, %1159 : vector<4x1xi32>
    %1161 = vector.broadcast %1160 : vector<4x1xi1> to vector<4x16xi1>
    %1162 = arith.andi %1158, %1161 : vector<4x16xi1>
    %1163 = arith.extui %1162 : vector<4x16xi1> to vector<4x16xi32>
    %1164 = arith.sitofp %1163 : vector<4x16xi32> to vector<4x16xf32>
    %1165 = arith.addf %1155, %1164 : vector<4x16xf32>
    %1166 = vector.extract_strided_slice %994 {offsets = [0, 5], sizes = [4, 1], strides = [1, 1]} : vector<4x8xi32> to vector<4x1xi32>
    %1167 = vector.broadcast %1166 : vector<4x1xi32> to vector<4x16xi32>
    %1168 = arith.cmpi eq, %1114, %1167 : vector<4x16xi32>
    %c5_i32_212 = arith.constant 5 : i32
    %1169 = vector.broadcast %c5_i32_212 : i32 to vector<4x1xi32>
    %1170 = arith.cmpi sgt, %996, %1169 : vector<4x1xi32>
    %1171 = vector.broadcast %1170 : vector<4x1xi1> to vector<4x16xi1>
    %1172 = arith.andi %1168, %1171 : vector<4x16xi1>
    %1173 = arith.extui %1172 : vector<4x16xi1> to vector<4x16xi32>
    %1174 = arith.sitofp %1173 : vector<4x16xi32> to vector<4x16xf32>
    %1175 = arith.addf %1165, %1174 : vector<4x16xf32>
    %1176 = vector.extract_strided_slice %994 {offsets = [0, 6], sizes = [4, 1], strides = [1, 1]} : vector<4x8xi32> to vector<4x1xi32>
    %1177 = vector.broadcast %1176 : vector<4x1xi32> to vector<4x16xi32>
    %1178 = arith.cmpi eq, %1114, %1177 : vector<4x16xi32>
    %c6_i32_213 = arith.constant 6 : i32
    %1179 = vector.broadcast %c6_i32_213 : i32 to vector<4x1xi32>
    %1180 = arith.cmpi sgt, %996, %1179 : vector<4x1xi32>
    %1181 = vector.broadcast %1180 : vector<4x1xi1> to vector<4x16xi1>
    %1182 = arith.andi %1178, %1181 : vector<4x16xi1>
    %1183 = arith.extui %1182 : vector<4x16xi1> to vector<4x16xi32>
    %1184 = arith.sitofp %1183 : vector<4x16xi32> to vector<4x16xf32>
    %1185 = arith.addf %1175, %1184 : vector<4x16xf32>
    %1186 = vector.extract_strided_slice %994 {offsets = [0, 7], sizes = [4, 1], strides = [1, 1]} : vector<4x8xi32> to vector<4x1xi32>
    %1187 = vector.broadcast %1186 : vector<4x1xi32> to vector<4x16xi32>
    %1188 = arith.cmpi eq, %1114, %1187 : vector<4x16xi32>
    %c7_i32_214 = arith.constant 7 : i32
    %1189 = vector.broadcast %c7_i32_214 : i32 to vector<4x1xi32>
    %1190 = arith.cmpi sgt, %996, %1189 : vector<4x1xi32>
    %1191 = vector.broadcast %1190 : vector<4x1xi1> to vector<4x16xi1>
    %1192 = arith.andi %1188, %1191 : vector<4x16xi1>
    %1193 = arith.extui %1192 : vector<4x16xi1> to vector<4x16xi32>
    %1194 = arith.sitofp %1193 : vector<4x16xi32> to vector<4x16xf32>
    %1195 = arith.addf %1185, %1194 : vector<4x16xf32>
    %cst_215 = arith.constant 1.000000e+00 : f32
    %1196 = vector.broadcast %cst_215 : f32 to vector<4x16xf32>
    %1197 = arith.cmpf oge, %1195, %1196 : vector<4x16xf32>
    %1198 = arith.extui %1197 : vector<4x16xi1> to vector<4x16xi32>
    %1199 = arith.sitofp %1198 : vector<4x16xi32> to vector<4x16xf32>
    %cst_216 = arith.constant 1.000000e+00 : f32
    %1200 = vector.broadcast %cst_216 : f32 to vector<4x16xf32>
    %1201 = arith.subf %1200, %1199 : vector<4x16xf32>
    %cst_217 = arith.constant 0.000000e+00 : f32
    %1202 = vector.broadcast %cst_217 : f32 to vector<4x16xf32>
    %1203 = arith.maximumf %1109, %1202 : vector<4x16xf32>
    %1204 = arith.mulf %1109, %1201 : vector<4x16xf32>
    %1205 = arith.subf %1203, %1204 : vector<4x16xf32>
    %1206 = math.absf %1109 : vector<4x16xf32>
    %cst_218 = arith.constant 0.000000e+00 : f32
    %1207 = vector.broadcast %cst_218 : f32 to vector<4x16xf32>
    %1208 = arith.subf %1207, %1206 : vector<4x16xf32>
    %1209 = math.exp %1208 : vector<4x16xf32>
    %cst_219 = arith.constant 1.000000e+00 : f32
    %1210 = vector.broadcast %cst_219 : f32 to vector<4x16xf32>
    %1211 = arith.addf %1210, %1209 : vector<4x16xf32>
    %1212 = math.log %1211 : vector<4x16xf32>
    %1213 = arith.addf %1205, %1212 : vector<4x16xf32>
    %cst_220 = arith.constant dense<0.000000e+00> : vector<4xf32>
    %1214 = vector.multi_reduction <add>, %1213, %cst_220 [1] : vector<4x16xf32> to vector<4xf32>
    %1215 = vector.shape_cast %1214 : vector<4xf32> to vector<4x1xf32>
    %cst_221 = arith.constant dense<0.000000e+00> : vector<1xf32>
    %1216 = vector.multi_reduction <add>, %1215, %cst_221 [0] : vector<4x1xf32> to vector<1xf32>
    %1217 = vector.shape_cast %1216 : vector<1xf32> to vector<1x1xf32>
    %cst_222 = arith.constant 0.000000e+00 : f32
    %1218 = vector.broadcast %cst_222 : f32 to vector<4x16xf32>
    %1219 = arith.maximumf %1110, %1218 : vector<4x16xf32>
    %1220 = arith.mulf %1110, %1199 : vector<4x16xf32>
    %1221 = arith.subf %1219, %1220 : vector<4x16xf32>
    %1222 = math.absf %1110 : vector<4x16xf32>
    %cst_223 = arith.constant 0.000000e+00 : f32
    %1223 = vector.broadcast %cst_223 : f32 to vector<4x16xf32>
    %1224 = arith.subf %1223, %1222 : vector<4x16xf32>
    %1225 = math.exp %1224 : vector<4x16xf32>
    %cst_224 = arith.constant 1.000000e+00 : f32
    %1226 = vector.broadcast %cst_224 : f32 to vector<4x16xf32>
    %1227 = arith.addf %1226, %1225 : vector<4x16xf32>
    %1228 = math.log %1227 : vector<4x16xf32>
    %1229 = arith.addf %1221, %1228 : vector<4x16xf32>
    %cst_225 = arith.constant dense<0.000000e+00> : vector<4xf32>
    %1230 = vector.multi_reduction <add>, %1229, %cst_225 [1] : vector<4x16xf32> to vector<4xf32>
    %1231 = vector.shape_cast %1230 : vector<4xf32> to vector<4x1xf32>
    %cst_226 = arith.constant dense<0.000000e+00> : vector<1xf32>
    %1232 = vector.multi_reduction <add>, %1231, %cst_226 [0] : vector<4x1xf32> to vector<1xf32>
    %1233 = vector.shape_cast %1232 : vector<1xf32> to vector<1x1xf32>
    %1234 = arith.addf %1217, %1233 : vector<1x1xf32>
    %cst_227 = arith.constant 7.812500e-03 : f32
    %1235 = vector.broadcast %cst_227 : f32 to vector<1x1xf32>
    %1236 = arith.mulf %1234, %1235 : vector<1x1xf32>
    %1237 = tpu.concatenate %1071, %1236, %1056, %1077 in 1 : vector<1x1xf32>, vector<1x1xf32>, vector<1x1xf32>, vector<1x1xf32> -> vector<1x4xf32>
    %1238 = vector.shape_cast %1237 : vector<1x4xf32> to vector<1x4xf32>
    %1239 = vector.broadcast %1238 : vector<1x4xf32> to vector<4x4xf32>
    %cst_228 = arith.constant 0.000000e+00 : f32
    %1240 = vector.broadcast %cst_228 : f32 to vector<4x58xf32>
    %1241 = tpu.concatenate %1020, %1004, %1113, %1083, %1093, %1239, %1240 in 1 : vector<4x32xf32>, vector<4x16xf32>, vector<4x16xf32>, vector<4x1xf32>, vector<4x1xf32>, vector<4x4xf32>, vector<4x58xf32> -> vector<4x128xf32>
    %c0_229 = arith.constant 0 : index
    %c0_230 = arith.constant 0 : index
    %1242 = vector.load %arg4[%c0_229, %c0_230] : memref<4x128xf32, #tpu.memory_space<vmem>>, vector<4x128xf32>
    tpu.vector_store %arg4[%c0_229, %c0_230], %1241 {strides = array<i32>} : memref<4x128xf32, #tpu.memory_space<vmem>>, vector<4x128xf32>,
    return
  }
  func.func @transform_0(%arg0: i32) -> (i32, i32) {
    %c0_i32 = arith.constant 0 : i32
    %c0_i32_0 = arith.constant 0 : i32
    %c0_i32_1 = arith.constant 0 : i32
    return %c0_i32, %c0_i32_0 : i32, i32
  }
  func.func @transform_1(%arg0: i32) -> (i32, i32) {
    %c0_i32 = arith.constant 0 : i32
    %c0_i32_0 = arith.constant 0 : i32
    %c0_i32_1 = arith.constant 0 : i32
    return %c0_i32, %c0_i32_0 : i32, i32
  }
  func.func @transform_2(%arg0: i32) -> (i32, i32) {
    %c0_i32 = arith.constant 0 : i32
    %c0_i32_0 = arith.constant 0 : i32
    %c0_i32_1 = arith.constant 0 : i32
    return %c0_i32, %c0_i32_0 : i32, i32
  }
  func.func @transform_3(%arg0: i32) -> (i32, i32) {
    %c0_i32 = arith.constant 0 : i32
    %c0_i32_0 = arith.constant 0 : i32
    %c0_i32_1 = arith.constant 0 : i32
    return %c0_i32, %c0_i32_0 : i32, i32
  }
}

</mosaic_0001>

<bundles_post_ra>
// kernel: pedp_forward.1
= control target key start
LH: loop header
LB: loop body
LE: loop exit
PB: predicated region body
PF: predicated region fallthrough
CT: control target
= control target key end

     0   :  { %8 = vsyncpa [#allocation3], 0  ;;  %s3863_s12 = smov [#allocation2]   ;;  %s5189_s0 = inlined_call_operand.vmem [shape: f32[8,128], index: 0, kind: input, shape index: {}]   ;;  %s5190_s1 = inlined_call_operand.hbm [shape: bf16[64,1152], index: 1, kind: input, shape index: {}]   ;;  %s5191_s2 = inlined_call_operand.vmem [shape: f32[16,128], index: 2, kind: input, shape index: {}]   ;;  %s5192_s3 = inlined_call_operand.vmem [shape: f32[4,128], index: 3, kind: output, shape index: {}]  }
   0x1   :  { %s16_s13 = sshll.u32 %s3863_s12, 4  ;;  %s3839_s16 = scalar_lea.hbm %s5190_s1, 4608  ;;  %s17_s13 = int_to_ptr.vmem [resolvable:$true] %s16_s13 }
   0x2   :  { %p3840_p0 = scmp.ne.s32.totalorder %s5190_s1, %s3839_s16  ;;  %p3843_p1 = scmp.lt.u32.totalorder %s3839_s16, %s5190_s1 }
   0x4   :  { %p3845_p2 = pnand %p3843_p1, %p3840_p0 }
   0x6   :  { %3848 = shalt.err (!%p3845_p2)
}
   0x7   :  { %s3849_s21 = scalar_lea.vmem %s17_s13, 4608  ;;  %p3854_p4 = scmp.lt.s32.totalorder %s17_s13, %s17_s13 }
   0x8   :  { %p3850_p3 = scmp.ne.s32.totalorder %s17_s13, %s3849_s21  ;;  %p3855_p5 = scmp.lt.s32.totalorder %s3849_s21, %s3849_s21 }
   0xa   :  { %p3856_p6 = por %p3855_p5, %p3854_p4 }
   0xc   :  { %p3857_p7 = pnand %p3856_p6, %p3850_p3 }
   0xe   :  { %3860 = shalt.err (!%p3857_p7)
}
   0xf   :  { %s3864_s22 = smov 576   ;;  %s3865_s23 = smov 36  }
  0x10   :  { %22 = dma.hbm_to_vmem [thread:$0]  %s5190_s1, 4608, %s17_s13, [#allocation3], %s3864_s22, %s3864_s22, %s3865_s23  }
  0x11   :  { %3861 = dma.done.wait [#allocation3], 4608  }
  0x12   :  { %3862 = vsyncadd [#allocation3], 4294962688  ;;  %v5221_v0 = vmov 0.0   ;;  %vm3867_vm0 = vmmov 0   ;;  %v3670_v1 = vld [vmem:[#allocation2] ss:$36 sps:$4 sm:$0xff]   ;;  %v31_v39 = vlaneseq }
  0x13   :  { %3325 = vmatprep.subr.bf16.mxu1 %v5221_v0  ;;  %3329 = vmatprep.mubr.msk.bf16.mxu1 %vm3867_vm0, %v5221_v0  ;;  %v3671_v2 = vld [vmem:[#allocation2 + $0x48] ss:$36 sps:$4 sm:$0xff]   ;;  %v3945_v3 = vld [vmem:[%s5189_s0] sm:$0xff]  ;;  %vm5254_vm1 = vcmask 261120   ;;  %v3674_v7 = vld [vmem:[#allocation2 + $0x94] ss:$36 sps:$4 sm:$0xff]  }
  0x14   :  { %3345 = vmatprep.subr.bf16.mxu0 %v5221_v0  ;;  %3349 = vmatprep.mubr.msk.bf16.mxu0 %vm3867_vm0, %v5221_v0  ;;  %v3672_v4 = vld [vmem:[#allocation2 + $0x4] ss:$36 sps:$4 sm:$0xff]   ;;  %v40_v5 = vpack.c.bf16 %v3945_v3, %v3945_v3  ;;  %v3673_v6 = vld [vmem:[#allocation2 + $0x4c] ss:$36 sps:$4 sm:$0xff]   ;;  %v3675_v8 = vld [vmem:[#allocation2 + $0xdc] ss:$36 sps:$4 sm:$0xff]   ;;  %v3517_v53 = vtrunc.f32 %v3945_v3 }
  0x15   :  { %3326 = vmatpush3.bf16.msra.mxu1 %v3670_v1  ;;  %v3676_v9 = vld [vmem:[#allocation2 + $0x10] ss:$36 sps:$4 sm:$0xff]   ;;  %v3130_v10 = vld [vmem:[%s5191_s2 + $0x2] ss:$0 sm:$0xff]  ;;  %vm5253_vm2 = vcmask 523264   ;;  %vm328_vm3 = vcmask 917248  }
  0x16   :  { %3327 = vmatprep.subr.bf16.mxu1 %v5221_v0  ;;  %3346 = vmatpush3.bf16.msra.mxu0 %v3676_v9  ;;  %v3677_v18 = vld [vmem:[#allocation2 + $0x58] ss:$36 sps:$4 sm:$0xff]   ;;  %v3134_v19 = vld [vmem:[%s5191_s2 + $0x3] ss:$0 sm:$0xff]  ;;  %v3971_v24 = vld [vmem:[#allocation2 + $0x8] ss:$36 sps:$4 sm:$0xff]   ;;  %v4022_v57 = vcvt.f32.s32 %v3517_v53 }
  0x17   :  { %3347 = vmatprep.subr.bf16.mxu0 %v5221_v0  ;;  %v3977_v27 = vld [vmem:[#allocation2 + $0x50] ss:$36 sps:$4 sm:$0xff]   ;;  %v3996_v32 = vld [vmem:[%s5191_s2] ss:$0 sm:$0xff]  ;;  %v4003_v40 = vand.u32 127, %v31_v39  ;;  %s3868_s6 = smov 96  }
  0x18   :  { %v3869_v51 = vmov 64   ;;  %v4015_v52 = vld [vmem:[#allocation2 + $0xc] ss:$36 sps:$4 sm:$0xff]   ;;  %v4020_v55 = vshrl.u32 %v31_v39, 7  ;;  %s3870_s7 = smov 64   ;;  %vm365_vm8 = vcmask 130048  }
  0x19   :  { %3328 = vmatpush3.bf16.msra.mxu1 %v3671_v2  ;;  %5255 = vst [vmem:[#allocation5_spill] sm:$0xff] %v4003_v40  ;;  %3560 = vset.pattern.permute.xlu1 %v3869_v51  ;;  %v4044_v2 = vld [vmem:[%s5191_s2 + $0x1] ss:$0 sm:$0xff]  ;;  %s3871_s10 = smov 32   ;;  %s3879_s13 = smov 16  }
  0x1a   :  { %3333 = vmatprep.subr.bf16.mxu1 %v5221_v0  ;;  %3348 = vmatpush3.bf16.msra.mxu0 %v3677_v18  ;;  %5256 = vst [vmem:[#allocation6_spill] sm:$0xff] %v4020_v55  ;;  %vm35_vm6 = vcmp.lt.s32.totalorder %v4020_v55, 4  ;;  %s3881_s16 = smov 127   ;;  %s3882_s17 = smov 80   ;;  %v5196_v55 = vmov 1  }
  0x1b   :  { %3353 = vmatprep.subr.bf16.mxu0 %v5221_v0  ;;  %s3883_s18 = smov 1   ;;  %s3884_s19 = smov 79  }
  0x1c   :  { %3330 = vmatmul.mubr.msk.bf16.vlgmr.msra.gmra.mrb[0].mxu1 %vm5254_vm1, %v40_v5  ;;  %s3886_s20 = smov 48   ;;  %s3887_s21 = smov 47  }
  0x1d   :  { %3334 = vmatpush3.bf16.msra.mxu1 %v3672_v4  ;;  %3341 = vmatprep.mubr.msk.bf16.mxu1 %vm3867_vm0, %v5221_v0  ;;  %s3901_s4 = smov 63   ;;  %s3902_s5 = smov 113  }
  0x1e   :  { %3335 = vmatprep.subr.bf16.mxu1 %v5221_v0 }
  0x21   :  { %3336 = vmatpush3.bf16.msra.mxu1 %v3673_v6 }
  0x22   :  { %3337 = vmatprep.subr.bf16.mxu1 %v5221_v0 }
  0x25   :  { %3338 = vmatpush3.bf16.msra.mxu1 %v3674_v7 }
  0x26   :  { %3339 = vmatprep.subr.bf16.mxu1 %v5221_v0 }
  0x29   :  { %3340 = vmatpush3.bf16.msra.mxu1 %v3675_v8 }
  0x2a   :  { %3361 = vmatprep.subr.bf16.mxu1 %v5221_v0 }
  0xef   :  { %v96_v11 = vpop.f32.mrb[0].mxu1 }
  0xf0   :  { %v97_v12 = vadd.f32 %v3130_v10, %v96_v11  ;;  %v3331_v13 = vpop.f32.mrb[1].mxu1 }
  0xf1   :  { %v99_v14 = vpop.f32.mrb[2].mxu1 }
  0xf2   :  { %v102_v15 = vmax.f32 %v97_v12, 0.0  ;;  %v3332_v16 = vpop.f32.mrb[3].mxu1 }
  0xf4   :  { %v111_v17 = vpack.c.bf16 %v102_v15, %v102_v15 }
  0xf6   :  { %3342 = vmatmul.mubr.msk.bf16.vlgmr.msra.gmra.mrb[4].mxu1 %vm5253_vm2, %v111_v17 }
  0xf7   :  { %3363 = vmatprep.mubr.msk.bf16.mxu1 %vm3867_vm0, %v5221_v0  ;;  %3362 = vmatpush3.bf16.msra.mxu1 %v4015_v52 }
  0xf8   :  { %3375 = vmatprep.subr.bf16.mxu1 %v5221_v0 }
 0x1c9   :  { %v179_v20 = vpop.f32.mrb[4].mxu1 }
 0x1ca   :  { %v3969_v21 = vadd.f32 %v3134_v19, %v179_v20  ;;  %v3343_v22 = vpop.f32.mrb[5].mxu1 }
 0x1cb   :  { %v182_v23 = vpop.f32.mrb[6].mxu1 }
 0x1cc   :  { %v3344_v25 = vpop.f32.mrb[7].mxu1  ;;  %v189_v26 = vpack.c.bf16 %v3969_v21, %v3969_v21 }
 0x1ce   :  { %3350 = vmatmul.mubr.msk.bf16.vlgmr.msra.gmra.mrb[0].mxu0 %vm5254_vm1, %v189_v26 }
 0x1cf   :  { %3354 = vmatpush3.bf16.msra.mxu0 %v3971_v24  ;;  %3357 = vmatprep.mubr.msk.bf16.mxu0 %vm3867_vm0, %v5221_v0 }
 0x1d0   :  { %3355 = vmatprep.subr.bf16.mxu0 %v5221_v0 }
 0x1d3   :  { %3356 = vmatpush3.bf16.msra.mxu0 %v3977_v27 }
 0x1d4   :  { %3367 = vmatprep.subr.bf16.mxu0 %v5221_v0 }
 0x1d6   :  { %3358 = vmatmul.mubr.msk.bf16.vlgmr.msra.gmra.mrb[4].mxu0 %vm5254_vm1, %v189_v26 }
 0x1d7   :  { %3368 = vmatpush3.bf16.msra.mxu0 %v3971_v24  ;;  %3371 = vmatprep.mubr.msk.bf16.mxu0 %vm3867_vm0, %v5221_v0 }
 0x1d8   :  { %3369 = vmatprep.subr.bf16.mxu0 %v5221_v0 }
 0x1db   :  { %3370 = vmatpush3.bf16.msra.mxu0 %v3977_v27 }
 0x1dc   :  { %3381 = vmatprep.subr.bf16.mxu0 %v5221_v0 }
 0x2a1   :  { %v3991_v28 = vpop.f32.mrb[0].mxu0 }
 0x2a2   :  { %v3351_v29 = vpop.f32.mrb[1].mxu0 }
 0x2a3   :  { %v247_v30 = vpop.f32.mrb[2].mxu0 }
 0x2a4   :  { %v3352_v31 = vpop.f32.mrb[3].mxu0 }
 0x2a9   :  { %v312_v33 = vpop.f32.mrb[4].mxu0 }
 0x2aa   :  { %v3999_v34 = vadd.f32 %v3996_v32, %v312_v33  ;;  %v3359_v35 = vpop.f32.mrb[5].mxu0 }
 0x2ab   :  { %v315_v36 = vpop.f32.mrb[6].mxu0 }
 0x2ac   :  { %v3360_v37 = vpop.f32.mrb[7].mxu0  ;;  %v329_v38 = vsel %vm328_vm3, %v3999_v34, -inf }
 0x2ad   :  { %330 = vmax.xlane.f32.xlu0 %v329_v38 }
 0x2c3   :  { %333 = vrot.lane.b32.xlu0 %v4003_v40, %s3868_s6 }
 0x33a   :  { %v4007_v41 = vpop.xlane.xlu0 %330 }
 0x33b   :  { %vm332_vm4 = vcmp.eq.f32.partialorder %v3999_v34, %v4007_v41 }
 0x33e   :  { %v4009_v42 = vpop.permute.xlu0 %333 }
 0x33f   :  { %v335_v43 = vsel %vm332_vm4, %v4009_v42, 16 }
 0x340   :  { %v336_v44 = vsel %vm328_vm3, %v335_v43, 2147483647 }
 0x341   :  { %v338_v45 = vshra.s32 %v336_v44, 16  ;;  %v337_v47 = vand.u32 65535, %v336_v44 }
 0x343   :  { %v340_v46 = vcvt.s32.f32 %v338_v45  ;;  %v339_v49 = vcvt.s32.f32 %v337_v47 }
 0x345   :  { %341 = vmin.xlane.f32.xlu1 %v340_v46 }
 0x3d2   :  { %v342_v48 = vpop.xlane.xlu1 %341 }
 0x3d3   :  { %vm343_vm5 = vcmp.eq.f32.partialorder %v340_v46, %v342_v48  ;;  %v348_v54 = vcvt.f32.s32 %v342_v48 }
 0x3d4   :  { %v344_v50 = vsel %vm343_vm5, %v339_v49, inf }
 0x3d5   :  { %345 = vmin.xlane.f32.xlu1 %v344_v50  ;;  %v349_v58 = vshll.u32 %v348_v54, 16  ;;  %v3872_v50 = vmov 65  }
 0x3d6   :  { %3561 = vset.pattern.permute.xlu0 %v3872_v50 }
 0x462   :  { %v346_v56 = vpop.xlane.xlu1 %345 }
 0x463   :  { %v347_v59 = vcvt.f32.s32 %v346_v56 }
 0x465   :  { %v350_v60 = vadd.s32 %v349_v58, %v347_v59 }
 0x467   :  { %v351_v61 = vsel %vm35_vm6, %v4022_v57, %v350_v60 }
 0x468   :  { %353 = vperm.xlu1 %3560, %v351_v61  }
 0x46c   :  { %448 = vrot.lane.b32.xlu1 %v3999_v34, %s3870_s7 }
 0x4e7   :  { %v354_v62 = vpop.permute.xlu1 %353 }
 0x4e8   :  { %vm355_vm7 = vcmp.eq.s32.totalorder %v4003_v40, %v354_v62 }
 0x4e9   :  { %v4032_v63 = vsel %vm355_vm7, 1.0, %v5221_v0 }
 0x4ea   :  { %5257 = vst [vmem:[#allocation7_spill] sm:$0xff] %v4032_v63  ;;  %v390_v1 = vpack.c.bf16 %v4032_v63, %v4032_v63 }
 0x4eb   :  { %v449_v13 = vpop.permute.xlu1 %448 }
 0x4ec   :  { %3364 = vmatmul.mubr.msk.bf16.vlgmr.msra.gmra.mrb[8].mxu1 %vm365_vm8, %v390_v1 }
 0x4ed   :  { %3376 = vmatpush3.bf16.msra.mxu1 %v4015_v52  ;;  %3377 = vmatprep.mubr.msk.bf16.mxu1 %vm3867_vm0, %v5221_v0 }
 0x4ee   :  { %3389 = vmatprep.subr.bf16.mxu1 %v5221_v0 }
 0x5bf   :  { %v434_v3 = vpop.f32.mrb[8].mxu1 }
 0x5c0   :  { %v435_v4 = vadd.f32 %v4044_v2, %v434_v3  ;;  %v3365_v5 = vpop.f32.mrb[9].mxu1 }
 0x5c1   :  { %v437_v6 = vpop.f32.mrb[10].mxu1 }
 0x5c2   :  { %v440_v7 = vadd.f32 %v435_v4, %v3999_v34  ;;  %v3366_v8 = vpop.f32.mrb[11].mxu1 }
 0x5c4   :  { %v3154_v9 = vmul.f32 -1.442695, %v440_v7 }
 0x5c6   :  { %3695 = vpow2.f32 %v3154_v9 }
 0x5d0   :  { %v3696_v10 = vpop.eup %3695 }
 0x5d1   :  { %v444_v11 = vadd.f32 1.0, %v3696_v10 }
 0x5d3   :  { %3697 = vrcp.f32 %v444_v11 }
 0x5dd   :  { %v3698_v12 = vpop.eup %3697 }
 0x5de   :  { %v451_v14 = vmul.f32 %v3698_v12, %v449_v13  ;;  %v458_v19 = vsub.f32 1.0, %v3698_v12 }
 0x5e0   :  { %453 = vrot.lane.b32.xlu0 %v451_v14, %s3870_s7 }
 0x5e4   :  { %465 = vrot.lane.b32.xlu0 %v3969_v21, %s3871_s10 }
 0x652   :  { %v454_v15 = vpop.permute.xlu0 %453 }
 0x653   :  { %v456_v16 = vadd.f32 %v454_v15, %v435_v4 }
 0x655   :  { %3699 = vtanh.f32 %v456_v16 }
 0x656   :  { %v466_v18 = vpop.permute.xlu0 %465 }
 0x657   :  { %v468_v22 = vmul.f32 %v3698_v12, %v466_v18 }
 0x65f   :  { %v3700_v17 = vpop.eup %3699 }
 0x660   :  { %460 = vrot.lane.b32.xlu1 %v3700_v17, %s3868_s6 }
 0x6d2   :  { %v461_v20 = vpop.permute.xlu1 %460 }
 0x6d3   :  { %v463_v23 = vmul.f32 %v461_v20, %v458_v19 }
 0x6d5   :  { %v4052_v25 = vadd.f32 %v468_v22, %v463_v23 }
 0x6d7   :  { %v470_v26 = vpack.c.bf16 %v4052_v25, %v4052_v25 }
 0x6d9   :  { %472 = vrot.lane.b32.xlu1 %v470_v26, %s3868_s6 }
 0x74b   :  { %v473_v29 = vpop.permute.xlu1 %472 }
 0x74c   :  { %3372 = vmatmul.mubr.msk.bf16.vlgmr.msra.gmra.mrb[8].mxu0 %vm5254_vm1, %v473_v29 }
 0x74d   :  { %3382 = vmatpush3.bf16.msra.mxu0 %v3971_v24  ;;  %3385 = vmatprep.mubr.msk.bf16.mxu0 %vm3867_vm0, %v5221_v0 }
 0x74e   :  { %3383 = vmatprep.subr.bf16.mxu0 %v5221_v0 }
 0x751   :  { %3384 = vmatpush3.bf16.msra.mxu0 %v3977_v27 }
 0x752   :  { %3395 = vmatprep.subr.bf16.mxu0 %v5221_v0 }
 0x81f   :  { %v511_v30 = vpop.f32.mrb[8].mxu0 }
 0x820   :  { %v4065_v31 = vadd.f32 %v3996_v32, %v511_v30  ;;  %v3373_v33 = vpop.f32.mrb[9].mxu0 }
 0x821   :  { %v514_v35 = vpop.f32.mrb[10].mxu0 }
 0x822   :  { %v3374_v36 = vpop.f32.mrb[11].mxu0  ;;  %v613_v37 = vsel %vm328_vm3, %v4065_v31, -inf }
 0x823   :  { %614 = vmax.xlane.f32.xlu0 %v613_v37 }
 0x8b0   :  { %v4069_v38 = vpop.xlane.xlu0 %614 }
 0x8b1   :  { %vm616_vm9 = vcmp.eq.f32.partialorder %v4065_v31, %v4069_v38 }
 0x8b2   :  { %v617_v39 = vsel %vm616_vm9, %v4009_v42, 16 }
 0x8b3   :  { %v618_v43 = vsel %vm328_vm3, %v617_v39, 2147483647 }
 0x8b4   :  { %v620_v44 = vshra.s32 %v618_v43, 16  ;;  %v619_v46 = vand.u32 65535, %v618_v43 }
 0x8b6   :  { %v622_v45 = vcvt.s32.f32 %v620_v44  ;;  %v621_v48 = vcvt.s32.f32 %v619_v46 }
 0x8b8   :  { %623 = vmin.xlane.f32.xlu1 %v622_v45 }
 0x8c9   :  { %722 = vrot.lane.b32.xlu1 %v4065_v31, %s3870_s7 }
 0x945   :  { %v624_v47 = vpop.xlane.xlu1 %623 }
 0x946   :  { %vm625_vm10 = vcmp.eq.f32.partialorder %v622_v45, %v624_v47  ;;  %v630_v51 = vcvt.f32.s32 %v624_v47 }
 0x947   :  { %v626_v49 = vsel %vm625_vm10, %v621_v48, inf }
 0x948   :  { %627 = vmin.xlane.f32.xlu0 %v626_v49  ;;  %v631_v54 = vshll.u32 %v630_v51, 16  ;;  %v3873_v51 = vmov 66  }
 0x949   :  { %v723_v12 = vpop.permute.xlu1 %722  ;;  %3562 = vset.pattern.permute.xlu1 %v3873_v51 }
 0x9d5   :  { %v628_v53 = vpop.xlane.xlu0 %627 }
 0x9d6   :  { %v629_v56 = vcvt.f32.s32 %v628_v53 }
 0x9d8   :  { %v632_v58 = vadd.s32 %v631_v54, %v629_v56 }
 0x9da   :  { %v633_v59 = vsel %vm35_vm6, %v4022_v57, %v632_v58 }
 0x9db   :  { %635 = vperm.xlu0 %3561, %v633_v59  }
 0x9df   :  { %3617 = vset.pattern.permute.xlu0 %v5196_v55 }
 0xa5a   :  { %v636_v60 = vpop.permute.xlu0 %635 }
 0xa5b   :  { %vm637_vm11 = vcmp.eq.s32.totalorder %v4003_v40, %v636_v60 }
 0xa5c   :  { %v4082_v61 = vsel %vm637_vm11, 1.0, %v5221_v0 }
 0xa5d   :  { %5258 = vst [vmem:[#allocation8_spill] sm:$0xff] %v4082_v61  ;;  %v671_v62 = vpack.c.bf16 %v4082_v61, %v4082_v61 }
 0xa5f   :  { %3378 = vmatmul.mubr.msk.bf16.vlgmr.msra.gmra.mrb[12].mxu1 %vm365_vm8, %v671_v62 }
 0xa60   :  { %3390 = vmatpush3.bf16.msra.mxu1 %v4015_v52  ;;  %3391 = vmatprep.mubr.msk.bf16.mxu1 %vm3867_vm0, %v5221_v0 }
 0xa61   :  { %3403 = vmatprep.subr.bf16.mxu1 %v5221_v0 }
 0xb32   :  { %v709_v1 = vpop.f32.mrb[12].mxu1 }
 0xb33   :  { %v710_v3 = vadd.f32 %v4044_v2, %v709_v1  ;;  %v3379_v4 = vpop.f32.mrb[13].mxu1 }
 0xb34   :  { %v712_v5 = vpop.f32.mrb[14].mxu1 }
 0xb35   :  { %v715_v6 = vadd.f32 %v710_v3, %v4065_v31  ;;  %v3380_v7 = vpop.f32.mrb[15].mxu1 }
 0xb37   :  { %v3162_v8 = vmul.f32 -1.442695, %v715_v6 }
 0xb39   :  { %3701 = vpow2.f32 %v3162_v8 }
 0xb43   :  { %v3702_v9 = vpop.eup %3701 }
 0xb44   :  { %v719_v10 = vadd.f32 1.0, %v3702_v9 }
 0xb46   :  { %3703 = vrcp.f32 %v719_v10 }
 0xb50   :  { %v3704_v11 = vpop.eup %3703 }
 0xb51   :  { %v725_v13 = vmul.f32 %v3704_v11, %v723_v12  ;;  %v732_v17 = vsub.f32 1.0, %v3704_v11  ;;  %v738_v19 = vmul.f32 %v3704_v11, %v4052_v25 }
 0xb53   :  { %727 = vrot.lane.b32.xlu1 %v725_v13, %s3870_s7 }
 0xbc5   :  { %v728_v14 = vpop.permute.xlu1 %727 }
 0xbc6   :  { %v730_v15 = vadd.f32 %v728_v14, %v710_v3 }
 0xbc8   :  { %3705 = vtanh.f32 %v730_v15 }
 0xbd2   :  { %v3706_v16 = vpop.eup %3705 }
 0xbd3   :  { %734 = vrot.lane.b32.xlu1 %v3706_v16, %s3868_s6 }
 0xc45   :  { %v735_v18 = vpop.permute.xlu1 %734 }
 0xc46   :  { %v737_v20 = vmul.f32 %v735_v18, %v732_v17 }
 0xc48   :  { %v4096_v22 = vadd.f32 %v738_v19, %v737_v20 }
 0xc4a   :  { %v740_v23 = vpack.c.bf16 %v4096_v22, %v4096_v22 }
 0xc4c   :  { %742 = vrot.lane.b32.xlu1 %v740_v23, %s3868_s6 }
 0xcbe   :  { %v743_v26 = vpop.permute.xlu1 %742 }
 0xcbf   :  { %3386 = vmatmul.mubr.msk.bf16.vlgmr.msra.gmra.mrb[12].mxu0 %vm5254_vm1, %v743_v26 }
 0xcc0   :  { %3396 = vmatpush3.bf16.msra.mxu0 %v3971_v24  ;;  %3399 = vmatprep.mubr.msk.bf16.mxu0 %vm3867_vm0, %v5221_v0 }
 0xcc1   :  { %3397 = vmatprep.subr.bf16.mxu0 %v5221_v0 }
 0xcc4   :  { %3398 = vmatpush3.bf16.msra.mxu0 %v3977_v27 }
 0xcc5   :  { %3409 = vmatprep.subr.bf16.mxu0 %v5221_v0 }
 0xd92   :  { %v781_v29 = vpop.f32.mrb[12].mxu0 }
 0xd93   :  { %v4109_v30 = vadd.f32 %v3996_v32, %v781_v29  ;;  %v3387_v33 = vpop.f32.mrb[13].mxu0 }
 0xd94   :  { %v784_v35 = vpop.f32.mrb[14].mxu0 }
 0xd95   :  { %v3388_v36 = vpop.f32.mrb[15].mxu0  ;;  %v885_v37 = vsel %vm328_vm3, %v4109_v30, -inf }
 0xd96   :  { %886 = vmax.xlane.f32.xlu1 %v885_v37 }
 0xe23   :  { %v4113_v39 = vpop.xlane.xlu1 %886 }
 0xe24   :  { %vm888_vm12 = vcmp.eq.f32.partialorder %v4109_v30, %v4113_v39 }
 0xe25   :  { %v889_v43 = vsel %vm888_vm12, %v4009_v42, 16 }
 0xe26   :  { %v890_v44 = vsel %vm328_vm3, %v889_v43, 2147483647 }
 0xe27   :  { %v892_v45 = vshra.s32 %v890_v44, 16  ;;  %v891_v47 = vand.u32 65535, %v890_v44 }
 0xe29   :  { %v894_v46 = vcvt.s32.f32 %v892_v45  ;;  %v893_v49 = vcvt.s32.f32 %v891_v47 }
 0xe2b   :  { %895 = vmin.xlane.f32.xlu0 %v894_v46 }
 0xe41   :  { %994 = vrot.lane.b32.xlu0 %v4109_v30, %s3870_s7 }
 0xeb8   :  { %v896_v48 = vpop.xlane.xlu0 %895 }
 0xeb9   :  { %vm897_vm13 = vcmp.eq.f32.partialorder %v894_v46, %v896_v48  ;;  %v902_v53 = vcvt.f32.s32 %v896_v48 }
 0xeba   :  { %v898_v50 = vsel %vm897_vm13, %v893_v49, inf }
 0xebb   :  { %899 = vmin.xlane.f32.xlu1 %v898_v50  ;;  %v903_v56 = vshll.u32 %v902_v53, 16 }
 0xebc   :  { %v995_v14 = vpop.permute.xlu0 %994 }
 0xf48   :  { %v900_v54 = vpop.xlane.xlu1 %899 }
 0xf49   :  { %v901_v58 = vcvt.f32.s32 %v900_v54 }
 0xf4b   :  { %v904_v59 = vadd.s32 %v903_v56, %v901_v58 }
 0xf4d   :  { %v905_v60 = vsel %vm35_vm6, %v4022_v57, %v904_v59  ;;  %v3874_v59 = vmov 67  }
 0xf4e   :  { %907 = vperm.xlu1 %3562, %v905_v60  }
 0xf52   :  { %3563 = vset.pattern.permute.xlu1 %v3874_v59 }
 0xfcd   :  { %v908_v62 = vpop.permute.xlu1 %907 }
 0xfce   :  { %vm909_vm14 = vcmp.eq.s32.totalorder %v4003_v40, %v908_v62 }
 0xfcf   :  { %v4126_v1 = vsel %vm909_vm14, 1.0, %v5221_v0 }
 0xfd0   :  { %v943_v3 = vpack.c.bf16 %v4126_v1, %v4126_v1 }
 0xfd2   :  { %3392 = vmatmul.mubr.msk.bf16.vlgmr.msra.gmra.mrb[16].mxu1 %vm365_vm8, %v943_v3 }
 0xfd3   :  { %3404 = vmatpush3.bf16.msra.mxu1 %v4015_v52  ;;  %3405 = vmatprep.mubr.msk.bf16.mxu1 %vm3867_vm0, %v5221_v0 }
 0xfd4   :  { %3417 = vmatprep.subr.bf16.mxu1 %v5221_v0 }
0x10a5   :  { %v981_v4 = vpop.f32.mrb[16].mxu1 }
0x10a6   :  { %v982_v5 = vadd.f32 %v4044_v2, %v981_v4  ;;  %v3393_v6 = vpop.f32.mrb[17].mxu1 }
0x10a7   :  { %v984_v7 = vpop.f32.mrb[18].mxu1 }
0x10a8   :  { %v987_v8 = vadd.f32 %v982_v5, %v4109_v30  ;;  %v3394_v9 = vpop.f32.mrb[19].mxu1 }
0x10aa   :  { %v3170_v10 = vmul.f32 -1.442695, %v987_v8 }
0x10ac   :  { %3707 = vpow2.f32 %v3170_v10 }
0x10b6   :  { %v3708_v11 = vpop.eup %3707 }
0x10b7   :  { %v991_v12 = vadd.f32 1.0, %v3708_v11 }
0x10b9   :  { %3709 = vrcp.f32 %v991_v12 }
0x10c3   :  { %v3710_v13 = vpop.eup %3709 }
0x10c4   :  { %v997_v15 = vmul.f32 %v3710_v13, %v995_v14  ;;  %v1004_v19 = vsub.f32 1.0, %v3710_v13  ;;  %v1010_v23 = vmul.f32 %v3710_v13, %v4096_v22 }
0x10c6   :  { %999 = vrot.lane.b32.xlu1 %v997_v15, %s3870_s7 }
0x1138   :  { %v1000_v16 = vpop.permute.xlu1 %999 }
0x1139   :  { %v1002_v17 = vadd.f32 %v1000_v16, %v982_v5 }
0x113b   :  { %3711 = vtanh.f32 %v1002_v17 }
0x1145   :  { %v3712_v18 = vpop.eup %3711 }
0x1146   :  { %1006 = vrot.lane.b32.xlu1 %v3712_v18, %s3868_s6 }
0x11b8   :  { %v1007_v20 = vpop.permute.xlu1 %1006 }
0x11b9   :  { %v1009_v26 = vmul.f32 %v1007_v20, %v1004_v19 }
0x11bb   :  { %v4140_v29 = vadd.f32 %v1010_v23, %v1009_v26 }
0x11bd   :  { %v1012_v33 = vpack.c.bf16 %v4140_v29, %v4140_v29 }
0x11bf   :  { %1014 = vrot.lane.b32.xlu0 %v1012_v33, %s3868_s6 }
0x1231   :  { %v1015_v35 = vpop.permute.xlu0 %1014 }
0x1232   :  { %3400 = vmatmul.mubr.msk.bf16.vlgmr.msra.gmra.mrb[16].mxu0 %vm5254_vm1, %v1015_v35 }
0x1233   :  { %3410 = vmatpush3.bf16.msra.mxu0 %v3971_v24  ;;  %3413 = vmatprep.mubr.msk.bf16.mxu0 %vm3867_vm0, %v5221_v0 }
0x1234   :  { %3411 = vmatprep.subr.bf16.mxu0 %v5221_v0 }
0x1237   :  { %3412 = vmatpush3.bf16.msra.mxu0 %v3977_v27 }
0x1238   :  { %3423 = vmatprep.subr.bf16.mxu0 %v5221_v0 }
0x1305   :  { %v1053_v36 = vpop.f32.mrb[16].mxu0 }
0x1306   :  { %v4153_v37 = vadd.f32 %v3996_v32, %v1053_v36  ;;  %v3401_v43 = vpop.f32.mrb[17].mxu0 }
0x1307   :  { %v1056_v44 = vpop.f32.mrb[18].mxu0 }
0x1308   :  { %v3402_v45 = vpop.f32.mrb[19].mxu0  ;;  %v1157_v46 = vsel %vm328_vm3, %v4153_v37, -inf }
0x1309   :  { %1158 = vmax.xlane.f32.xlu1 %v1157_v46 }
0x1396   :  { %v4157_v47 = vpop.xlane.xlu1 %1158 }
0x1397   :  { %vm1160_vm15 = vcmp.eq.f32.partialorder %v4153_v37, %v4157_v47 }
0x1398   :  { %v1161_v48 = vsel %vm1160_vm15, %v4009_v42, 16 }
0x1399   :  { %v1162_v49 = vsel %vm328_vm3, %v1161_v48, 2147483647 }
0x139a   :  { %v1164_v50 = vshra.s32 %v1162_v49, 16  ;;  %v1163_v53 = vand.u32 65535, %v1162_v49 }
0x139c   :  { %v1166_v51 = vcvt.s32.f32 %v1164_v50  ;;  %v1165_v56 = vcvt.s32.f32 %v1163_v53 }
0x139e   :  { %1167 = vmin.xlane.f32.xlu0 %v1166_v51 }
0x142b   :  { %v1168_v54 = vpop.xlane.xlu0 %1167 }
0x142c   :  { %vm1169_vm4 = vcmp.eq.f32.partialorder %v1166_v51, %v1168_v54  ;;  %v1174_v60 = vcvt.f32.s32 %v1168_v54 }
0x142d   :  { %v1170_v58 = vsel %vm1169_vm4, %v1165_v56, inf }
0x142e   :  { %1171 = vmin.xlane.f32.xlu0 %v1170_v58  ;;  %v1175_v3 = vshll.u32 %v1174_v60, 16 }
0x1444   :  { %1266 = vrot.lane.b32.xlu0 %v4153_v37, %s3870_s7 }
0x14bb   :  { %v1172_v62 = vpop.xlane.xlu0 %1171 }
0x14bc   :  { %v1173_v4 = vcvt.f32.s32 %v1172_v62 }
0x14be   :  { %v1176_v5 = vadd.s32 %v1175_v3, %v1173_v4 }
0x14bf   :  { %v1267_v20 = vpop.permute.xlu0 %1266 }
0x14c0   :  { %v1177_v6 = vsel %vm35_vm6, %v4022_v57, %v1176_v5 }
0x14c1   :  { %1179 = vperm.xlu1 %3563, %v1177_v6  }
0x1540   :  { %v1180_v7 = vpop.permute.xlu1 %1179 }
0x1541   :  { %vm1181_vm5 = vcmp.eq.s32.totalorder %v4003_v40, %v1180_v7 }
0x1542   :  { %v4170_v8 = vsel %vm1181_vm5, 1.0, %v5221_v0 }
0x1543   :  { %v1215_v9 = vpack.c.bf16 %v4170_v8, %v4170_v8 }
0x1545   :  { %3406 = vmatmul.mubr.msk.bf16.vlgmr.msra.gmra.mrb[20].mxu1 %vm365_vm8, %v1215_v9 }
0x1546   :  { %3418 = vmatpush3.bf16.msra.mxu1 %v4015_v52  ;;  %3419 = vmatprep.mubr.msk.bf16.mxu1 %vm3867_vm0, %v5221_v0 }
0x1547   :  { %3431 = vmatprep.subr.bf16.mxu1 %v5221_v0 }
0x1618   :  { %v1253_v10 = vpop.f32.mrb[20].mxu1 }
0x1619   :  { %v1254_v11 = vadd.f32 %v4044_v2, %v1253_v10  ;;  %v3407_v12 = vpop.f32.mrb[21].mxu1  ;;  %v3875_v10 = vmov 68  }
0x161a   :  { %v1256_v13 = vpop.f32.mrb[22].mxu1  ;;  %3564 = vset.pattern.permute.xlu1 %v3875_v10 }
0x161b   :  { %v1259_v14 = vadd.f32 %v1254_v11, %v4153_v37  ;;  %v3408_v15 = vpop.f32.mrb[23].mxu1 }
0x161d   :  { %v3178_v16 = vmul.f32 -1.442695, %v1259_v14 }
0x161f   :  { %3713 = vpow2.f32 %v3178_v16 }
0x1629   :  { %v3714_v17 = vpop.eup %3713 }
0x162a   :  { %v1263_v18 = vadd.f32 1.0, %v3714_v17 }
0x162c   :  { %3715 = vrcp.f32 %v1263_v18 }
0x1636   :  { %v3716_v19 = vpop.eup %3715 }
0x1637   :  { %v1269_v23 = vmul.f32 %v3716_v19, %v1267_v20  ;;  %v1276_v36 = vsub.f32 1.0, %v3716_v19  ;;  %v1282_v44 = vmul.f32 %v3716_v19, %v4140_v29 }
0x1639   :  { %1271 = vrot.lane.b32.xlu1 %v1269_v23, %s3870_s7 }
0x16ab   :  { %v1272_v26 = vpop.permute.xlu1 %1271 }
0x16ac   :  { %v1274_v33 = vadd.f32 %v1272_v26, %v1254_v11 }
0x16ae   :  { %3717 = vtanh.f32 %v1274_v33 }
0x16b8   :  { %v3718_v35 = vpop.eup %3717 }
0x16b9   :  { %1278 = vrot.lane.b32.xlu1 %v3718_v35, %s3868_s6 }
0x172b   :  { %v1279_v43 = vpop.permute.xlu1 %1278 }
0x172c   :  { %v1281_v45 = vmul.f32 %v1279_v43, %v1276_v36 }
0x172e   :  { %v4184_v46 = vadd.f32 %v1282_v44, %v1281_v45 }
0x1730   :  { %v1284_v48 = vpack.c.bf16 %v4184_v46, %v4184_v46 }
0x1732   :  { %1286 = vrot.lane.b32.xlu0 %v1284_v48, %s3868_s6 }
0x17a4   :  { %v1287_v49 = vpop.permute.xlu0 %1286 }
0x17a5   :  { %3414 = vmatmul.mubr.msk.bf16.vlgmr.msra.gmra.mrb[20].mxu0 %vm5254_vm1, %v1287_v49 }
0x17a6   :  { %3424 = vmatpush3.bf16.msra.mxu0 %v3971_v24  ;;  %3427 = vmatprep.mubr.msk.bf16.mxu0 %vm3867_vm0, %v5221_v0 }
0x17a7   :  { %3425 = vmatprep.subr.bf16.mxu0 %v5221_v0 }
0x17aa   :  { %3426 = vmatpush3.bf16.msra.mxu0 %v3977_v27 }
0x17ab   :  { %3437 = vmatprep.subr.bf16.mxu0 %v5221_v0 }
0x1878   :  { %v1325_v50 = vpop.f32.mrb[20].mxu0 }
0x1879   :  { %v4197_v51 = vadd.f32 %v3996_v32, %v1325_v50  ;;  %v3415_v53 = vpop.f32.mrb[21].mxu0 }
0x187a   :  { %v1328_v54 = vpop.f32.mrb[22].mxu0 }
0x187b   :  { %5259 = vst [vmem:[#allocation9_spill] sm:$0xff] %v4197_v51  ;;  %v3416_v56 = vpop.f32.mrb[23].mxu0  ;;  %v1429_v58 = vsel %vm328_vm3, %v4197_v51, -inf }
0x187c   :  { %1430 = vmax.xlane.f32.xlu1 %v1429_v58 }
0x1909   :  { %v4201_v59 = vpop.xlane.xlu1 %1430 }
0x190a   :  { %5260 = vst [vmem:[#allocation10_spill] sm:$0xff] %v4201_v59  ;;  %vm1432_vm7 = vcmp.eq.f32.partialorder %v4197_v51, %v4201_v59 }
0x190b   :  { %v1433_v60 = vsel %vm1432_vm7, %v4009_v42, 16 }
0x190c   :  { %v1434_v62 = vsel %vm328_vm3, %v1433_v60, 2147483647 }
0x190d   :  { %v1436_v3 = vshra.s32 %v1434_v62, 16  ;;  %v1435_v5 = vand.u32 65535, %v1434_v62 }
0x190f   :  { %v1438_v4 = vcvt.s32.f32 %v1436_v3  ;;  %v1437_v7 = vcvt.s32.f32 %v1435_v5 }
0x1911   :  { %1439 = vmin.xlane.f32.xlu0 %v1438_v4 }
0x199e   :  { %v1440_v6 = vpop.xlane.xlu0 %1439 }
0x199f   :  { %vm1441_vm9 = vcmp.eq.f32.partialorder %v1438_v4, %v1440_v6  ;;  %v1446_v11 = vcvt.f32.s32 %v1440_v6 }
0x19a0   :  { %v1442_v9 = vsel %vm1441_vm9, %v1437_v7, inf  ;;  %vm545_vm9 = vcmp.eq.s32.totalorder %v4022_v57, 1 }
0x19a1   :  { %1443 = vmin.xlane.f32.xlu0 %v1442_v9  ;;  %v1447_v13 = vshll.u32 %v1446_v11, 16 }
0x19b7   :  { %1538 = vrot.lane.b32.xlu0 %v4197_v51, %s3870_s7 }
0x1a2e   :  { %v1444_v12 = vpop.xlane.xlu0 %1443 }
0x1a2f   :  { %v1445_v14 = vcvt.f32.s32 %v1444_v12 }
0x1a31   :  { %v1448_v15 = vadd.s32 %v1447_v13, %v1445_v14 }
0x1a32   :  { %v1539_v49 = vpop.permute.xlu0 %1538 }
0x1a33   :  { %v1449_v16 = vsel %vm35_vm6, %v4022_v57, %v1448_v15 }
0x1a34   :  { %1451 = vperm.xlu1 %3564, %v1449_v16  }
0x1ab3   :  { %v1452_v17 = vpop.permute.xlu1 %1451 }
0x1ab4   :  { %vm1453_vm10 = vcmp.eq.s32.totalorder %v4003_v40, %v1452_v17 }
0x1ab5   :  { %v4214_v18 = vsel %vm1453_vm10, 1.0, %v5221_v0 }
0x1ab6   :  { %5261 = vst [vmem:[#allocation11_spill] sm:$0xff] %v4214_v18  ;;  %v1487_v19 = vpack.c.bf16 %v4214_v18, %v4214_v18 }
0x1ab8   :  { %3420 = vmatmul.mubr.msk.bf16.vlgmr.msra.gmra.mrb[24].mxu1 %vm365_vm8, %v1487_v19 }
0x1ab9   :  { %3432 = vmatpush3.bf16.msra.mxu1 %v4015_v52  ;;  %3433 = vmatprep.mubr.msk.bf16.mxu1 %vm3867_vm0, %v5221_v0 }
0x1aba   :  { %3445 = vmatprep.subr.bf16.mxu1 %v5221_v0 }
0x1b8b   :  { %v1525_v20 = vpop.f32.mrb[24].mxu1 }
0x1b8c   :  { %v1526_v23 = vadd.f32 %v4044_v2, %v1525_v20  ;;  %v3421_v26 = vpop.f32.mrb[25].mxu1 }
0x1b8d   :  { %v1528_v33 = vpop.f32.mrb[26].mxu1 }
0x1b8e   :  { %v1531_v35 = vadd.f32 %v1526_v23, %v4197_v51  ;;  %v3422_v36 = vpop.f32.mrb[27].mxu1 }
0x1b90   :  { %v3186_v43 = vmul.f32 -1.442695, %v1531_v35  ;;  %v3876_v35 = vmov 69  }
0x1b91   :  { %3565 = vset.pattern.permute.xlu1 %v3876_v35 }
0x1b92   :  { %3719 = vpow2.f32 %v3186_v43 }
0x1b9c   :  { %v3720_v44 = vpop.eup %3719 }
0x1b9d   :  { %v1535_v45 = vadd.f32 1.0, %v3720_v44 }
0x1b9f   :  { %3721 = vrcp.f32 %v1535_v45 }
0x1ba9   :  { %v3722_v48 = vpop.eup %3721 }
0x1baa   :  { %v1541_v50 = vmul.f32 %v3722_v48, %v1539_v49  ;;  %v1548_v58 = vsub.f32 1.0, %v3722_v48  ;;  %v1554_v62 = vmul.f32 %v3722_v48, %v4184_v46 }
0x1bac   :  { %1543 = vrot.lane.b32.xlu1 %v1541_v50, %s3870_s7 }
0x1c1e   :  { %v1544_v53 = vpop.permute.xlu1 %1543 }
0x1c1f   :  { %v1546_v54 = vadd.f32 %v1544_v53, %v1526_v23 }
0x1c21   :  { %3723 = vtanh.f32 %v1546_v54 }
0x1c2b   :  { %v3724_v56 = vpop.eup %3723 }
0x1c2c   :  { %1550 = vrot.lane.b32.xlu1 %v3724_v56, %s3868_s6 }
0x1c9e   :  { %v1551_v60 = vpop.permute.xlu1 %1550 }
0x1c9f   :  { %v1553_v3 = vmul.f32 %v1551_v60, %v1548_v58 }
0x1ca1   :  { %v4228_v4 = vadd.f32 %v1554_v62, %v1553_v3 }
0x1ca3   :  { %v1556_v5 = vpack.c.bf16 %v4228_v4, %v4228_v4 }
0x1ca5   :  { %1558 = vrot.lane.b32.xlu0 %v1556_v5, %s3868_s6 }
0x1d17   :  { %v1559_v6 = vpop.permute.xlu0 %1558 }
0x1d18   :  { %3428 = vmatmul.mubr.msk.bf16.vlgmr.msra.gmra.mrb[24].mxu0 %vm5254_vm1, %v1559_v6 }
0x1d19   :  { %3438 = vmatpush3.bf16.msra.mxu0 %v3971_v24  ;;  %3441 = vmatprep.mubr.msk.bf16.mxu0 %vm3867_vm0, %v5221_v0 }
0x1d1a   :  { %3439 = vmatprep.subr.bf16.mxu0 %v5221_v0 }
0x1d1d   :  { %3440 = vmatpush3.bf16.msra.mxu0 %v3977_v27 }
0x1d1e   :  { %3451 = vmatprep.subr.bf16.mxu0 %v5221_v0 }
0x1deb   :  { %v1597_v7 = vpop.f32.mrb[24].mxu0 }
0x1dec   :  { %v4241_v9 = vadd.f32 %v3996_v32, %v1597_v7  ;;  %v3429_v10 = vpop.f32.mrb[25].mxu0 }
0x1ded   :  { %v1600_v11 = vpop.f32.mrb[26].mxu0 }
0x1dee   :  { %5262 = vst [vmem:[#allocation12_spill] sm:$0xff] %v4241_v9  ;;  %v3430_v12 = vpop.f32.mrb[27].mxu0  ;;  %v1701_v13 = vsel %vm328_vm3, %v4241_v9, -inf }
0x1def   :  { %1702 = vmax.xlane.f32.xlu1 %v1701_v13 }
0x1e7c   :  { %v4245_v14 = vpop.xlane.xlu1 %1702 }
0x1e7d   :  { %5263 = vst [vmem:[#allocation13_spill] sm:$0xff] %v4245_v14  ;;  %vm1704_vm11 = vcmp.eq.f32.partialorder %v4241_v9, %v4245_v14 }
0x1e7e   :  { %v1705_v15 = vsel %vm1704_vm11, %v4009_v42, 16 }
0x1e7f   :  { %v1706_v16 = vsel %vm328_vm3, %v1705_v15, 2147483647 }
0x1e80   :  { %v1708_v17 = vshra.s32 %v1706_v16, 16  ;;  %v1707_v20 = vand.u32 65535, %v1706_v16 }
0x1e82   :  { %v1710_v19 = vcvt.s32.f32 %v1708_v17  ;;  %v1709_v26 = vcvt.s32.f32 %v1707_v20 }
0x1e84   :  { %1711 = vmin.xlane.f32.xlu0 %v1710_v19 }
0x1f11   :  { %v1712_v23 = vpop.xlane.xlu0 %1711 }
0x1f12   :  { %vm1713_vm12 = vcmp.eq.f32.partialorder %v1710_v19, %v1712_v23  ;;  %v1718_v36 = vcvt.f32.s32 %v1712_v23 }
0x1f13   :  { %v1714_v33 = vsel %vm1713_vm12, %v1709_v26, inf  ;;  %vm5219_vm12 = vcmp.gt.s32.totalorder %v4022_v57, 1 }
0x1f14   :  { %1715 = vmin.xlane.f32.xlu0 %v1714_v33  ;;  %v1719_v44 = vshll.u32 %v1718_v36, 16 }
0x1f2a   :  { %1810 = vrot.lane.b32.xlu0 %v4241_v9, %s3870_s7 }
0x1fa1   :  { %v1716_v43 = vpop.xlane.xlu0 %1715 }
0x1fa2   :  { %v1717_v45 = vcvt.f32.s32 %v1716_v43 }
0x1fa4   :  { %v1720_v48 = vadd.s32 %v1719_v44, %v1717_v45 }
0x1fa5   :  { %v1811_v12 = vpop.permute.xlu0 %1810 }
0x1fa6   :  { %v1721_v49 = vsel %vm35_vm6, %v4022_v57, %v1720_v48 }
0x1fa7   :  { %1723 = vperm.xlu1 %3565, %v1721_v49  }
0x2026   :  { %v1724_v50 = vpop.permute.xlu1 %1723 }
0x2027   :  { %vm1725_vm13 = vcmp.eq.s32.totalorder %v4003_v40, %v1724_v50 }
0x2028   :  { %v4258_v53 = vsel %vm1725_vm13, 1.0, %v5221_v0  ;;  %vm384_vm13 = vcmp.gt.s32.totalorder %v4022_v57, 0 }
0x2029   :  { %5264 = vst [vmem:[#allocation14_spill] sm:$0xff] %v4258_v53  ;;  %v1759_v54 = vpack.c.bf16 %v4258_v53, %v4258_v53 }
0x202b   :  { %3434 = vmatmul.mubr.msk.bf16.vlgmr.msra.gmra.mrb[28].mxu1 %vm365_vm8, %v1759_v54 }
0x202c   :  { %3446 = vmatpush3.bf16.msra.mxu1 %v4015_v52  ;;  %3447 = vmatprep.mubr.msk.bf16.mxu1 %vm3867_vm0, %v5221_v0 }
0x202d   :  { %3459 = vmatprep.subr.bf16.mxu1 %v5221_v0 }
0x20fe   :  { %v1797_v56 = vpop.f32.mrb[28].mxu1 }
0x20ff   :  { %v1798_v58 = vadd.f32 %v4044_v2, %v1797_v56  ;;  %v3435_v60 = vpop.f32.mrb[29].mxu1 }
0x2100   :  { %v1800_v62 = vpop.f32.mrb[30].mxu1 }
0x2101   :  { %v1803_v3 = vadd.f32 %v1798_v58, %v4241_v9  ;;  %v3436_v5 = vpop.f32.mrb[31].mxu1 }
0x2102   :  { %v3877_v5 = vmov 70  }
0x2103   :  { %v3194_v6 = vmul.f32 -1.442695, %v1803_v3  ;;  %3566 = vset.pattern.permute.xlu1 %v3877_v5 }
0x2105   :  { %3725 = vpow2.f32 %v3194_v6 }
0x210f   :  { %v3726_v7 = vpop.eup %3725 }
0x2110   :  { %v1807_v10 = vadd.f32 1.0, %v3726_v7 }
0x2112   :  { %3727 = vrcp.f32 %v1807_v10 }
0x211c   :  { %v3728_v11 = vpop.eup %3727 }
0x211d   :  { %v1813_v13 = vmul.f32 %v3728_v11, %v1811_v12  ;;  %v1820_v19 = vsub.f32 1.0, %v3728_v11  ;;  %v1826_v23 = vmul.f32 %v3728_v11, %v4228_v4 }
0x211f   :  { %1815 = vrot.lane.b32.xlu1 %v1813_v13, %s3870_s7 }
0x2191   :  { %v1816_v15 = vpop.permute.xlu1 %1815 }
0x2192   :  { %v1818_v16 = vadd.f32 %v1816_v15, %v1798_v58 }
0x2194   :  { %3729 = vtanh.f32 %v1818_v16 }
0x219e   :  { %v3730_v17 = vpop.eup %3729 }
0x219f   :  { %1822 = vrot.lane.b32.xlu1 %v3730_v17, %s3868_s6 }
0x2211   :  { %v1823_v20 = vpop.permute.xlu1 %1822 }
0x2212   :  { %v1825_v26 = vmul.f32 %v1823_v20, %v1820_v19 }
0x2214   :  { %v4272_v33 = vadd.f32 %v1826_v23, %v1825_v26 }
0x2216   :  { %v1828_v35 = vpack.c.bf16 %v4272_v33, %v4272_v33 }
0x2218   :  { %1830 = vrot.lane.b32.xlu0 %v1828_v35, %s3868_s6 }
0x228a   :  { %v1831_v36 = vpop.permute.xlu0 %1830 }
0x228b   :  { %3442 = vmatmul.mubr.msk.bf16.vlgmr.msra.gmra.mrb[28].mxu0 %vm5254_vm1, %v1831_v36 }
0x228c   :  { %3452 = vmatpush3.bf16.msra.mxu0 %v3971_v24  ;;  %3455 = vmatprep.mubr.msk.bf16.mxu0 %vm3867_vm0, %v5221_v0 }
0x228d   :  { %3453 = vmatprep.subr.bf16.mxu0 %v5221_v0 }
0x2290   :  { %3454 = vmatpush3.bf16.msra.mxu0 %v3977_v27 }
0x2291   :  { %3465 = vmatprep.subr.bf16.mxu0 %v5221_v0 }
0x235e   :  { %v1869_v43 = vpop.f32.mrb[28].mxu0 }
0x235f   :  { %v4285_v44 = vadd.f32 %v3996_v32, %v1869_v43  ;;  %v3443_v45 = vpop.f32.mrb[29].mxu0 }
0x2360   :  { %v1872_v48 = vpop.f32.mrb[30].mxu0 }
0x2361   :  { %5265 = vst [vmem:[#allocation15_spill] sm:$0xff] %v4285_v44  ;;  %v3444_v49 = vpop.f32.mrb[31].mxu0  ;;  %v1973_v50 = vsel %vm328_vm3, %v4285_v44, -inf }
0x2362   :  { %1974 = vmax.xlane.f32.xlu1 %v1973_v50 }
0x23ef   :  { %v4289_v24 = vpop.xlane.xlu1 %1974 }
0x23f0   :  { %5266 = vst [vmem:[#allocation16_spill] sm:$0xff] %v4289_v24  ;;  %vm1976_vm14 = vcmp.eq.f32.partialorder %v4285_v44, %v4289_v24  ;;  %v5280_v24 = vmov 80  }
0x23f1   :  { %v1977_v27 = vsel %vm1976_vm14, %v4009_v42, 16  ;;  %vm815_vm14 = vcmp.eq.s32.totalorder %v4022_v57, 2 }
0x23f2   :  { %v1978_v54 = vsel %vm328_vm3, %v1977_v27, 2147483647 }
0x23f3   :  { %v1980_v56 = vshra.s32 %v1978_v54, 16  ;;  %v1979_v32 = vand.u32 65535, %v1978_v54 }
0x23f5   :  { %v1982_v58 = vcvt.s32.f32 %v1980_v56  ;;  %v1981_v62 = vcvt.s32.f32 %v1979_v32 }
0x23f7   :  { %1983 = vmin.xlane.f32.xlu0 %v1982_v58 }
0x2484   :  { %v1984_v60 = vpop.xlane.xlu0 %1983 }
0x2485   :  { %vm1985_vm15 = vcmp.eq.f32.partialorder %v1982_v58, %v1984_v60  ;;  %v1990_v6 = vcvt.f32.s32 %v1984_v60 }
0x2486   :  { %v1986_v3 = vsel %vm1985_vm15, %v1981_v62, inf  ;;  %vm1087_vm15 = vcmp.eq.s32.totalorder %v4022_v57, 3 }
0x2487   :  { %1987 = vmin.xlane.f32.xlu0 %v1986_v3  ;;  %v1991_v10 = vshll.u32 %v1990_v6, 16 }
0x249d   :  { %2082 = vrot.lane.b32.xlu0 %v4285_v44, %s3870_s7 }
0x2514   :  { %v1988_v7 = vpop.xlane.xlu0 %1987 }
0x2515   :  { %v1989_v11 = vcvt.f32.s32 %v1988_v7 }
0x2517   :  { %v1992_v12 = vadd.s32 %v1991_v10, %v1989_v11  ;;  %v3835_v10 = vld [vmem:[%s5191_s2] ss:$0 sm:$0xff] }
0x2519   :  { %v1993_v13 = vsel %vm35_vm6, %v4022_v57, %v1992_v12 }
0x251a   :  { %1995 = vperm.xlu1 %3566, %v1993_v13  }
0x2599   :  { %v1996_v15 = vpop.permute.xlu1 %1995 }
0x259a   :  { %vm1997_vm4 = vcmp.eq.s32.totalorder %v4003_v40, %v1996_v15 }
0x259b   :  { %v4302_v16 = vsel %vm1997_vm4, 1.0, %v5221_v0 }
0x259c   :  { %5267 = vst [vmem:[#allocation17_spill] sm:$0xff] %v4302_v16  ;;  %v2031_v17 = vpack.c.bf16 %v4302_v16, %v4302_v16 }
0x259e   :  { %3448 = vmatmul.mubr.msk.bf16.vlgmr.msra.gmra.mrb[32].mxu1 %vm365_vm8, %v2031_v17 }
0x259f   :  { %3460 = vmatpush3.bf16.msra.mxu1 %v4015_v52  ;;  %3461 = vmatprep.mubr.msk.bf16.mxu1 %vm3867_vm0, %v5221_v0  ;;  %v2083_v52 = vpop.permute.xlu0 %2082 }
0x25a0   :  { %3473 = vmatprep.subr.bf16.mxu1 %v5221_v0 }
0x2671   :  { %v2069_v19 = vpop.f32.mrb[32].mxu1 }
0x2672   :  { %v2070_v20 = vadd.f32 %v4044_v2, %v2069_v19  ;;  %v3449_v23 = vpop.f32.mrb[33].mxu1 }
0x2673   :  { %v2072_v26 = vpop.f32.mrb[34].mxu1 }
0x2674   :  { %v2075_v35 = vadd.f32 %v2070_v20, %v4285_v44  ;;  %v3450_v36 = vpop.f32.mrb[35].mxu1 }
0x2676   :  { %v3202_v43 = vmul.f32 -1.442695, %v2075_v35 }
0x2678   :  { %3731 = vpow2.f32 %v3202_v43 }
0x2682   :  { %v3732_v45 = vpop.eup %3731 }
0x2683   :  { %v2079_v48 = vadd.f32 1.0, %v3732_v45 }
0x2685   :  { %3733 = vrcp.f32 %v2079_v48 }
0x268f   :  { %v3734_v49 = vpop.eup %3733 }
0x2690   :  { %v2085_v50 = vmul.f32 %v3734_v49, %v2083_v52  ;;  %v2092_v58 = vsub.f32 1.0, %v3734_v49  ;;  %v2098_v60 = vmul.f32 %v3734_v49, %v4272_v33  ;;  %v3878_v49 = vmov 71  }
0x2691   :  { %3567 = vset.pattern.permute.xlu1 %v3878_v49  ;;  %v4361_v49 = vsel %vm545_vm9, 1.0, %v5221_v0 }
0x2692   :  { %2087 = vrot.lane.b32.xlu1 %v2085_v50, %s3870_s7 }
0x2704   :  { %v2088_v27 = vpop.permute.xlu1 %2087 }
0x2705   :  { %v2090_v54 = vadd.f32 %v2088_v27, %v2070_v20 }
0x2707   :  { %3735 = vtanh.f32 %v2090_v54 }
0x2711   :  { %v3736_v56 = vpop.eup %3735 }
0x2712   :  { %2094 = vrot.lane.b32.xlu1 %v3736_v56, %s3868_s6 }
0x2784   :  { %v2095_v32 = vpop.permute.xlu1 %2094 }
0x2785   :  { %v2097_v62 = vmul.f32 %v2095_v32, %v2092_v58 }
0x2787   :  { %v4316_v3 = vadd.f32 %v2098_v60, %v2097_v62 }
0x2789   :  { %v2100_v5 = vpack.c.bf16 %v4316_v3, %v4316_v3 }
0x278b   :  { %2102 = vrot.lane.b32.xlu0 %v2100_v5, %s3868_s6 }
0x27fd   :  { %v2103_v6 = vpop.permute.xlu0 %2102 }
0x27fe   :  { %3456 = vmatmul.mubr.msk.bf16.vlgmr.msra.gmra.mrb[32].mxu0 %vm5254_vm1, %v2103_v6 }
0x27ff   :  { %3469 = vmatprep.mubr.msk.bf16.mxu0 %vm3867_vm0, %v5221_v0 }
0x28d1   :  { %v2141_v7 = vpop.f32.mrb[32].mxu0 }
0x28d2   :  { %v4327_v11 = vadd.f32 %v3835_v10, %v2141_v7  ;;  %v3457_v12 = vpop.f32.mrb[33].mxu0 }
0x28d3   :  { %v2144_v13 = vpop.f32.mrb[34].mxu0 }
0x28d4   :  { %5268 = vst [vmem:[#allocation18_spill] sm:$0xff] %v4327_v11  ;;  %v3458_v15 = vpop.f32.mrb[35].mxu0  ;;  %v2245_v17 = vsel %vm328_vm3, %v4327_v11, -inf }
0x28d5   :  { %2246 = vmax.xlane.f32.xlu1 %v2245_v17 }
0x2962   :  { %v4331_v19 = vpop.xlane.xlu1 %2246 }
0x2963   :  { %5269 = vst [vmem:[#allocation19_spill] sm:$0xff] %v4331_v19  ;;  %vm2248_vm5 = vcmp.eq.f32.partialorder %v4327_v11, %v4331_v19 }
0x2964   :  { %v2249_v20 = vsel %vm2248_vm5, %v4009_v42, 16 }
0x2965   :  { %v2250_v23 = vsel %vm328_vm3, %v2249_v20, 2147483647 }
0x2966   :  { %v2252_v26 = vshra.s32 %v2250_v23, 16  ;;  %v2251_v36 = vand.u32 65535, %v2250_v23 }
0x2968   :  { %v2254_v35 = vcvt.s32.f32 %v2252_v26  ;;  %v2253_v45 = vcvt.s32.f32 %v2251_v36 }
0x296a   :  { %2255 = vmin.xlane.f32.xlu0 %v2254_v35 }
0x29f7   :  { %v2256_v43 = vpop.xlane.xlu0 %2255 }
0x29f8   :  { %vm2257_vm7 = vcmp.eq.f32.partialorder %v2254_v35, %v2256_v43  ;;  %v2262_v52 = vcvt.f32.s32 %v2256_v43  ;;  %v3836_v35 = vld [vmem:[#allocation2 + $0x8] ss:$36 sps:$4 sm:$0xff]  }
0x29f9   :  { %v2258_v48 = vsel %vm2257_vm7, %v2253_v45, inf  ;;  %vm1359_vm7 = vcmp.eq.s32.totalorder %v4022_v57, 4 }
0x29fa   :  { %2259 = vmin.xlane.f32.xlu0 %v2258_v48  ;;  %v2263_v27 = vshll.u32 %v2262_v52, 16  ;;  %v3837_v52 = vld [vmem:[#allocation2 + $0x50] ss:$36 sps:$4 sm:$0xff]  }
0x2a10   :  { %2354 = vrot.lane.b32.xlu0 %v4327_v11, %s3870_s7 }
0x2a14   :  { %2376 = vrot.lane.b32.xlu0 %v3836_v35, %s3879_s13  ;;  %v3140_v35 = vld [vmem:[%s5191_s2 + $0x4] ss:$0 sm:$0xff] }
0x2a87   :  { %v2260_v50 = vpop.xlane.xlu0 %2259 }
0x2a88   :  { %v2261_v42 = vcvt.f32.s32 %v2260_v50 }
0x2a8a   :  { %v2264_v54 = vadd.s32 %v2263_v27, %v2261_v42  ;;  %v358_v42 = vsub.f32 %v3999_v34, %v4007_v41 }
0x2a8b   :  { %v2355_v23 = vpop.permute.xlu0 %2354 }
0x2a8c   :  { %v2265_v56 = vsel %vm35_vm6, %v4022_v57, %v2264_v54  ;;  %vm318_vm6 = vcmp.eq.s32.totalorder %v4022_v57, 0  ;;  %v359_v54 = vmul.f32 1.442695, %v358_v42 }
0x2a8d   :  { %2267 = vperm.xlu1 %3567, %v2265_v56   ;;  %v3149_v48 = vsel %vm318_vm6, 1.0, %v5221_v0 }
0x2a8e   :  { %v3569_v50 = vpack.i.bf16 %v4361_v49, %v3149_v48 }
0x2a8f   :  { %v2377_v27 = vpop.permute.xlu0 %2376 }
0x2a90   :  { %3466 = vmatpush3.bf16.msra.mxu0 %v2377_v27 }
0x2a91   :  { %3467 = vmatprep.subr.bf16.mxu0 %v5221_v0 }
0x2b0c   :  { %v2268_v58 = vpop.permute.xlu1 %2267 }
0x2b0d   :  { %vm2269_vm3 = vcmp.eq.s32.totalorder %v4003_v40, %v2268_v58 }
0x2b0e   :  { %v4344_v32 = vsel %vm2269_vm3, 1.0, %v5221_v0  ;;  %vm1631_vm3 = vcmp.eq.s32.totalorder %v4022_v57, 5 }
0x2b0f   :  { %5270 = vst [vmem:[#allocation20_spill] sm:$0xff] %v4344_v32  ;;  %v2303_v60 = vpack.c.bf16 %v4344_v32, %v4344_v32 }
0x2b11   :  { %3462 = vmatmul.mubr.msk.bf16.vlgmr.msra.gmra.mrb[36].mxu1 %vm365_vm8, %v2303_v60 }
0x2b12   :  { %3477 = vmatprep.mubr.msk.bf16.mxu1 %vm3867_vm0, %v5221_v0 }
0x2be4   :  { %v2341_v62 = vpop.f32.mrb[36].mxu1 }
0x2be5   :  { %v2342_v5 = vadd.f32 %v4044_v2, %v2341_v62  ;;  %v3463_v6 = vpop.f32.mrb[37].mxu1  ;;  %v5193_v2 = vmov 80  }
0x2be6   :  { %v2344_v7 = vpop.f32.mrb[38].mxu1  ;;  %3568 = vset.pattern.permute.xlu1 %v5193_v2 }
0x2be7   :  { %v2347_v10 = vadd.f32 %v2342_v5, %v4327_v11  ;;  %v3464_v12 = vpop.f32.mrb[39].mxu1 }
0x2be8   :  { %v3574_v12 = vpack.i.bf16 %v4082_v61, %v4032_v63  ;;  %v4503_v63 = vsel %vm384_vm13, 1.0, %v5221_v0  ;;  %v4536_v61 = vsel %vm1087_vm15, 1.0, %v5221_v0  ;;  %vm2175_vm15 = vcmp.eq.s32.totalorder %v4022_v57, 7 }
0x2be9   :  { %v3210_v13 = vmul.f32 -1.442695, %v2347_v10 }
0x2beb   :  { %3737 = vpow2.f32 %v3210_v13 }
0x2bf5   :  { %v3738_v15 = vpop.eup %3737 }
0x2bf6   :  { %v2351_v17 = vadd.f32 1.0, %v3738_v15 }
0x2bf8   :  { %3739 = vrcp.f32 %v2351_v17 }
0x2c02   :  { %v3740_v20 = vpop.eup %3739 }
0x2c03   :  { %v2357_v26 = vmul.f32 %v3740_v20, %v2355_v23  ;;  %v2364_v56 = vsub.f32 1.0, %v3740_v20  ;;  %v2370_v60 = vmul.f32 %v3740_v20, %v4316_v3 }
0x2c05   :  { %2359 = vrot.lane.b32.xlu1 %v2357_v26, %s3870_s7 }
0x2c77   :  { %v2360_v36 = vpop.permute.xlu1 %2359 }
0x2c78   :  { %v2362_v43 = vadd.f32 %v2360_v36, %v2342_v5 }
0x2c7a   :  { %3741 = vtanh.f32 %v2362_v43  ;;  %v4404_v43 = vadd.f32 %v3140_v35, %v3991_v28 }
0x2c7b   :  { %3743 = vpow2.f32 %v359_v54 }
0x2c84   :  { %v3742_v45 = vpop.eup %3741 }
0x2c85   :  { %2366 = vrot.lane.b32.xlu1 %v3742_v45, %s3868_s6  ;;  %v3744_v10 = vpop.eup %3743 }
0x2c89   :  { %2378 = vrot.lane.b32.xlu1 %v3837_v52, %s3879_s13 }
0x2c8d   :  { %3570 = vperm.xlu1 %3568, %v3569_v50  }
0x2c91   :  { %3584 = vset.pattern.permute.xlu1 %v5196_v55  ;;  %v4533_v55 = vsel %vm815_vm14, 1.0, %v5221_v0  ;;  %vm1903_vm14 = vcmp.eq.s32.totalorder %v4022_v57, 6 }
0x2cf7   :  { %v2367_v58 = vpop.permute.xlu1 %2366 }
0x2cf8   :  { %v2369_v62 = vmul.f32 %v2367_v58, %v2364_v56 }
0x2cfa   :  { %v4369_v5 = vadd.f32 %v2370_v60, %v2369_v62 }
0x2cfb   :  { %v2379_v6 = vpop.permute.xlu1 %2378 }
0x2cfc   :  { %v2372_v7 = vpack.c.bf16 %v4369_v5, %v4369_v5  ;;  %3468 = vmatpush3.bf16.msra.mxu0 %v2379_v6 }
0x2cfd   :  { %3481 = vmatprep.subr.bf16.mxu0 %v5221_v0 }
0x2cfe   :  { %2374 = vrot.lane.b32.xlu0 %v2372_v7, %s3868_s6 }
0x2d02   :  { %362 = vrot.lane.b32.xlu0 %v3744_v10, %s3871_s10 }
0x2d06   :  { %3575 = vrot.lane.b32.xlu0 %v3574_v12, %s3868_s6 }
0x2d0a   :  { %518 = vrot.lane.b32.xlu0 %v4065_v31, %s3879_s13 }
0x2d0c   :  { %v4416_v28 = vpop.permute.xlu1 %3570 }
0x2d0e   :  { %788 = vrot.lane.b32.xlu0 %v4109_v30, %s3879_s13 }
0x2d12   :  { %1060 = vrot.lane.b32.xlu0 %v4153_v37, %s3879_s13 }
0x2d16   :  { %1332 = vrot.lane.b32.xlu0 %v4197_v51, %s3879_s13 }
0x2d1a   :  { %1604 = vrot.lane.b32.xlu0 %v4241_v9, %s3879_s13 }
0x2d70   :  { %v2375_v13 = vpop.permute.xlu0 %2374 }
0x2d71   :  { %3470 = vmatmul.mubr.msk.bf16.vlgmr.msra.gmra.mrb[36].mxu0 %vm5254_vm1, %v2375_v13 }
0x2d72   :  { %3489 = vmatprep.mubr.msk.bf16.mxu0 %vm3867_vm0, %v5221_v0 }
0x2d74   :  { %v363_v15 = vpop.permute.xlu0 %362 }
0x2d75   :  { %v366_v17 = vsel %vm365_vm8, %v363_v15, 0.0  ;;  %v3573_v15 = vunpack.i.h.bf16 %v4416_v28 }
0x2d76   :  { %367 = vadd.xlane.f32.xlu1 %v366_v17 }
0x2d78   :  { %v4393_v20 = vpop.permute.xlu0 %3575 }
0x2d79   :  { %v3577_v23 = vunpack.i.l.bf16 %v4393_v20 }
0x2d7b   :  { %v376_v26 = vmul.f32 %v3577_v23, %v3999_v34 }
0x2d7c   :  { %v519_v36 = vpop.permute.xlu0 %518 }
0x2d7d   :  { %378 = vrot.lane.b32.xlu0 %v376_v26, %s3871_s10  ;;  %v4409_v45 = vadd.f32 %v519_v36, %v4404_v43  ;;  %v607_v36 = vmul.f32 %v3573_v15, %v4052_v25 }
0x2d7f   :  { %5271 = vst [vmem:[#allocation21_spill] sm:$0xff] %v4409_v45 }
0x2d80   :  { %v4413_v34 = vpop.permute.xlu0 %788 }
0x2d81   :  { %1876 = vrot.lane.b32.xlu0 %v4285_v44, %s3879_s13  ;;  %v3586_v44 = vpack.i.bf16 %v4536_v61, %v4533_v55 }
0x2d84   :  { %v1061_v48 = vpop.permute.xlu0 %1060 }
0x2d85   :  { %v4425_v58 = vadd.f32 %v1061_v48, %v4404_v43 }
0x2d87   :  { %2148 = vrot.lane.b32.xlu1 %v4327_v11, %s3879_s13  ;;  %v5277_v11 = vmov 8  }
0x2d88   :  { %v1333_v52 = vpop.permute.xlu0 %1332 }
0x2d89   :  { %v4433_v6 = vadd.f32 %v1333_v52, %v4404_v43 }
0x2d8b   :  { %523 = vrot.lane.b32.xlu1 %v4409_v45, %s3881_s16 }
0x2d8c   :  { %v1605_v50 = vpop.permute.xlu0 %1604 }
0x2d8d   :  { %v4440_v7 = vadd.f32 %v1605_v50, %v4404_v43 }
0x2def   :  { %v379_v27 = vpop.permute.xlu0 %378 }
0x2df0   :  { %v381_v42 = vsel %vm365_vm8, %v379_v27, 0.0 }
0x2df1   :  { %382 = vadd.xlane.f32.xlu0 %v381_v42 }
0x2df3   :  { %v1877_v10 = vpop.permute.xlu0 %1876 }
0x2df4   :  { %v4445_v12 = vadd.f32 %v1877_v10, %v4404_v43 }
0x2e03   :  { %v4418_v54 = vpop.xlane.xlu1 %367 }
0x2e07   :  { %553 = vrot.lane.b32.xlu0 %v4409_v45, %s3882_s17  ;;  %v4422_v56 = vpop.permute.xlu1 %2148 }
0x2e08   :  { %v4610_v59 = vadd.f32 %v4422_v56, %v4404_v43 }
0x2e0a   :  { %5284 = vst [vmem:[#allocation31_spill] sm:$0xff] %v4610_v59 }
0x2e0b   :  { %1111 = vrot.lane.b32.xlu0 %v4425_v58, %s3883_s18  ;;  %v524_v60 = vpop.permute.xlu1 %523 }
0x2e0c   :  { %v4430_v62 = vmax.f32 %v4409_v45, %v524_v60 }
0x2e0e   :  { %5272 = vst [vmem:[#allocation22_spill] sm:$0xff] %v4430_v62  ;;  %531 = vrot.lane.b32.xlu1 %v4430_v62, %s3883_s18 }
0x2e0f   :  { %1383 = vrot.lane.b32.xlu0 %v4433_v6, %s3883_s18 }
0x2e13   :  { %1655 = vrot.lane.b32.xlu0 %v4440_v7, %s3883_s18 }
0x2e17   :  { %1927 = vrot.lane.b32.xlu0 %v4445_v12, %s3883_s18 }
0x2e44   :  { %v2419_v13 = vpop.f32.mrb[36].mxu0 }
0x2e45   :  { %v4451_v17 = vadd.f32 %v2419_v13, %v4404_v43  ;;  %v3471_v23 = vpop.f32.mrb[37].mxu0 }
0x2e46   :  { %v2422_v26 = vpop.f32.mrb[38].mxu0 }
0x2e47   :  { %5273 = vst [vmem:[#allocation23_spill] sm:$0xff] %v4451_v17  ;;  %2473 = vrot.lane.b32.xlu0 %v4451_v17, %s3883_s18  ;;  %v3472_v35 = vpop.f32.mrb[39].mxu0 }
0x2e4b   :  { %609 = vrot.lane.b32.xlu0 %v607_v36, %s3868_s6 }
0x2e7e   :  { %v4457_v48 = vpop.xlane.xlu0 %382 }
0x2e80   :  { %v532_v52 = vpop.permute.xlu1 %531 }
0x2e81   :  { %v534_v50 = vsub.f32 %v4409_v45, %v532_v52  ;;  %v552_v52 = vsub.f32 1.0, %v4361_v49 }
0x2e82   :  { %v554_v27 = vpop.permute.xlu0 %553 }
0x2e83   :  { %v535_v42 = vmul.f32 1.442695, %v534_v50 }
0x2e85   :  { %3745 = vpow2.f32 %v535_v42  ;;  %v556_v42 = vmul.f32 %v554_v27, %v552_v52 }
0x2e86   :  { %v4460_v60 = vpop.permute.xlu0 %1111 }
0x2e87   :  { %vm1114_vm5 = vcmp.gt.f32.partialorder %v4425_v58, %v4460_v60 }
0x2e88   :  { %v4544_v16 = vsel %vm1114_vm5, 1.0, %v5221_v0  ;;  %v1115_v9 = vsel %vm1114_vm5, 2, %v5277_v11 }
0x2e8a   :  { %v4462_v10 = vpop.permute.xlu0 %1383 }
0x2e8b   :  { %vm1386_vm10 = vcmp.gt.f32.partialorder %v4433_v6, %v4462_v10 }
0x2e8c   :  { %v4474_v23 = vsel %vm1386_vm10, 1.0, %v5221_v0 }
0x2e8e   :  { %v4466_v13 = vpop.permute.xlu0 %1655 }
0x2e8f   :  { %v3746_v15 = vpop.eup %3745  ;;  %vm1658_vm11 = vcmp.gt.f32.partialorder %v4440_v7, %v4466_v13 }
0x2e90   :  { %v4480_v26 = vsel %vm1658_vm11, 1.0, %v5221_v0  ;;  %538 = vrot.lane.b32.xlu1 %v3746_v15, %s3881_s16  ;;  %v4496_v15 = vsel %vm5219_vm12, 1.0, %v5221_v0  ;;  %v1659_v53 = vsel %vm1658_vm11, 4, %v5277_v11 }
0x2e92   :  { %v4571_v14 = vpop.permute.xlu0 %1927 }
0x2e94   :  { %548 = vrot.lane.b32.xlu1 %v4409_v45, %s3884_s19 }
0x2f02   :  { %v4487_v36 = vpop.permute.xlu1 %538 }
0x2f03   :  { %5274 = vst [vmem:[#allocation24_spill] sm:$0xff] %v4487_v36 }
0x2f06   :  { %v549_v50 = vpop.permute.xlu1 %548 }
0x2f07   :  { %v551_v2 = vmul.f32 %v4361_v49, %v549_v50  ;;  %v3579_v49 = vpack.i.bf16 %v4496_v15, %v4503_v63  ;;  %v5203_v50 = vmov 8  }
0x2f09   :  { %v557_v35 = vadd.f32 %v556_v42, %v551_v2  ;;  %v4513_v2 = vadd.f32 %v4413_v34, %v4404_v43 }
0x2f0b   :  { %559 = vrot.lane.b32.xlu1 %v557_v35, %s3886_s20 }
0x2f0f   :  { %3580 = vrot.lane.b32.xlu1 %v3579_v49, %s3887_s21 }
0x2f13   :  { %569 = vrot.lane.b32.xlu1 %v4409_v45, %s3883_s18 }
0x2f17   :  { %839 = vrot.lane.b32.xlu1 %v4513_v2, %s3883_s18 }
0x2f7d   :  { %v4517_v27 = vpop.permute.xlu1 %559 }
0x2f7e   :  { %5275 = vst [vmem:[#allocation25_spill] sm:$0xff] %v4517_v27 }
0x2f81   :  { %v4519_v52 = vpop.permute.xlu1 %3580 }
0x2f82   :  { %5276 = vst [vmem:[#allocation26_spill] sm:$0xff] %v4519_v52  ;;  %v640_v52 = vsub.f32 %v4065_v31, %v4069_v38 }
0x2f84   :  { %v641_v51 = vmul.f32 1.442695, %v640_v52 }
0x2f85   :  { %v570_v35 = vpop.permute.xlu1 %569 }
0x2f86   :  { %vm572_vm4 = vcmp.gt.f32.partialorder %v4409_v45, %v570_v35  ;;  %3747 = vpow2.f32 %v641_v51 }
0x2f87   :  { %v3157_v34 = vsel %vm572_vm4, 1.0, %v5221_v0  ;;  %v573_v42 = vsel %vm572_vm4, 0, %v5203_v50 }
0x2f88   :  { %v580_v49 = vsub.f32 1.0, %v3157_v34  ;;  %v574_v50 = vsel %vm572_vm4, %v573_v42, 8  ;;  %v4565_v42 = vsel %vm1631_vm3, 1.0, %v5221_v0  ;;  %v3602_v52 = vpack.i.bf16 %v3157_v34, %v3157_v34 }
0x2f89   :  { %v840_v40 = vpop.permute.xlu1 %839  ;;  %5279 = vst [vmem:[#allocation28_spill] sm:$0xff] %v4565_v42 }
0x2f8a   :  { %vm842_vm6 = vcmp.gt.f32.partialorder %v4513_v2, %v840_v40  ;;  %583 = vperm.xlu1 %3584, %v580_v49   ;;  %v4562_v49 = vsel %vm1359_vm7, 1.0, %v5221_v0  ;;  %vm1930_vm7 = vcmp.gt.f32.partialorder %v4445_v12, %v4571_v14 }
0x2f8b   :  { %v4552_v32 = vsel %vm842_vm6, 1.0, %v5221_v0  ;;  %v843_v19 = vsel %vm842_vm6, 1, %v5277_v11  ;;  %5278 = vst [vmem:[#allocation27_spill] sm:$0xff] %v4562_v49  ;;  %v1387_v0 = vsel %vm1386_vm10, 3, %v5277_v11 }
0x2f8c   :  { %vm844_vm9 = vcmp.lt.s32.totalorder %v574_v50, %v843_v19 }
0x2f8d   :  { %v845_v27 = vsel %vm844_vm9, %v574_v50, %v843_v19  ;;  %v3591_v19 = vpack.i.bf16 %v4565_v42, %v4562_v49  ;;  %v5281_v50 = vmov 0.0   ;;  %v1931_v42 = vsel %vm1930_vm7, 5, %v5277_v11 }
0x2f8e   :  { %vm1116_vm12 = vcmp.lt.s32.totalorder %v845_v27, %v1115_v9  ;;  %3585 = vset.pattern.permute.xlu1 %v5280_v24  ;;  %v4587_v62 = vsel %vm1903_vm14, 1.0, %v5281_v50  ;;  %v4590_v24 = vsel %vm2175_vm15, 1.0, %v5281_v50 }
0x2f8f   :  { %v1117_v36 = vsel %vm1116_vm12, %v845_v27, %v1115_v9  ;;  %3587 = vperm.xlu1 %3585, %v3586_v44   ;;  %5282 = vst [vmem:[#allocation29_spill] sm:$0xff] %v4587_v62  ;;  %5283 = vst [vmem:[#allocation30_spill] sm:$0xff] %v4590_v24  ;;  %v5243_v44 = vmov 0   ;;  %v3596_v18 = vpack.i.bf16 %v4590_v24, %v4587_v62 }
0x2f90   :  { %vm1388_vm3 = vcmp.lt.s32.totalorder %v1117_v36, %v1387_v0  ;;  %v575_v27 = vsel %vm572_vm4, 1, %v5243_v44  ;;  %v1118_v40 = vsel %vm1114_vm5, 1, %v5243_v44  ;;  %v3748_v51 = vpop.eup %3747 }
0x2f91   :  { %v1389_v9 = vsel %vm1388_vm3, %v1117_v36, %v1387_v0  ;;  %v846_v0 = vsel %vm842_vm6, 1, %v5243_v44  ;;  %v594_v36 = vmul.u32 2, %v575_v27 }
0x2f92   :  { %vm1660_vm12 = vcmp.lt.s32.totalorder %v1389_v9, %v1659_v53 }
0x2f93   :  { %3592 = vperm.xlu1 %3585, %v3591_v19   ;;  %v1661_v49 = vsel %vm1660_vm12, %v1389_v9, %v1659_v53  ;;  %v848_v45 = vadd.s32 %v846_v0, %v594_v36  ;;  %v5285_v53 = vmov 1   ;;  %v1662_v36 = vsel %vm1658_vm11, 1, %v5243_v44 }
0x2f94   :  { %vm1932_vm9 = vcmp.lt.s32.totalorder %v1661_v49, %v1931_v42 }
0x2f95   :  { %v1933_v35 = vsel %vm1932_vm9, %v1661_v49, %v1931_v42  ;;  %v866_v19 = vmul.u32 2, %v848_v45  ;;  %vm849_vm4 = vcmp.eq.s32.totalorder %v848_v45, 1  ;;  %v1390_v45 = vsel %vm1386_vm10, 1, %v5243_v44 }
0x2f97   :  { %3597 = vperm.xlu1 %3585, %v3596_v18   ;;  %v1120_v49 = vadd.s32 %v1118_v40, %v866_v19  ;;  %v3166_v18 = vsel %vm849_vm4, 1.0, %v5281_v50  ;;  %vm2513_vm4 = vcmask 1043456  }
0x2f98   :  { %v852_v43 = vsub.f32 1.0, %v3166_v18 }
0x2f99   :  { %vm1121_vm6 = vcmp.eq.s32.totalorder %v1120_v49, 1  ;;  %v1138_v9 = vmul.u32 2, %v1120_v49 }
0x2f9a   :  { %v3174_v56 = vsel %vm1121_vm6, 1.0, %v5281_v50  ;;  %vm937_vm6 = vcmp.gt.s32.totalorder %v4022_v57, 2 }
0x2f9b   :  { %2199 = vrot.lane.b32.xlu1 %v4610_v59, %s3883_s18  ;;  %v3607_v42 = vpack.i.bf16 %v3174_v56, %v3166_v18  ;;  %v1124_v34 = vsub.f32 1.0, %v3174_v56  ;;  %v1392_v60 = vadd.s32 %v1390_v45, %v1138_v9 }
0x2f9c   :  { %3601 = vset.pattern.permute.xlu1 %v5285_v53 }
0x2f9d   :  { %v1410_v0 = vmul.u32 2, %v1392_v60  ;;  %vm1393_vm5 = vcmp.eq.s32.totalorder %v1392_v60, 1  ;;  %v4645_v60 = vsel %vm1930_vm7, 1.0, %v5281_v50 }
0x2f9e   :  { %v3182_v18 = vsel %vm1393_vm5, 1.0, %v5281_v50  ;;  %5287 = vst [vmem:[#allocation33_spill] sm:$0xff] %v4645_v60  ;;  %vm1481_vm5 = vcmp.gt.s32.totalorder %v4022_v57, 4 }
0x2f9f   :  { %3603 = vperm.xlu1 %3601, %v3602_v52   ;;  %v1664_v40 = vadd.s32 %v1662_v36, %v1410_v0  ;;  %v1396_v10 = vsub.f32 1.0, %v3182_v18 }
0x2fa1   :  { %vm1665_vm10 = vcmp.eq.s32.totalorder %v1664_v40, 1  ;;  %v1682_v45 = vmul.u32 2, %v1664_v40 }
0x2fa2   :  { %v3190_v56 = vsel %vm1665_vm10, 1.0, %v5281_v50  ;;  %vm1753_vm10 = vcmp.gt.s32.totalorder %v4022_v57, 5 }
0x2fa3   :  { %644 = vrot.lane.b32.xlu1 %v3748_v51, %s3871_s10 }
0x2fa7   :  { %855 = vperm.xlu1 %3601, %v852_v43  }
0x2fab   :  { %3608 = vperm.xlu1 %3601, %v3607_v42   ;;  %v4636_v42 = vpop.permute.xlu0 %2473 }
0x2fac   :  { %5286 = vst [vmem:[#allocation32_spill] sm:$0xff] %v4636_v42  ;;  %vm2476_vm11 = vcmp.gt.f32.partialorder %v4451_v17, %v4636_v42 }
0x2faf   :  { %1127 = vperm.xlu1 %3601, %v1124_v34   ;;  %v3612_v34 = vpack.i.bf16 %v3190_v56, %v3182_v18  ;;  %v2477_v18 = vsel %vm2476_vm11, 7, %v5277_v11 }
0x3009   :  { %v4626_v27 = vpop.permute.xlu1 %583 }
0x300e   :  { %v3588_v19 = vpop.permute.xlu1 %3587 }
0x300f   :  { %v3589_v52 = vunpack.i.l.bf16 %v3588_v19  ;;  %v3590_v13 = vunpack.i.h.bf16 %v3588_v19 }
0x3011   :  { %v879_v49 = vmul.f32 %v3589_v52, %v4096_v22  ;;  %v1151_v19 = vmul.f32 %v3590_v13, %v4140_v29 }
0x3012   :  { %v3593_v51 = vpop.permute.xlu1 %3592 }
0x3013   :  { %881 = vrot.lane.b32.xlu1 %v879_v49, %s3868_s6  ;;  %v3594_v52 = vunpack.i.l.bf16 %v3593_v51  ;;  %v1934_v49 = vsel %vm1930_vm7, 1, %v5243_v44  ;;  %v3595_v40 = vunpack.i.h.bf16 %v3593_v51 }
0x3014   :  { %v1936_v24 = vadd.s32 %v1934_v49, %v1682_v45 }
0x3015   :  { %v1423_v62 = vmul.f32 %v3594_v52, %v4184_v46 }
0x3016   :  { %v3598_v43 = vpop.permute.xlu1 %3597  ;;  %vm1937_vm7 = vcmp.eq.s32.totalorder %v1936_v24, 1 }
0x3017   :  { %1399 = vperm.xlu1 %3601, %v1396_v10  }
0x301a   :  { %v2200_v9 = vpop.permute.xlu1 %2199 }
0x301b   :  { %vm2202_vm14 = vcmp.gt.f32.partialorder %v4610_v59, %v2200_v9  ;;  %3613 = vperm.xlu1 %3601, %v3612_v34  }
0x301c   :  { %v4650_v0 = vsel %vm2202_vm14, 1.0, %v5281_v50  ;;  %v2203_v36 = vsel %vm2202_vm14, 6, %v5277_v11  ;;  %v1695_v11 = vmul.f32 %v3595_v40, %v4228_v4  ;;  %v2206_v51 = vsel %vm2202_vm14, 1, %v5243_v44 }
0x301d   :  { %5288 = vst [vmem:[#allocation34_spill] sm:$0xff] %v4650_v0  ;;  %vm2204_vm15 = vcmp.lt.s32.totalorder %v1933_v35, %v2203_v36  ;;  %vm5307_vm14 = vcmp.gt.s32.totalorder %v4022_v57, 1 }
0x301e   :  { %v2205_v10 = vsel %vm2204_vm15, %v1933_v35, %v2203_v36  ;;  %v4666_v34 = vpop.permute.xlu1 %3603  ;;  %v3198_v35 = vsel %vm1937_vm7, 1.0, %v5281_v50  ;;  %v3599_v36 = vunpack.i.l.bf16 %v3598_v43  ;;  %vm2297_vm15 = vcmp.gt.s32.totalorder %v4022_v57, 7 }
0x301f   :  { %5289 = vst [vmem:[#allocation35_spill] sm:$0xff] %v4666_v34  ;;  %vm2478_vm3 = vcmp.lt.s32.totalorder %v2205_v10, %v2477_v18  ;;  %1153 = vrot.lane.b32.xlu1 %v1151_v19, %s3868_s6  ;;  %v1940_v45 = vsub.f32 1.0, %v3198_v35  ;;  %v1954_v19 = vmul.u32 2, %v1936_v24 }
0x3020   :  { %v4669_v13 = vsel %vm2478_vm3, %v2205_v10, %v2477_v18  ;;  %v2480_v18 = vsel %vm2476_vm11, 1, %v5243_v44  ;;  %v3681_v10 = vld [vmem:[#allocation2 + $0x14] ss:$36 sps:$4 sm:$0xff]  }
0x3021   :  { %5290 = vst [vmem:[#allocation36_spill] sm:$0xff] %v4669_v13  ;;  %v2208_v52 = vadd.s32 %v2206_v51, %v1954_v19  ;;  %3474 = vmatpush3.bf16.msra.mxu1 %v3681_v10 }
0x3022   :  { %v645_v60 = vpop.permute.xlu1 %644  ;;  %3475 = vmatprep.subr.bf16.mxu1 %v5281_v50 }
0x3023   :  { %1425 = vrot.lane.b32.xlu1 %v1423_v62, %s3868_s6  ;;  %v647_v14 = vsel %vm365_vm8, %v645_v60, 0.0  ;;  %v3600_v62 = vunpack.i.h.bf16 %v3598_v43  ;;  %v1967_v60 = vmul.f32 %v3599_v36, %v4272_v33  ;;  %vm2209_vm12 = vcmp.eq.s32.totalorder %v2208_v52, 1 }
0x3024   :  { %648 = vadd.xlane.f32.xlu0 %v647_v14  ;;  %v2226_v49 = vmul.u32 2, %v2208_v52  ;;  %v3206_v9 = vsel %vm2209_vm12, 1.0, %v5281_v50  ;;  %v1668_v43 = vsub.f32 1.0, %v3190_v56  ;;  %v3578_v56 = vunpack.i.h.bf16 %v4393_v20 }
0x3025   :  { %v2239_v40 = vmul.f32 %v3600_v62, %v4316_v3  ;;  %v2212_v14 = vsub.f32 1.0, %v3206_v9  ;;  %v3572_v20 = vunpack.i.l.bf16 %v4416_v28 }
0x3026   :  { %v2482_v24 = vadd.s32 %v2480_v18, %v2226_v49  ;;  %v657_v51 = vmul.f32 %v3578_v56, %v4065_v31  ;;  %v856_v36 = vpop.permute.xlu1 %855  ;;  %v3605_v18 = vunpack.i.l.bf16 %v4666_v34 }
0x3027   :  { %1697 = vrot.lane.b32.xlu1 %v1695_v11, %s3868_s6  ;;  %v3682_v11 = vld [vmem:[#allocation2 + $0x5c] ss:$36 sps:$4 sm:$0xff]  }
0x3028   :  { %vm2483_vm9 = vcmp.eq.s32.totalorder %v2482_v24, 1  ;;  %3476 = vmatpush3.bf16.msra.mxu1 %v3682_v11 }
0x3029   :  { %3493 = vmatprep.subr.bf16.mxu1 %v5281_v50 }
0x302a   :  { %v3609_v19 = vpop.permute.xlu1 %3608 }
0x302b   :  { %1943 = vperm.xlu1 %3601, %v1940_v45   ;;  %v3610_v24 = vunpack.i.l.bf16 %v3609_v19  ;;  %v3611_v42 = vunpack.i.h.bf16 %v3609_v19 }
0x302e   :  { %v1128_v52 = vpop.permute.xlu1 %1127 }
0x302f   :  { %1949 = vperm.xlu1 %3601, %v3198_v35   ;;  %v3214_v35 = vsel %vm2483_vm9, 1.0, %v5281_v50 }
0x3030   :  { %v2486_v45 = vsub.f32 1.0, %v3214_v35 }
0x3033   :  { %1969 = vrot.lane.b32.xlu1 %v1967_v60, %s3868_s6 }
0x3037   :  { %2241 = vrot.lane.b32.xlu1 %v2239_v40, %s3868_s6 }
0x303a   :  { %1671 = vperm.xlu0 %3617, %v1668_v43   ;;  %v586_v43 = vmul.f32 0.0, %v4626_v27  ;;  %v1136_v27 = vmul.f32 %v3611_v42, %v4140_v29 }
0x303b   :  { %2215 = vperm.xlu1 %3601, %v2212_v14   ;;  %v610_v14 = vpop.permute.xlu0 %609 }
0x303e   :  { %793 = vrot.lane.b32.xlu0 %v4513_v2, %s3881_s16 }
0x303f   :  { %2221 = vperm.xlu1 %3601, %v3206_v9   ;;  %v592_v9 = vmul.f32 %v3605_v18, %v4052_v25 }
0x3041   :  { %v593_v11 = vadd.f32 %v592_v9, %v586_v43 }
0x3043   :  { %2489 = vperm.xlu1 %3601, %v2486_v45   ;;  %v326_v45 = vmul.f32 %v3572_v20, %v3969_v21  ;;  %v858_v56 = vmul.f32 %v856_v36, %v593_v11 }
0x3045   :  { %v612_v44 = vadd.f32 %v610_v14, %v326_v45 }
0x3047   :  { %2495 = vperm.xlu1 %3601, %v3214_v35   ;;  %v864_v35 = vmul.f32 %v3610_v24, %v4096_v22 }
0x3049   :  { %v865_v13 = vadd.f32 %v864_v35, %v858_v56  ;;  %v3685_v35 = vld [vmem:[#allocation2 + $0xac] ss:$36 sps:$4 sm:$0xff]  }
0x304b   :  { %659 = vrot.lane.b32.xlu1 %v657_v51, %s3871_s10  ;;  %v1130_v18 = vmul.f32 %v1128_v52, %v865_v13 }
0x304d   :  { %v1137_v9 = vadd.f32 %v1136_v27, %v1130_v18  ;;  %v3686_v18 = vld [vmem:[#allocation2 + $0xf4] ss:$36 sps:$4 sm:$0xff]  }
0x3085   :  { %v882_v62 = vpop.permute.xlu1 %881 }
0x3086   :  { %v884_v34 = vadd.f32 %v882_v62, %v612_v44 }
0x3096   :  { %v1400_v60 = vpop.permute.xlu1 %1399 }
0x3097   :  { %v1402_v20 = vmul.f32 %v1400_v60, %v1137_v9 }
0x309a   :  { %v3614_v49 = vpop.permute.xlu1 %3613 }
0x309b   :  { %v3615_v53 = vunpack.i.l.bf16 %v3614_v49  ;;  %v3616_v43 = vunpack.i.h.bf16 %v3614_v49 }
0x309d   :  { %v1408_v22 = vmul.f32 %v3615_v53, %v4184_v46  ;;  %v1680_v52 = vmul.f32 %v3616_v43, %v4228_v4  ;;  %v3684_v4 = vld [vmem:[#allocation2 + $0x64] ss:$36 sps:$4 sm:$0xff]  }
0x309e   :  { %v1154_v40 = vpop.permute.xlu1 %1153  ;;  %v3688_v43 = vld [vmem:[#allocation2 + $0x60] ss:$36 sps:$4 sm:$0xff]  }
0x309f   :  { %v1156_v25 = vadd.f32 %v1154_v40, %v884_v34  ;;  %v1409_v19 = vadd.f32 %v1408_v22, %v1402_v20  ;;  %v3683_v40 = vld [vmem:[#allocation2 + $0x1c] ss:$36 sps:$4 sm:$0xff]  }
0x30a0   :  { %v3687_v20 = vld [vmem:[#allocation2 + $0x18] ss:$36 sps:$4 sm:$0xff]  }
0x30a1   :  { %3482 = vmatpush3.bf16.msra.mxu0 %v3687_v20 }
0x30a2   :  { %v1426_v10 = vpop.permute.xlu1 %1425  ;;  %3483 = vmatprep.subr.bf16.mxu0 %v5281_v50 }
0x30a3   :  { %v1428_v28 = vadd.f32 %v1426_v10, %v1156_v25 }
0x30a5   :  { %3484 = vmatpush3.bf16.msra.mxu0 %v3688_v43 }
0x30a6   :  { %v1698_v31 = vpop.permute.xlu1 %1697  ;;  %3485 = vmatprep.subr.bf16.mxu0 %v5281_v50 }
0x30a7   :  { %v1700_v59 = vadd.f32 %v1698_v31, %v1428_v28 }
0x30aa   :  { %v1944_v51 = vpop.permute.xlu1 %1943 }
0x30ae   :  { %v1950_v0 = vpop.permute.xlu1 %1949 }
0x30b1   :  { %v4705_v24 = vpop.xlane.xlu0 %648 }
0x30b2   :  { %v1970_v17 = vpop.permute.xlu1 %1969 }
0x30b3   :  { %v1972_v36 = vadd.f32 %v1970_v17, %v1700_v59  ;;  %v1952_v59 = vmul.f32 %v1950_v0, %v4272_v33 }
0x30b6   :  { %v2242_v14 = vpop.permute.xlu1 %2241 }
0x30b7   :  { %v2244_v44 = vadd.f32 %v2242_v14, %v1972_v36  ;;  %v3689_v14 = vld [vmem:[#allocation2 + $0xa8] ss:$36 sps:$4 sm:$0xff]  }
0x30b8   :  { %3486 = vmatpush3.bf16.msra.mxu0 %v3689_v14 }
0x30b9   :  { %v2511_v34 = vrot.slane %v2244_v44, 4  ;;  %v1672_v13 = vpop.permute.xlu0 %1671  ;;  %3487 = vmatprep.subr.bf16.mxu0 %v5281_v50 }
0x30ba   :  { %v1674_v62 = vmul.f32 %v1672_v13, %v1409_v19  ;;  %v2216_v29 = vpop.permute.xlu1 %2215 }
0x30bb   :  { %v2514_v42 = vsel %vm2513_vm4, %v3969_v21, %v2511_v34 }
0x30bc   :  { %v2519_v46 = vpack.c.bf16 %v2514_v42, %v2514_v42  ;;  %v1681_v53 = vadd.f32 %v1680_v52, %v1674_v62 }
0x30bd   :  { %v794_v10 = vpop.permute.xlu0 %793 }
0x30be   :  { %v1946_v17 = vmul.f32 %v1944_v51, %v1681_v53  ;;  %v4712_v60 = vmax.f32 %v4513_v2, %v794_v10  ;;  %v2222_v49 = vpop.permute.xlu1 %2221  ;;  %3478 = vmatmul.mubr.msk.bf16.vlgmr.msra.gmra.mrb[40].mxu1 %vm5254_vm1, %v2519_v46 }
0x30bf   :  { %3494 = vmatpush3.bf16.msra.mxu1 %v3683_v40  ;;  %3501 = vmatprep.mubr.msk.bf16.mxu1 %vm3867_vm0, %v5281_v50  ;;  %v2224_v33 = vmul.f32 %v2222_v49, %v4316_v3  ;;  %v3216_v40 = vld [vmem:[%s5191_s2 + $0x5] ss:$0 sm:$0xff] }
0x30c0   :  { %v1953_v31 = vadd.f32 %v1952_v59, %v1946_v17  ;;  %801 = vrot.lane.b32.xlu0 %v4712_v60, %s3883_s18  ;;  %3495 = vmatprep.subr.bf16.mxu1 %v5281_v50 }
0x30c2   :  { %v2218_v11 = vmul.f32 %v2216_v29, %v1953_v31  ;;  %v2490_v0 = vpop.permute.xlu1 %2489 }
0x30c3   :  { %3496 = vmatpush3.bf16.msra.mxu1 %v3684_v4  ;;  %v3691_v4 = vld [vmem:[#allocation2 + $0x20] ss:$36 sps:$4 sm:$0xff]  }
0x30c4   :  { %v2225_v45 = vadd.f32 %v2224_v33, %v2218_v11  ;;  %3497 = vmatprep.subr.bf16.mxu1 %v5281_v50  ;;  %v3692_v11 = vld [vmem:[#allocation2 + $0x68] ss:$36 sps:$4 sm:$0xff]   ;;  %v3693_v33 = vld [vmem:[#allocation2 + $0xb0] ss:$36 sps:$4 sm:$0xff]  }
0x30c6   :  { %v2492_v56 = vmul.f32 %v2490_v0, %v2225_v45  ;;  %v2496_v51 = vpop.permute.xlu1 %2495  ;;  %v3231_v0 = vld [vmem:[%s5191_s2 + $0x7] ss:$0 sm:$0xff] }
0x30c7   :  { %v2498_v25 = vmul.f32 %v2496_v51, %v4369_v5  ;;  %3498 = vmatpush3.bf16.msra.mxu1 %v3685_v35  ;;  %v3618_v5 = vpack.i.bf16 %v4170_v8, %v4126_v1  ;;  %v3694_v35 = vld [vmem:[#allocation2 + $0xf8] ss:$36 sps:$4 sm:$0xff]  }
0x30c8   :  { %3499 = vmatprep.subr.bf16.mxu1 %v5281_v50 }
0x30c9   :  { %v2499_v28 = vadd.f32 %v2498_v25, %v2492_v56 }
0x30ca   :  { %v660_v27 = vpop.permute.xlu1 %659 }
0x30cb   :  { %v2755_v9 = vrot.slane %v2499_v28, 4  ;;  %v662_v22 = vsel %vm365_vm8, %v660_v27, 0.0  ;;  %3500 = vmatpush3.bf16.msra.mxu1 %v3686_v18 }
0x30cc   :  { %663 = vadd.xlane.f32.xlu1 %v662_v22 }
0x30cd   :  { %v2757_v3 = vsel %vm5254_vm1, %v3969_v21, %v2755_v9  ;;  %v3690_v21 = vld [vmem:[#allocation2 + $0xf0] ss:$36 sps:$4 sm:$0xff]   ;;  %v912_v9 = vsub.f32 %v4109_v30, %v4113_v39 }
0x30ce   :  { %v2766_v36 = vpack.c.bf16 %v2757_v3, %v2757_v3  ;;  %3488 = vmatpush3.bf16.msra.mxu0 %v3690_v21 }
0x30cf   :  { %3505 = vmatprep.subr.bf16.mxu0 %v5281_v50  ;;  %v913_v3 = vmul.f32 1.442695, %v912_v9 }
0x30d0   :  { %3502 = vmatmul.mubr.msk.bf16.vlgmr.msra.gmra.mrb[44].mxu1 %vm5253_vm2, %v2766_v36 }
0x30dd   :  { %3619 = vrot.lane.b32.xlu1 %v3618_v5, %s3868_s6  ;;  %v822_v5 = vsub.f32 1.0, %v4533_v55 }
0x3132   :  { %v802_v44 = vpop.permute.xlu0 %801 }
0x3133   :  { %v804_v19 = vsub.f32 %v4513_v2, %v802_v44 }
0x3135   :  { %v805_v34 = vmul.f32 1.442695, %v804_v19 }
0x3137   :  { %3749 = vpow2.f32 %v805_v34 }
0x3138   :  { %3751 = vpow2.f32 %v913_v3 }
0x3141   :  { %v3750_v13 = vpop.eup %3749 }
0x3142   :  { %808 = vrot.lane.b32.xlu0 %v3750_v13, %s3881_s16  ;;  %v3752_v44 = vpop.eup %3751 }
0x3146   :  { %818 = vrot.lane.b32.xlu0 %v4513_v2, %s3884_s19 }
0x314a   :  { %823 = vrot.lane.b32.xlu0 %v4513_v2, %s3882_s17 }
0x3159   :  { %v4741_v52 = vpop.xlane.xlu1 %663 }
0x315d   :  { %v4743_v62 = vpop.permute.xlu1 %3619 }
0x315e   :  { %v3621_v29 = vunpack.i.l.bf16 %v4743_v62 }
0x3160   :  { %v929_v42 = vmul.f32 %v3621_v29, %v4109_v30 }
0x3162   :  { %931 = vrot.lane.b32.xlu1 %v929_v42, %s3871_s10 }
0x3191   :  { %v2574_v46 = vpop.f32.mrb[40].mxu1 }
0x3192   :  { %v2575_v53 = vadd.f32 %v3216_v40, %v2574_v46  ;;  %v3479_v10 = vpop.f32.mrb[41].mxu1 }
0x3193   :  { %v2577_v59 = vpop.f32.mrb[42].mxu1 }
0x3194   :  { %v2580_v17 = vmax.f32 %v2575_v53, 0.0  ;;  %v3480_v49 = vpop.f32.mrb[43].mxu1 }
0x3196   :  { %v2589_v31 = vpack.c.bf16 %v2580_v17, %v2580_v17 }
0x3198   :  { %3490 = vmatmul.mubr.msk.bf16.vlgmr.msra.gmra.mrb[40].mxu0 %vm5253_vm2, %v2589_v31 }
0x3199   :  { %3506 = vmatpush3.bf16.msra.mxu0 %v3691_v4  ;;  %3513 = vmatprep.mubr.msk.bf16.mxu0 %vm3867_vm0, %v5281_v50  ;;  %vm1209_vm0 = vcmp.gt.s32.totalorder %v4022_v57, 3 }
0x319a   :  { %3507 = vmatprep.subr.bf16.mxu0 %v5281_v50 }
0x319d   :  { %3508 = vmatpush3.bf16.msra.mxu0 %v3692_v11 }
0x319e   :  { %3509 = vmatprep.subr.bf16.mxu0 %v5281_v50 }
0x31a1   :  { %3510 = vmatpush3.bf16.msra.mxu0 %v3693_v33 }
0x31a2   :  { %3511 = vmatprep.subr.bf16.mxu0 %v5281_v50 }
0x31a3   :  { %v2833_v45 = vpop.f32.mrb[44].mxu1 }
0x31a4   :  { %v2834_v56 = vadd.f32 %v3231_v0, %v2833_v45  ;;  %v3503_v51 = vpop.f32.mrb[45].mxu1 }
0x31a5   :  { %v2836_v25 = vpop.f32.mrb[46].mxu1  ;;  %3512 = vmatpush3.bf16.msra.mxu0 %v3694_v35 }
0x31a6   :  { %v2839_v18 = vmax.f32 %v2834_v56, 0.0  ;;  %v3504_v28 = vpop.f32.mrb[47].mxu1  ;;  %v1184_v56 = vsub.f32 %v4153_v37, %v4157_v47  ;;  %v1094_v25 = vsub.f32 1.0, %v4536_v61 }
0x31a8   :  { %v2848_v27 = vpack.c.bf16 %v2839_v18, %v2839_v18  ;;  %v1185_v18 = vmul.f32 1.442695, %v1184_v56 }
0x31aa   :  { %3514 = vmatmul.mubr.msk.bf16.vlgmr.msra.gmra.mrb[44].mxu0 %vm5253_vm2, %v2848_v27 }
0x31b4   :  { %v4763_v22 = vpop.permute.xlu0 %808 }
0x31b8   :  { %v819_v36 = vpop.permute.xlu0 %818 }
0x31b9   :  { %v821_v43 = vmul.f32 %v4533_v55, %v819_v36  ;;  %v4798_v36 = vsel %vm1209_vm0, 1.0, %v5281_v50 }
0x31bc   :  { %v824_v20 = vpop.permute.xlu0 %823 }
0x31bd   :  { %v826_v14 = vmul.f32 %v824_v20, %v822_v5  ;;  %v3168_v20 = vsel %vm937_vm6, 1.0, %v5281_v50 }
0x31bf   :  { %v827_v21 = vadd.f32 %v826_v14, %v821_v43  ;;  %v3623_v43 = vpack.i.bf16 %v4798_v36, %v3168_v20 }
0x31c1   :  { %829 = vrot.lane.b32.xlu0 %v827_v21, %s3886_s20 }
0x31c5   :  { %916 = vrot.lane.b32.xlu0 %v3752_v44, %s3871_s10 }
0x31d4   :  { %v932_v19 = vpop.permute.xlu1 %931 }
0x31d5   :  { %v934_v30 = vsel %vm365_vm8, %v932_v19, 0.0 }
0x31d6   :  { %935 = vadd.xlane.f32.xlu1 %v934_v30 }
0x31e7   :  { %1090 = vrot.lane.b32.xlu1 %v4425_v58, %s3884_s19 }
0x3233   :  { %v4772_v34 = vpop.permute.xlu0 %829 }
0x3237   :  { %v917_v13 = vpop.permute.xlu0 %916 }
0x3238   :  { %v919_v29 = vsel %vm365_vm8, %v917_v13, 0.0 }
0x3239   :  { %920 = vadd.xlane.f32.xlu0 %v919_v29 }
0x324f   :  { %1065 = vrot.lane.b32.xlu0 %v4425_v58, %s3881_s16 }
0x3263   :  { %v4787_v45 = vpop.xlane.xlu1 %935 }
0x3267   :  { %v1091_v28 = vpop.permute.xlu1 %1090 }
0x3268   :  { %v1093_v9 = vmul.f32 %v4536_v61, %v1091_v28  ;;  %v3622_v61 = vunpack.i.h.bf16 %v4743_v62 }
0x326a   :  { %v1201_v21 = vmul.f32 %v3622_v61, %v4153_v37 }
0x326b   :  { %v4777_v55 = vpop.f32.mrb[40].mxu0 }
0x326c   :  { %v3491_v42 = vpop.f32.mrb[41].mxu0 }
0x326d   :  { %v2659_v40 = vpop.f32.mrb[42].mxu0 }
0x326e   :  { %v3492_v46 = vpop.f32.mrb[43].mxu0 }
0x327d   :  { %v4779_v53 = vpop.f32.mrb[44].mxu0 }
0x327e   :  { %v3515_v10 = vpop.f32.mrb[45].mxu0 }
0x327f   :  { %v2918_v59 = vpop.f32.mrb[46].mxu0 }
0x3280   :  { %v3516_v17 = vpop.f32.mrb[47].mxu0 }
0x32c6   :  { %v921_v49 = vpop.xlane.xlu0 %920 }
0x32ca   :  { %v1066_v4 = vpop.permute.xlu0 %1065 }
0x32cb   :  { %v1068_v31 = vmax.f32 %v4425_v58, %v1066_v4 }
0x32cd   :  { %1073 = vrot.lane.b32.xlu0 %v1068_v31, %s3883_s18  ;;  %v1069_v44 = vsub.f32 %v4425_v58, %v1068_v31 }
0x32cf   :  { %v1070_v19 = vmul.f32 1.442695, %v1069_v44 }
0x333f   :  { %v1074_v11 = vpop.permute.xlu0 %1073 }
0x3340   :  { %v1076_v33 = vsub.f32 %v4425_v58, %v1074_v11 }
0x3342   :  { %v1077_v0 = vmul.f32 1.442695, %v1076_v33  ;;  %v5291_v33 = vpack.i.bf16 %v4544_v16, %v4552_v32 }
0x3344   :  { %3753 = vpow2.f32 %v1077_v0 }
0x3345   :  { %3755 = vpow2.f32 %v1185_v18 }
0x3346   :  { %3757 = vpow2.f32 %v1070_v19 }
0x334e   :  { %v3754_v35 = vpop.eup %3753 }
0x334f   :  { %1080 = vrot.lane.b32.xlu0 %v3754_v35, %s3881_s16  ;;  %v3756_v14 = vpop.eup %3755 }
0x3350   :  { %v3758_v30 = vpop.eup %3757 }
0x3353   :  { %1095 = vrot.lane.b32.xlu0 %v4425_v58, %s3882_s17 }
0x33c1   :  { %v1081_v51 = vpop.permute.xlu0 %1080 }
0x33c2   :  { %v1083_v13 = vadd.f32 %v3758_v30, %v1081_v51 }
0x33c4   :  { %3759 = vlog2.f32 %v1083_v13 }
0x33c5   :  { %v1096_v27 = vpop.permute.xlu0 %1095  ;;  %3761 = vlog2.f32 %v4705_v24 }
0x33c6   :  { %v1098_v3 = vmul.f32 %v1096_v27, %v1094_v25  ;;  %3763 = vlog2.f32 %v921_v49 }
0x33c7   :  { %3765 = vlog2.f32 %v4418_v54 }
0x33c8   :  { %v1099_v5 = vadd.f32 %v1098_v3, %v1093_v9 }
0x33ca   :  { %1101 = vrot.lane.b32.xlu0 %v1099_v5, %s3886_s20 }
0x33ce   :  { %3624 = vrot.lane.b32.xlu0 %v3623_v43, %s3887_s21  ;;  %v3760_v29 = vpop.eup %3759 }
0x33cf   :  { %v1085_v42 = vmul.f32 0.6931472, %v3760_v29  ;;  %v3762_v0 = vpop.eup %3761  ;;  %v5295_v29 = vld [vmem:[#allocation27_spill] sm:$0xff] }
0x33d0   :  { %v3764_v35 = vpop.eup %3763  ;;  %v651_v32 = vmul.f32 0.6931472, %v3762_v0  ;;  %v5298_v0 = vld [vmem:[#allocation22_spill] sm:$0xff] }
0x33d1   :  { %v1086_v40 = vadd.f32 %v1085_v42, %v1068_v31  ;;  %v5292_v31 = vpack.i.bf16 %v4480_v26, %v4474_v23  ;;  %v3766_v16 = vpop.eup %3765  ;;  %v923_v51 = vmul.f32 0.6931472, %v3764_v35  ;;  %v1366_v42 = vsub.f32 1.0, %v5295_v29  ;;  %v5299_v35 = vld [vmem:[#allocation21_spill] sm:$0xff] }
0x33d2   :  { %1188 = vrot.lane.b32.xlu0 %v3756_v14, %s3871_s10  ;;  %v370_v25 = vmul.f32 0.6931472, %v3766_v16  ;;  %v652_v18 = vadd.f32 %v651_v32, %v4069_v38 }
0x33d3   :  { %v924_v28 = vadd.f32 %v923_v51, %v4113_v39 }
0x33d4   :  { %v371_v23 = vadd.f32 %v370_v25, %v4007_v41  ;;  %v668_v26 = vsub.f32 %v652_v18, %v4741_v52 }
0x33d5   :  { %v940_v54 = vsub.f32 %v924_v28, %v4787_v45 }
0x33d6   :  { %1203 = vrot.lane.b32.xlu0 %v1201_v21, %s3871_s10  ;;  %v387_v49 = vsub.f32 %v371_v23, %v4457_v48  ;;  %v669_v9 = vmul.f32 %v4496_v15, %v668_v26  ;;  %v5300_v26 = vld [vmem:[#allocation24_spill] sm:$0xff] }
0x33d7   :  { %v941_v38 = vmul.f32 %v3168_v20, %v940_v54  ;;  %v5294_v20 = vld [vmem:[#allocation9_spill] sm:$0xff] }
0x33d8   :  { %v388_v43 = vmul.f32 %v4503_v63, %v387_v49 }
0x33da   :  { %v670_v61 = vadd.f32 %v669_v9, %v388_v43 }
0x33dc   :  { %v942_v21 = vadd.f32 %v941_v38, %v670_v61 }
0x343c   :  { %v1102_v46 = vpop.permute.xlu0 %1101 }
0x343d   :  { %v1104_v10 = vsub.f32 %v1086_v40, %v1102_v46 }
0x3440   :  { %v4811_v62 = vpop.permute.xlu0 %3624 }
0x3441   :  { %v3626_v59 = vunpack.i.l.bf16 %v4811_v62 }
0x3443   :  { %v4814_v17 = vmul.f32 %v3626_v59, %v1104_v10 }
0x3444   :  { %v1189_v37 = vpop.permute.xlu0 %1188 }
0x3445   :  { %v1191_v4 = vsel %vm365_vm8, %v1189_v37, 0.0 }
0x3446   :  { %1192 = vadd.xlane.f32.xlu1 %v1191_v4 }
0x3448   :  { %v1204_v58 = vpop.permute.xlu0 %1203 }
0x3449   :  { %v1206_v11 = vsel %vm365_vm8, %v1204_v58, 0.0  ;;  %v5296_v58 = vld [vmem:[#allocation11_spill] sm:$0xff] }
0x344a   :  { %1207 = vadd.xlane.f32.xlu0 %v1206_v11  ;;  %v5297_v11 = vld [vmem:[#allocation14_spill] sm:$0xff] }
0x3460   :  { %3629 = vperm.xlu0 %3617, %v5291_v33   ;;  %v3638_v33 = vpack.i.bf16 %v5297_v11, %v5296_v58 }
0x3464   :  { %1337 = vrot.lane.b32.xlu0 %v4433_v6, %s3881_s16 }
0x3468   :  { %1367 = vrot.lane.b32.xlu0 %v4433_v6, %s3882_s17 }
0x346c   :  { %3634 = vperm.xlu0 %3617, %v5292_v31   ;;  %v797_v31 = vsub.f32 %v4513_v2, %v4712_v60 }
0x346e   :  { %v798_v16 = vmul.f32 1.442695, %v797_v31 }
0x34d3   :  { %v1193_v56 = vpop.xlane.xlu1 %1192 }
0x34d4   :  { %3767 = vlog2.f32 %v1193_v56  ;;  %v527_v56 = vsub.f32 %v5299_v35, %v5298_v0  ;;  %v3184_v35 = vsel %vm1481_vm5, 1.0, %v5281_v50 }
0x34d6   :  { %v528_v32 = vmul.f32 1.442695, %v527_v56 }
0x34d7   :  { %v1208_v24 = vpop.xlane.xlu0 %1207 }
0x34de   :  { %v3768_v27 = vpop.eup %3767 }
0x34df   :  { %v1195_v3 = vmul.f32 0.6931472, %v3768_v27  ;;  %v4837_v5 = vpop.permute.xlu0 %3629 }
0x34e1   :  { %v1196_v39 = vadd.f32 %v1195_v3, %v4157_v47  ;;  %v5293_v47 = vld [vmem:[#allocation10_spill] sm:$0xff] }
0x34e2   :  { %v1456_v30 = vsub.f32 %v5294_v20, %v5293_v47 }
0x34e3   :  { %v1212_v41 = vsub.f32 %v1196_v39, %v1208_v24  ;;  %v1338_v14 = vpop.permute.xlu0 %1337 }
0x34e4   :  { %v1340_v52 = vmax.f32 %v4433_v6, %v1338_v14  ;;  %v1457_v13 = vmul.f32 1.442695, %v1456_v30 }
0x34e5   :  { %v1213_v48 = vmul.f32 %v4798_v36, %v1212_v41 }
0x34e6   :  { %1345 = vrot.lane.b32.xlu1 %v1340_v52, %s3883_s18  ;;  %v1341_v51 = vsub.f32 %v4433_v6, %v1340_v52 }
0x34e7   :  { %v4844_v45 = vadd.f32 %v1213_v48, %v942_v21  ;;  %v1368_v40 = vpop.permute.xlu0 %1367  ;;  %v5302_v21 = vld [vmem:[#allocation25_spill] sm:$0xff] }
0x34e8   :  { %v1370_v10 = vmul.f32 %v1368_v40, %v1366_v42  ;;  %v1342_v25 = vmul.f32 1.442695, %v1341_v51 }
0x3558   :  { %v1346_v15 = vpop.permute.xlu1 %1345 }
0x3559   :  { %v1348_v44 = vsub.f32 %v4433_v6, %v1346_v15 }
0x355b   :  { %v1349_v19 = vmul.f32 1.442695, %v1348_v44 }
0x355d   :  { %3769 = vpow2.f32 %v1349_v19 }
0x355e   :  { %3771 = vpow2.f32 %v1457_v13  ;;  %v3627_v13 = vunpack.i.h.bf16 %v4811_v62 }
0x355f   :  { %3773 = vpow2.f32 %v798_v16 }
0x3560   :  { %3775 = vpow2.f32 %v528_v32 }
0x3561   :  { %3777 = vpow2.f32 %v1342_v25 }
0x3567   :  { %v3770_v63 = vpop.eup %3769 }
0x3568   :  { %1352 = vrot.lane.b32.xlu1 %v3770_v63, %s3881_s16  ;;  %v3772_v4 = vpop.eup %3771 }
0x3569   :  { %v3774_v18 = vpop.eup %3773 }
0x356a   :  { %v811_v28 = vadd.f32 %v3774_v18, %v4763_v22  ;;  %v3776_v23 = vpop.eup %3775  ;;  %v5301_v22 = vld [vmem:[#allocation26_spill] sm:$0xff] }
0x356b   :  { %v541_v24 = vadd.f32 %v3776_v23, %v5300_v26  ;;  %v3778_v49 = vpop.eup %3777  ;;  %v3583_v61 = vunpack.i.h.bf16 %v5301_v22  ;;  %v3582_v41 = vunpack.i.l.bf16 %v5301_v22  ;;  %v5303_v26 = vld [vmem:[#allocation13_spill] sm:$0xff] }
0x356c   :  { %1362 = vrot.lane.b32.xlu1 %v4433_v6, %s3884_s19  ;;  %3779 = vlog2.f32 %v811_v28 }
0x356d   :  { %3781 = vlog2.f32 %v541_v24  ;;  %v5304_v24 = vld [vmem:[#allocation12_spill] sm:$0xff] }
0x3576   :  { %v3780_v54 = vpop.eup %3779 }
0x3577   :  { %v813_v27 = vmul.f32 0.6931472, %v3780_v54  ;;  %v3782_v9 = vpop.eup %3781 }
0x3578   :  { %v543_v3 = vmul.f32 0.6931472, %v3782_v9  ;;  %v5305_v9 = vld [vmem:[#allocation28_spill] sm:$0xff] }
0x3579   :  { %v814_v6 = vadd.f32 %v813_v27, %v4712_v60 }
0x357a   :  { %v544_v39 = vadd.f32 %v543_v3, %v5298_v0  ;;  %v1638_v3 = vsub.f32 1.0, %v5305_v9 }
0x357b   :  { %v832_v38 = vsub.f32 %v814_v6, %v4772_v34 }
0x357c   :  { %v562_v48 = vsub.f32 %v544_v39, %v5302_v21  ;;  %v3890_v39 = vmov 72   ;;  %v3891_v21 = vmov 81  }
0x357d   :  { %v837_v15 = vmul.f32 %v3583_v61, %v832_v38  ;;  %3648 = vset.pattern.permute.xlu1 %v3890_v39  ;;  %3649 = vset.pattern.permute.xlu0 %v3891_v21 }
0x357e   :  { %v567_v44 = vmul.f32 %v3582_v41, %v562_v48 }
0x3580   :  { %v838_v30 = vadd.f32 %v837_v15, %v567_v44 }
0x35da   :  { %v1353_v36 = vpop.permute.xlu1 %1352 }
0x35db   :  { %v1355_v2 = vadd.f32 %v3778_v49, %v1353_v36  ;;  %v1110_v36 = vadd.f32 %v4814_v17, %v838_v30  ;;  %v4882_v17 = vpop.permute.xlu0 %3634  ;;  %v1728_v49 = vsub.f32 %v5304_v24, %v5303_v26 }
0x35dd   :  { %3783 = vlog2.f32 %v1355_v2  ;;  %v1729_v54 = vmul.f32 1.442695, %v1728_v49 }
0x35de   :  { %v1363_v46 = vpop.permute.xlu1 %1362 }
0x35df   :  { %v1365_v59 = vmul.f32 %v5295_v29, %v1363_v46 }
0x35e1   :  { %v1371_v37 = vadd.f32 %v1370_v10, %v1365_v59 }
0x35e3   :  { %1373 = vrot.lane.b32.xlu1 %v1371_v37, %s3886_s20 }
0x35e7   :  { %1460 = vrot.lane.b32.xlu1 %v3772_v4, %s3871_s10  ;;  %v3784_v43 = vpop.eup %3783 }
0x35e8   :  { %v1357_v14 = vmul.f32 0.6931472, %v3784_v43 }
0x35ea   :  { %v1358_v19 = vadd.f32 %v1357_v14, %v1340_v52 }
0x35eb   :  { %3639 = vrot.lane.b32.xlu1 %v3638_v33, %s3868_s6 }
0x3655   :  { %v1374_v63 = vpop.permute.xlu1 %1373 }
0x3656   :  { %v1376_v60 = vsub.f32 %v1358_v19, %v1374_v63 }
0x3658   :  { %v1381_v34 = vmul.f32 %v3627_v13, %v1376_v60 }
0x3659   :  { %v1461_v29 = vpop.permute.xlu1 %1460 }
0x365a   :  { %v4874_v42 = vadd.f32 %v1381_v34, %v1110_v36  ;;  %v1463_v40 = vsel %vm365_vm8, %v1461_v29, 0.0 }
0x365b   :  { %1464 = vadd.xlane.f32.xlu0 %v1463_v40 }
0x365d   :  { %v3640_v46 = vpop.permute.xlu1 %3639 }
0x365e   :  { %v3641_v10 = vunpack.i.l.bf16 %v3640_v46  ;;  %v3642_v61 = vunpack.i.h.bf16 %v3640_v46 }
0x3660   :  { %v1473_v59 = vmul.f32 %v3641_v10, %v5294_v20  ;;  %v1745_v14 = vmul.f32 %v3642_v61, %v5304_v24  ;;  %v5311_v24 = vld [vmem:[#allocation18_spill] sm:$0xff] }
0x3662   :  { %1475 = vrot.lane.b32.xlu1 %v1473_v59, %s3871_s10 }
0x3671   :  { %1609 = vrot.lane.b32.xlu0 %v4440_v7, %s3881_s16 }
0x36d4   :  { %v1476_v62 = vpop.permute.xlu1 %1475 }
0x36d5   :  { %v1478_v52 = vsel %vm365_vm8, %v1476_v62, 0.0 }
0x36d6   :  { %1479 = vadd.xlane.f32.xlu1 %v1478_v52  ;;  %v5306_v52 = vmov 0  }
0x36e8   :  { %v1465_v37 = vpop.xlane.xlu0 %1464 }
0x36e9   :  { %3785 = vlog2.f32 %v1465_v37  ;;  %v385_v37 = vsel %vm384_vm13, 1, %v5306_v52  ;;  %vm2025_vm13 = vcmp.gt.s32.totalorder %v4022_v57, 6 }
0x36ec   :  { %v1610_v4 = vpop.permute.xlu0 %1609 }
0x36ed   :  { %v1612_v33 = vmax.f32 %v4440_v7, %v1610_v4  ;;  %v3892_v4 = vmov 73  }
0x36ef   :  { %1617 = vrot.lane.b32.xlu1 %v1612_v33, %s3883_s18  ;;  %v1613_v48 = vsub.f32 %v4440_v7, %v1612_v33 }
0x36f1   :  { %v1614_v15 = vmul.f32 1.442695, %v1613_v48 }
0x36f3   :  { %v3786_v31 = vpop.eup %3785 }
0x36f4   :  { %v1467_v20 = vmul.f32 0.6931472, %v3786_v31  ;;  %v938_v31 = vsel %vm937_vm6, 1, %v5306_v52 }
0x36f6   :  { %v1468_v0 = vadd.f32 %v1467_v20, %v5293_v47  ;;  %v4902_v47 = vsel %vm1753_vm10, 1.0, %v5281_v50  ;;  %v3894_v20 = vmov 75  }
0x3763   :  { %v1480_v56 = vpop.xlane.xlu1 %1479 }
0x3764   :  { %v1484_v16 = vsub.f32 %v1468_v0, %v1480_v56  ;;  %v1210_v0 = vsel %vm1209_vm0, 1, %v5306_v52  ;;  %v3895_v56 = vmov 76  }
0x3766   :  { %v1485_v32 = vmul.f32 %v3184_v35, %v1484_v16  ;;  %v1754_v16 = vsel %vm1753_vm10, 1, %v5306_v52 }
0x3767   :  { %v1618_v51 = vpop.permute.xlu1 %1617 }
0x3768   :  { %v4892_v25 = vadd.f32 %v1485_v32, %v4844_v45  ;;  %v1620_v18 = vsub.f32 %v4440_v7, %v1618_v51  ;;  %v3643_v45 = vpack.i.bf16 %v4902_v47, %v3184_v35  ;;  %v1482_v35 = vsel %vm1481_vm5, 1, %v5306_v52  ;;  %v5308_v32 = vld [vmem:[#allocation16_spill] sm:$0xff]  ;;  %v5309_v51 = vld [vmem:[#allocation15_spill] sm:$0xff] }
0x376a   :  { %v1621_v28 = vmul.f32 1.442695, %v1620_v18  ;;  %v2000_v18 = vsub.f32 %v5309_v51, %v5308_v32 }
0x376c   :  { %3787 = vpow2.f32 %v1621_v28  ;;  %v3896_v28 = vmov 77  }
0x376d   :  { %3789 = vpow2.f32 %v1729_v54  ;;  %v5312_v54 = vld [vmem:[#allocation31_spill] sm:$0xff] }
0x376e   :  { %3791 = vpow2.f32 %v1614_v15 }
0x3776   :  { %v3788_v23 = vpop.eup %3787 }
0x3777   :  { %1624 = vrot.lane.b32.xlu0 %v3788_v23, %s3881_s16  ;;  %v3790_v41 = vpop.eup %3789  ;;  %v2001_v23 = vmul.f32 1.442695, %v2000_v18 }
0x3778   :  { %v3792_v44 = vpop.eup %3791 }
0x377b   :  { %1634 = vrot.lane.b32.xlu0 %v4440_v7, %s3884_s19 }
0x377f   :  { %1639 = vrot.lane.b32.xlu0 %v4440_v7, %s3882_s17 }
0x3783   :  { %3644 = vrot.lane.b32.xlu0 %v3643_v45, %s3887_s21  ;;  %v5310_v45 = vld [vmem:[#allocation19_spill] sm:$0xff] }
0x3784   :  { %v2272_v49 = vsub.f32 %v5311_v24, %v5310_v45 }
0x37e9   :  { %v1625_v2 = vpop.permute.xlu0 %1624 }
0x37ea   :  { %v1627_v19 = vadd.f32 %v3792_v44, %v1625_v2  ;;  %v3897_v2 = vmov 78  }
0x37ec   :  { %3793 = vlog2.f32 %v1627_v19 }
0x37ed   :  { %v1635_v27 = vpop.permute.xlu0 %1634  ;;  %3795 = vpow2.f32 %v2001_v23 }
0x37ee   :  { %v1637_v43 = vmul.f32 %v5305_v9, %v1635_v27  ;;  %v2026_v27 = vsel %vm2025_vm13, 1, %v5306_v52  ;;  %v2273_v9 = vmul.f32 1.442695, %v2272_v49 }
0x37f0   :  { %3797 = vpow2.f32 %v2273_v9 }
0x37f1   :  { %v1640_v6 = vpop.permute.xlu0 %1639 }
0x37f2   :  { %v1642_v38 = vmul.f32 %v1640_v6, %v1638_v3  ;;  %v3898_v3 = vmov 79   ;;  %v5313_v6 = vld [vmem:[#allocation23_spill] sm:$0xff] }
0x37f4   :  { %v1643_v22 = vadd.f32 %v1642_v38, %v1637_v43  ;;  %v2298_v43 = vsel %vm2297_vm15, 1, %v5306_v52  ;;  %v5314_v38 = vld [vmem:[#allocation20_spill] sm:$0xff] }
0x37f5   :  { %v4918_v13 = vpop.permute.xlu0 %3644 }
0x37f6   :  { %1645 = vrot.lane.b32.xlu1 %v1643_v22, %s3886_s20  ;;  %v3794_v63 = vpop.eup %3793  ;;  %v3646_v36 = vunpack.i.l.bf16 %v4918_v13  ;;  %v5315_v22 = vld [vmem:[#allocation17_spill] sm:$0xff] }
0x37f7   :  { %v1629_v30 = vmul.f32 0.6931472, %v3794_v63  ;;  %v3796_v39 = vpop.eup %3795 }
0x37f9   :  { %v1630_v60 = vadd.f32 %v1629_v30, %v1612_v33  ;;  %v3893_v33 = vmov 74  }
0x37fa   :  { %1732 = vrot.lane.b32.xlu1 %v3790_v41, %s3871_s10  ;;  %v3798_v61 = vpop.eup %3797  ;;  %v5316_v41 = vmov 1  }
0x37fe   :  { %1747 = vrot.lane.b32.xlu1 %v1745_v14, %s3871_s10 }
0x3868   :  { %v1646_v34 = vpop.permute.xlu1 %1645 }
0x3869   :  { %v1648_v29 = vsub.f32 %v1630_v60, %v1646_v34 }
0x386b   :  { %v1653_v40 = vmul.f32 %v3646_v36, %v1648_v29 }
0x386c   :  { %v1733_v46 = vpop.permute.xlu1 %1732 }
0x386d   :  { %v4922_v10 = vadd.f32 %v1653_v40, %v4874_v42  ;;  %v1735_v7 = vsel %vm365_vm8, %v1733_v46, 0.0  ;;  %v666_v42 = vsel %vm5307_vm14, 1, %v5306_v52 }
0x386e   :  { %1736 = vadd.xlane.f32.xlu0 %v1735_v7  ;;  %v5317_v7 = vld [vmem:[#allocation5_spill] sm:$0xff] }
0x3870   :  { %v1748_v59 = vpop.permute.xlu1 %1747 }
0x3871   :  { %v1750_v62 = vsel %vm365_vm8, %v1748_v59, 0.0 }
0x3872   :  { %1751 = vadd.xlane.f32.xlu1 %v1750_v62 }
0x3883   :  { %2929 = vperm.xlu1 %3648, %v4022_v57  }
0x3884   :  { %1881 = vrot.lane.b32.xlu0 %v4445_v12, %s3881_s16 }
0x3887   :  { %3650 = vset.pattern.permute.xlu1 %v3892_v4 }
0x3888   :  { %2933 = vperm.xlu0 %3649, %v385_v37   ;;  %2941 = vperm.xlu1 %3650, %v4022_v57  }
0x388c   :  { %2945 = vperm.xlu0 %3649, %v666_v42   ;;  %3651 = vset.pattern.permute.xlu1 %v3893_v33 }
0x388d   :  { %2953 = vperm.xlu1 %3651, %v4022_v57  }
0x3890   :  { %2957 = vperm.xlu0 %3649, %v938_v31  }
0x3891   :  { %3652 = vset.pattern.permute.xlu1 %v3894_v20 }
0x3892   :  { %2965 = vperm.xlu1 %3652, %v4022_v57  }
0x3894   :  { %2969 = vperm.xlu0 %3649, %v1210_v0  }
0x3896   :  { %3653 = vset.pattern.permute.xlu1 %v3895_v56 }
0x3897   :  { %2977 = vperm.xlu1 %3653, %v4022_v57  }
0x3898   :  { %2981 = vperm.xlu0 %3649, %v1482_v35  }
0x389b   :  { %3654 = vset.pattern.permute.xlu1 %v3896_v28 }
0x389c   :  { %2993 = vperm.xlu0 %3649, %v1754_v16   ;;  %2989 = vperm.xlu1 %3654, %v4022_v57  }
0x38a0   :  { %3655 = vset.pattern.permute.xlu0 %v3897_v2  ;;  %2153 = vrot.lane.b32.xlu1 %v5312_v54, %s3881_s16 }
0x38a1   :  { %3001 = vperm.xlu0 %3655, %v4022_v57   ;;  %3656 = vset.pattern.permute.xlu1 %v3891_v21 }
0x38a4   :  { %3005 = vperm.xlu1 %3656, %v2026_v27  }
0x38a5   :  { %3657 = vset.pattern.permute.xlu0 %v3898_v3 }
0x38a6   :  { %3013 = vperm.xlu0 %3657, %v4022_v57  }
0x38a8   :  { %2427 = vrot.lane.b32.xlu1 %v5313_v6, %s3881_s16 }
0x38aa   :  { %2286 = vrot.lane.b32.xlu0 %v5314_v38, %s3868_s6 }
0x38ab   :  { %3669 = vset.pattern.permute.xlu0 %v3891_v21 }
0x38ac   :  { %3017 = vperm.xlu1 %3656, %v2298_v43  }
0x38ae   :  { %2004 = vrot.lane.b32.xlu0 %v3796_v39, %s3871_s10 }
0x38b0   :  { %2014 = vrot.lane.b32.xlu1 %v5315_v22, %s3868_s6 }
0x38b1   :  { %3658 = vset.pattern.permute.xlu1 %v5316_v41 }
0x38b2   :  { %2276 = vrot.lane.b32.xlu0 %v3798_v61, %s3871_s10 }
0x38fb   :  { %v1737_v14 = vpop.xlane.xlu0 %1736 }
0x38fc   :  { %3799 = vlog2.f32 %v1737_v14 }
0x38ff   :  { %v1752_v48 = vpop.xlane.xlu1 %1751  ;;  %v1882_v15 = vpop.permute.xlu0 %1881 }
0x3900   :  { %v4980_v44 = vmax.f32 %v4445_v12, %v1882_v15 }
0x3902   :  { %1889 = vrot.lane.b32.xlu1 %v4980_v44, %s3883_s18 }
0x3903   :  { %v2930_v21 = vpop.permute.xlu1 %2929 }
0x3904   :  { %vm2931_vm3 = vcmp.eq.s32.totalorder %v5317_v7, %v2930_v21 }
0x3906   :  { %v3800_v19 = vpop.eup %3799 }
0x3907   :  { %v1739_v63 = vmul.f32 0.6931472, %v3800_v19  ;;  %v2934_v30 = vpop.permute.xlu0 %2933  ;;  %v2942_v60 = vpop.permute.xlu1 %2941 }
0x3908   :  { %vm2935_vm7 = vcmp.eq.s32.totalorder %v2934_v30, 1  ;;  %vm2943_vm12 = vcmp.eq.s32.totalorder %v5317_v7, %v2942_v60 }
0x3909   :  { %v1740_v36 = vadd.f32 %v1739_v63, %v5303_v26  ;;  %vm2936_vm0 = vmand %vm2931_vm3, %vm2935_vm7 }
0x390a   :  { %v3244_v37 = vsel %vm2936_vm0, 1.0, %v5281_v50 }
0x390b   :  { %v1756_v34 = vsub.f32 %v1740_v36, %v1752_v48  ;;  %v2946_v29 = vpop.permute.xlu0 %2945 }
0x390c   :  { %v2954_v40 = vpop.permute.xlu1 %2953  ;;  %vm2947_vm9 = vcmp.eq.s32.totalorder %v2946_v29, 1 }
0x390d   :  { %v1757_v46 = vmul.f32 %v4902_v47, %v1756_v34  ;;  %vm2948_vm6 = vmand %vm2943_vm12, %vm2947_vm9  ;;  %vm2955_vm5 = vcmp.eq.s32.totalorder %v5317_v7, %v2954_v40 }
0x390e   :  { %v3245_v47 = vsel %vm2948_vm6, 1.0, %v5281_v50 }
0x390f   :  { %v4989_v59 = vadd.f32 %v1757_v46, %v4892_v25  ;;  %v2958_v62 = vpop.permute.xlu0 %2957  ;;  %v2951_v42 = vadd.f32 %v3245_v47, %v3244_v37 }
0x3910   :  { %vm2959_vm10 = vcmp.eq.s32.totalorder %v2958_v62, 1 }
0x3911   :  { %v2966_v52 = vpop.permute.xlu1 %2965  ;;  %vm2960_vm14 = vmand %vm2955_vm5, %vm2959_vm10 }
0x3912   :  { %vm2967_vm2 = vcmp.eq.s32.totalorder %v5317_v7, %v2966_v52  ;;  %v3246_v33 = vsel %vm2960_vm14, 1.0, %v5281_v50 }
0x3913   :  { %v2970_v26 = vpop.permute.xlu0 %2969  ;;  %v2963_v31 = vadd.f32 %v3246_v33, %v2951_v42 }
0x3914   :  { %vm2971_vm1 = vcmp.eq.s32.totalorder %v2970_v26, 1 }
0x3915   :  { %vm2972_vm3 = vmand %vm2967_vm2, %vm2971_vm1 }
0x3916   :  { %v2978_v4 = vpop.permute.xlu1 %2977  ;;  %v3247_v35 = vsel %vm2972_vm3, 1.0, %v5281_v50 }
0x3917   :  { %v2982_v25 = vpop.permute.xlu0 %2981  ;;  %vm2979_vm7 = vcmp.eq.s32.totalorder %v5317_v7, %v2978_v4  ;;  %v2975_v56 = vadd.f32 %v3247_v35, %v2963_v31 }
0x3918   :  { %vm2983_vm12 = vcmp.eq.s32.totalorder %v2982_v25, 1 }
0x3919   :  { %vm2984_vm9 = vmand %vm2979_vm7, %vm2983_vm12 }
0x391a   :  { %v3248_v18 = vsel %vm2984_vm9, 1.0, %v5281_v50  ;;  %vm2712_vm9 = vcmask 667272  }
0x391b   :  { %v2990_v20 = vpop.permute.xlu1 %2989  ;;  %v2994_v0 = vpop.permute.xlu0 %2993  ;;  %v2987_v49 = vadd.f32 %v3248_v18, %v2975_v56  ;;  %v5057_v56 = vld [vmem:[%s5189_s0] sm:$0xff]  ;;  %s3899_s0 = smov 112  }
0x391c   :  { %vm2991_vm0 = vcmp.eq.s32.totalorder %v5317_v7, %v2990_v20  ;;  %vm2995_vm6 = vcmp.eq.s32.totalorder %v2994_v0, 1  ;;  %v5318_v20 = vld [vmem:[#allocation34_spill] sm:$0xff]  ;;  %v5319_v0 = vld [vmem:[#allocation33_spill] sm:$0xff] }
0x391d   :  { %vm2996_vm1 = vmand %vm2991_vm0, %vm2995_vm6  ;;  %v5320_v35 = vpack.i.bf16 %v5318_v20, %v5319_v0  ;;  %vm2449_vm0 = vcmp.eq.s32.totalorder %v4022_v57, 8 }
0x391e   :  { %v3249_v27 = vsel %vm2996_vm1, 1.0, %v5281_v50 }
0x391f   :  { %v2154_v16 = vpop.permute.xlu1 %2153  ;;  %v2999_v9 = vadd.f32 %v3249_v27, %v2987_v49 }
0x3920   :  { %v5001_v28 = vmax.f32 %v5312_v54, %v2154_v16  ;;  %v3002_v23 = vpop.permute.xlu0 %3001  ;;  %v2685_v16 = vrot.slane %v5057_v56, 4 }
0x3921   :  { %vm3003_vm2 = vcmp.eq.s32.totalorder %v5317_v7, %v3002_v23 }
0x3922   :  { %2161 = vrot.lane.b32.xlu1 %v5001_v28, %s3883_s18 }
0x3923   :  { %v3006_v2 = vpop.permute.xlu1 %3005 }
0x3924   :  { %vm3007_vm5 = vcmp.eq.s32.totalorder %v3006_v2, 1 }
0x3925   :  { %vm3008_vm10 = vmand %vm3003_vm2, %vm3007_vm5  ;;  %v3014_v61 = vpop.permute.xlu0 %3013 }
0x3926   :  { %v3250_v43 = vsel %vm3008_vm10, 1.0, %v5281_v50  ;;  %vm3015_vm14 = vcmp.eq.s32.totalorder %v5317_v7, %v3014_v61  ;;  %v2708_v61 = vcvt.s32.f32 %v4022_v57 }
0x3927   :  { %v2428_v3 = vpop.permute.xlu1 %2427  ;;  %v3011_v41 = vadd.f32 %v3250_v43, %v2999_v9 }
0x3928   :  { %v5009_v39 = vmax.f32 %v5313_v6, %v2428_v3 }
0x3929   :  { %v2287_v63 = vpop.permute.xlu0 %2286 }
0x392a   :  { %2435 = vrot.lane.b32.xlu1 %v5009_v39, %s3883_s18  ;;  %v2289_v60 = vmul.f32 %v2287_v63, %v5311_v24  ;;  %v3237_v24 = vld [vmem:[%s5191_s2 + $0x8] ss:$0 sm:$0xff] }
0x392b   :  { %v3018_v14 = vpop.permute.xlu1 %3017  ;;  %v5042_v40 = vadd.f32 %v3237_v24, %v4779_v53 }
0x392c   :  { %vm3019_vm3 = vcmp.eq.s32.totalorder %v3018_v14, 1  ;;  %v2709_v14 = vmax.f32 %v2708_v61, 0.0 }
0x392d   :  { %vm3020_vm7 = vmand %vm3015_vm14, %vm3019_vm3  ;;  %v3031_v46 = vand.u32 2147483647, %v5042_v40  ;;  %v5045_v62 = vpop.permute.xlu0 %2004  ;;  %v3028_v23 = vmax.f32 %v5042_v40, 0.0  ;;  %vm3083_vm3 = vcmask 15360  }
0x392e   :  { %v3251_v48 = vsel %vm3020_vm7, 1.0, %v5281_v50  ;;  %vm3085_vm7 = vcmask 23552  }
0x392f   :  { %v3023_v15 = vadd.f32 %v3251_v48, %v3011_v41  ;;  %v2015_v21 = vpop.permute.xlu1 %2014  ;;  %v3032_v7 = vsub.f32 0.0, %v3031_v46  ;;  %v2710_v48 = vmin.f32 %v2709_v14, 8.0 }
0x3930   :  { %v2017_v19 = vmul.f32 %v2015_v21, %v5309_v51 }
0x3931   :  { %vm3024_vm12 = vcmp.ge.f32.partialorder %v3023_v15, 1.0  ;;  %v3033_v52 = vmul.f32 1.442695, %v3032_v7  ;;  %v2277_v26 = vpop.permute.xlu0 %2276 }
0x3932   :  { %2019 = vrot.lane.b32.xlu0 %v2017_v19, %s3871_s10  ;;  %v5018_v30 = vsel %vm3024_vm12, 1.0, %v5281_v50  ;;  %v2279_v37 = vsel %vm365_vm8, %v2277_v26, 0.0  ;;  %v5321_v19 = vld [vmem:[#allocation29_spill] sm:$0xff]  ;;  %vm3115_vm12 = vcmask 392192  }
0x3933   :  { %3051 = vrot.lane.b32.xlu1 %v5018_v30, %s3879_s13  ;;  %v1910_v63 = vsub.f32 1.0, %v5321_v19 }
0x3936   :  { %2291 = vrot.lane.b32.xlu0 %v2289_v60, %s3871_s10  ;;  %v2713_v60 = vsel %vm2712_vm9, %v2710_v48, 0.0  ;;  %v3213_v48 = vsel %vm2476_vm11, 1.0, %v5281_v50  ;;  %vm2692_vm11 = vcmask 261124  }
0x3937   :  { %v2714_v46 = vrot.slane %v2713_v60, 4 }
0x393a   :  { %1906 = vrot.lane.b32.xlu0 %v4445_v12, %s3884_s19 }
0x393e   :  { %2178 = vrot.lane.b32.xlu0 %v5312_v54, %s3884_s19 }
0x3942   :  { %2452 = vrot.lane.b32.xlu0 %v5313_v6, %s3884_s19 }
0x3974   :  { %v1890_v51 = vpop.permute.xlu1 %1889 }
0x3975   :  { %v1892_v36 = vsub.f32 %v4445_v12, %v1890_v51 }
0x3977   :  { %v1893_v34 = vmul.f32 1.442695, %v1892_v36 }
0x3979   :  { %3801 = vpow2.f32 %v1893_v34 }
0x397a   :  { %3803 = vpow2.f32 %v3033_v52 }
0x3983   :  { %v3802_v29 = vpop.eup %3801 }
0x3984   :  { %1896 = vrot.lane.b32.xlu1 %v3802_v29, %s3881_s16  ;;  %v3804_v42 = vpop.eup %3803  ;;  %v5322_v29 = vld [vmem:[#allocation30_spill] sm:$0xff] }
0x3985   :  { %v3035_v33 = vadd.f32 1.0, %v3804_v42  ;;  %v2182_v24 = vsub.f32 1.0, %v5322_v29  ;;  %v2715_v42 = vadd.f32 %v2714_v46, %v2713_v60  ;;  %v3631_v46 = vunpack.i.l.bf16 %v4837_v5 }
0x3987   :  { %3805 = vlog2.f32 %v3035_v33  ;;  %v2716_v20 = vrot.slane %v2715_v42, 2 }
0x3988   :  { %1911 = vrot.lane.b32.xlu1 %v4445_v12, %s3882_s17 }
0x398c   :  { %2183 = vrot.lane.b32.xlu1 %v5312_v54, %s3882_s17 }
0x3990   :  { %2457 = vrot.lane.b32.xlu1 %v5313_v6, %s3882_s17 }
0x3991   :  { %v3806_v49 = vpop.eup %3805 }
0x3992   :  { %v5065_v9 = vmul.f32 0.6931472, %v3806_v49  ;;  %v2717_v49 = vadd.f32 %v2716_v20, %v2715_v42 }
0x3994   :  { %v5048_v47 = vpop.permute.xlu1 %2161 }
0x399c   :  { %v2436_v4 = vpop.permute.xlu1 %2435 }
0x399d   :  { %v2438_v25 = vsub.f32 %v5313_v6, %v2436_v4 }
0x399f   :  { %v2439_v53 = vmul.f32 1.442695, %v2438_v25  ;;  %v3212_v25 = vsel %vm2449_vm0, 1.0, %v5281_v50  ;;  %vm3118_vm0 = vcmask 531456  }
0x39a1   :  { %3807 = vpow2.f32 %v2439_v53  ;;  %v2456_v53 = vsub.f32 1.0, %v3212_v25 }
0x39a4   :  { %v2020_v43 = vpop.permute.xlu0 %2019 }
0x39a5   :  { %v3052_v31 = vpop.permute.xlu1 %3051  ;;  %v2022_v60 = vsel %vm365_vm8, %v2020_v43, 0.0  ;;  %v5325_v43 = vld [vmem:[#allocation8_spill] sm:$0xff] }
0x39a6   :  { %v3054_v18 = vmul.f32 %v3052_v31, %v5042_v40 }
0x39a8   :  { %v3055_v2 = vsub.f32 %v3028_v23, %v3054_v18  ;;  %v5070_v41 = vpop.permute.xlu0 %2291 }
0x39aa   :  { %v3056_v3 = vadd.f32 %v3055_v2, %v5065_v9 }
0x39ab   :  { %v3808_v27 = vpop.eup %3807 }
0x39ac   :  { %v1907_v15 = vpop.permute.xlu0 %1906 }
0x39ad   :  { %v1909_v36 = vmul.f32 %v5321_v19, %v1907_v15  ;;  %v3220_v15 = vld [vmem:[%s5191_s2 + $0x6] ss:$0 sm:$0xff]  ;;  %v2007_v19 = vsel %vm365_vm8, %v5045_v62, 0.0  ;;  %s3900_s2 = smov 3  }
0x39b0   :  { %v2179_v7 = vpop.permute.xlu0 %2178 }
0x39b4   :  { %2280 = vadd.xlane.f32.xlu1 %v2279_v37  ;;  %v2181_v37 = vmul.f32 %v5322_v29, %v2179_v7  ;;  %v2453_v0 = vpop.permute.xlu0 %2452 }
0x39b5   :  { %v2455_v18 = vmul.f32 %v3212_v25, %v2453_v0  ;;  %v3636_v25 = vunpack.i.l.bf16 %v4882_v17 }
0x39c5   :  { %3660 = vperm.xlu1 %3658, %v5320_v35   ;;  %v5086_v35 = vsel %vm2025_vm13, 1.0, %v5281_v50  ;;  %vm2673_vm13 = vcmask 257024  }
0x39c9   :  { %2686 = vrot.lane.b32.xlu1 %v2685_v16, %s3868_s6  ;;  %s3903_s6 = smov 66  }
0x39cd   :  { %2442 = vrot.lane.b32.xlu1 %v3808_v27, %s3881_s16  ;;  %v2718_v27 = vrot.slane %v2717_v49, 1 }
0x39cf   :  { %v5098_v61 = vadd.f32 %v2718_v27, %v2717_v49 }
0x39d1   :  { %3058 = vrot.lane.b32.xlu1 %v3056_v3, %s3899_s0  ;;  %v5094_v3 = vsel %vm2297_vm15, 1.0, %v5281_v50  ;;  %vm2731_vm15 = vcmask 3072  }
0x39f6   :  { %v5072_v21 = vpop.permute.xlu1 %1896 }
0x39fa   :  { %v1912_v51 = vpop.permute.xlu1 %1911 }
0x39fb   :  { %v1914_v34 = vmul.f32 %v1912_v51, %v1910_v63  ;;  %v5112_v63 = vadd.f32 %v3220_v15, %v4777_v55  ;;  %v5324_v55 = vld [vmem:[#allocation35_spill] sm:$0xff] }
0x39fd   :  { %v1915_v52 = vadd.f32 %v1914_v34, %v1909_v36  ;;  %v2665_v51 = vand.u32 2147483647, %v5112_v63  ;;  %v2164_v36 = vsub.f32 %v5312_v54, %v5048_v47  ;;  %v3632_v47 = vunpack.i.h.bf16 %v4837_v5 }
0x39fe   :  { %v2184_v26 = vpop.permute.xlu1 %2183 }
0x39ff   :  { %v2186_v4 = vmul.f32 %v2184_v26, %v2182_v24  ;;  %1917 = vrot.lane.b32.xlu0 %v1915_v52, %s3886_s20  ;;  %v2666_v34 = vsub.f32 0.0, %v2665_v51  ;;  %v2165_v29 = vmul.f32 1.442695, %v2164_v36  ;;  %v3606_v52 = vunpack.i.h.bf16 %v5324_v55 }
0x3a00   :  { %v872_v26 = vmul.f32 %v3631_v46, %v5325_v43  ;;  %v2662_v51 = vmax.f32 %v5112_v63, 0.0 }
0x3a01   :  { %v2187_v33 = vadd.f32 %v2186_v4, %v2181_v37  ;;  %v2667_v24 = vmul.f32 1.442695, %v2666_v34  ;;  %3809 = vpow2.f32 %v2165_v29  ;;  %v5326_v4 = vld [vmem:[#allocation7_spill] sm:$0xff] }
0x3a02   :  { %v2458_v31 = vpop.permute.xlu1 %2457  ;;  %v600_v42 = vmul.f32 %v3606_v52, %v5326_v4 }
0x3a03   :  { %2189 = vrot.lane.b32.xlu1 %v2187_v33, %s3886_s20  ;;  %v2460_v16 = vmul.f32 %v2458_v31, %v2456_v53  ;;  %3811 = vpow2.f32 %v2667_v24  ;;  %v1144_v53 = vmul.f32 %v3632_v47, %v4126_v1  ;;  %v1416_v31 = vmul.f32 %v3636_v25, %v4170_v8 }
0x3a04   :  { %v873_v33 = vadd.f32 %v872_v26, %v600_v42  ;;  %v3027_v25 = vsub.f32 1.0, %v5018_v30 }
0x3a05   :  { %v2461_v2 = vadd.f32 %v2460_v16, %v2455_v18  ;;  %v3637_v16 = vunpack.i.h.bf16 %v4882_v17 }
0x3a06   :  { %v1145_v0 = vadd.f32 %v1144_v53, %v873_v33 }
0x3a07   :  { %2194 = vrot.lane.b32.xlu1 %v5086_v35, %s3887_s21 }
0x3a08   :  { %v1417_v18 = vadd.f32 %v1416_v31, %v1145_v0 }
0x3a0b   :  { %2463 = vrot.lane.b32.xlu1 %v2461_v2, %s3886_s20  ;;  %v3810_v62 = vpop.eup %3809  ;;  %v1688_v2 = vmul.f32 %v3637_v16, %v5296_v58 }
0x3a0d   :  { %v3812_v7 = vpop.eup %3811  ;;  %v1689_v5 = vadd.f32 %v1688_v2, %v1417_v18 }
0x3a0e   :  { %v2669_v37 = vadd.f32 1.0, %v3812_v7 }
0x3a0f   :  { %2468 = vrot.lane.b32.xlu1 %v5094_v3, %s3887_s21 }
0x3a10   :  { %3813 = vlog2.f32 %v2669_v37 }
0x3a13   :  { %2740 = vrot.lane.b32.xlu1 %v5098_v61, %s3887_s21 }
0x3a17   :  { %2502 = vperm.xlu1 %3658, %v3213_v48   ;;  %v1885_v48 = vsub.f32 %v4445_v12, %v4980_v44 }
0x3a19   :  { %v1886_v36 = vmul.f32 1.442695, %v1885_v48 }
0x3a1a   :  { %v3814_v1 = vpop.eup %3813 }
0x3a1b   :  { %v2671_v58 = vmul.f32 0.6931472, %v3814_v1  ;;  %3815 = vpow2.f32 %v1886_v36 }
0x3a1e   :  { %2008 = vadd.xlane.f32.xlu0 %v2007_v19 }
0x3a22   :  { %2023 = vadd.xlane.f32.xlu0 %v2022_v60 }
0x3a25   :  { %v3816_v7 = vpop.eup %3815 }
0x3a26   :  { %v1899_v52 = vadd.f32 %v3816_v7, %v5072_v21  ;;  %v3029_v21 = vmul.f32 %v3027_v25, %v5042_v40 }
0x3a28   :  { %3817 = vlog2.f32 %v1899_v52  ;;  %v3030_v33 = vsub.f32 %v3028_v23, %v3029_v21 }
0x3a32   :  { %v3818_v43 = vpop.eup %3817 }
0x3a33   :  { %v1901_v26 = vmul.f32 0.6931472, %v3818_v43 }
0x3a35   :  { %v1902_v37 = vadd.f32 %v1901_v26, %v4980_v44  ;;  %v3038_v44 = vadd.f32 %v5065_v9, %v3030_v33 }
0x3a38   :  { %2168 = vrot.lane.b32.xlu0 %v3810_v62, %s3881_s16 }
0x3a41   :  { %v5127_v20 = vpop.xlane.xlu1 %2280 }
0x3a45   :  { %v3661_v49 = vpop.permute.xlu1 %3660 }
0x3a46   :  { %v3663_v27 = vunpack.i.h.bf16 %v3661_v49  ;;  %v3662_v14 = vunpack.i.l.bf16 %v3661_v49 }
0x3a48   :  { %v1960_v15 = vmul.f32 %v3662_v14, %v5297_v11  ;;  %v2232_v8 = vmul.f32 %v3663_v27, %v5315_v22  ;;  %v2663_v11 = vmul.f32 %v5057_v56, %v5112_v63  ;;  %v2294_v22 = vsel %vm365_vm8, %v5070_v41, 0.0 }
0x3a49   :  { %v2687_v19 = vpop.permute.xlu1 %2686  ;;  %v3647_v56 = vunpack.i.h.bf16 %v4918_v13  ;;  %vm3039_vm8 = vcmask 125952   ;;  %v2431_v13 = vsub.f32 %v5313_v6, %v5009_v39 }
0x3a4a   :  { %v1961_v60 = vadd.f32 %v1960_v15, %v1689_v5  ;;  %v2689_v17 = vmul.f32 %v2687_v19, %v5112_v63  ;;  %v2664_v46 = vsub.f32 %v2662_v51, %v2663_v11  ;;  %v3040_v31 = vsel %vm3039_vm8, %v3038_v44, 0.0 }
0x3a4b   :  { %v2432_v30 = vmul.f32 1.442695, %v2431_v13 }
0x3a4c   :  { %v2690_v34 = vsub.f32 %v2662_v51, %v2689_v17  ;;  %v5137_v29 = vadd.f32 %v2232_v8, %v1961_v60  ;;  %v2672_v62 = vadd.f32 %v2671_v58, %v2664_v46 }
0x3a4d   :  { %v2443_v53 = vpop.permute.xlu1 %2442  ;;  %3819 = vpow2.f32 %v2432_v30 }
0x3a4e   :  { %v2691_v24 = vadd.f32 %v2690_v34, %v2671_v58  ;;  %v2674_v55 = vsel %vm2673_vm13, %v2672_v62, 0.0  ;;  %vm5330_vm13 = vcmask 523264  }
0x3a50   :  { %v2693_v12 = vsel %vm2692_vm11, %v2691_v24, 0.0  ;;  %vm3120_vm11 = vcmask 539648  }
0x3a51   :  { %2694 = vadd.xlane.f32.xlu1 %v2693_v12  ;;  %v3059_v0 = vpop.permute.xlu1 %3058 }
0x3a52   :  { %v3061_v16 = vsel %vm3039_vm8, %v3059_v0, 0.0  ;;  %vm3122_vm8 = vcmask 572416  }
0x3a57   :  { %2295 = vadd.xlane.f32.xlu0 %v2294_v22  ;;  %v3820_v49 = vpop.eup %3819 }
0x3a58   :  { %v2445_v9 = vadd.f32 %v3820_v49, %v2443_v53 }
0x3a5b   :  { %2675 = vadd.xlane.f32.xlu0 %v2674_v55 }
0x3a71   :  { %v1918_v4 = vpop.permute.xlu0 %1917  ;;  %2922 = vrot.lane.b32.xlu0 %v5042_v40, %s3879_s13 }
0x3a72   :  { %v1920_v41 = vsub.f32 %v1902_v37, %v1918_v4 }
0x3a74   :  { %v1925_v42 = vmul.f32 %v3647_v56, %v1920_v41 }
0x3a75   :  { %v2190_v5 = vpop.permute.xlu1 %2189 }
0x3a76   :  { %v1926_v47 = vadd.f32 %v1925_v42, %v4922_v10  ;;  %v2157_v10 = vsub.f32 %v5312_v54, %v5001_v28 }
0x3a78   :  { %v2158_v18 = vmul.f32 1.442695, %v2157_v10 }
0x3a79   :  { %v2195_v15 = vpop.permute.xlu1 %2194 }
0x3a7a   :  { %3821 = vpow2.f32 %v2158_v18 }
0x3a7b   :  { %3823 = vlog2.f32 %v2445_v9 }
0x3a7d   :  { %v2464_v19 = vpop.permute.xlu1 %2463 }
0x3a81   :  { %v2469_v36 = vpop.permute.xlu1 %2468 }
0x3a84   :  { %v3822_v27 = vpop.eup %3821 }
0x3a85   :  { %v3824_v1 = vpop.eup %3823  ;;  %v2741_v46 = vpop.permute.xlu1 %2740 }
0x3a86   :  { %v2447_v8 = vmul.f32 0.6931472, %v3824_v1 }
0x3a88   :  { %v2448_v51 = vadd.f32 %v2447_v8, %v5009_v39 }
0x3a8a   :  { %v2466_v34 = vsub.f32 %v2448_v51, %v2464_v19 }
0x3a8c   :  { %v2471_v24 = vmul.f32 %v2469_v36, %v2466_v34 }
0x3a90   :  { %3041 = vadd.xlane.f32.xlu0 %v3040_v31 }
0x3a94   :  { %3062 = vadd.xlane.f32.xlu0 %v3061_v16 }
0x3a96   :  { %v2503_v13 = vpop.permute.xlu1 %2502 }
0x3aab   :  { %v2009_v23 = vpop.xlane.xlu0 %2008 }
0x3aaf   :  { %v2024_v2 = vpop.xlane.xlu0 %2023 }
0x3ab3   :  { %v2169_v14 = vpop.permute.xlu0 %2168 }
0x3ab4   :  { %v2171_v48 = vadd.f32 %v3822_v27, %v2169_v14  ;;  %v5327_v14 = vld [vmem:[#allocation36_spill] sm:$0xff] }
0x3ab5   :  { %vm2745_vm10 = vcmp.ge.s32.totalorder %v5327_v14, 8 }
0x3ab6   :  { %3825 = vlog2.f32 %v2171_v48 }
0x3ab7   :  { %3827 = vlog2.f32 %v2009_v23 }
0x3ab8   :  { %3829 = vrcp.f32 %v2741_v46 }
0x3ab9   :  { %3831 = vlog2.f32 %v5127_v20 }
0x3aba   :  { %3833 = vrcp.f32 %v5098_v61  ;;  %v3228_v61 = vadd.s32 4294967295, %v4022_v57 }
0x3abc   :  { %vm2749_vm2 = vcmp.ge.s32.totalorder %v3228_v61, 0  ;;  %vm2750_vm5 = vcmp.lt.s32.totalorder %v3228_v61, 8 }
0x3abd   :  { %vm2751_vm14 = vmand %vm2749_vm2, %vm2750_vm5 }
0x3ac0   :  { %v3826_v6 = vpop.eup %3825 }
0x3ac1   :  { %v2173_v54 = vmul.f32 0.6931472, %v3826_v6 }
0x3ac3   :  { %v2174_v60 = vadd.f32 %v2173_v54, %v5001_v28  ;;  %v3828_v28 = vpop.eup %3827 }
0x3ac4   :  { %v3830_v43 = vpop.eup %3829  ;;  %v2011_v26 = vmul.f32 0.6931472, %v3828_v28 }
0x3ac5   :  { %v2192_v17 = vsub.f32 %v2174_v60, %v2190_v5  ;;  %v3832_v41 = vpop.eup %3831  ;;  %v3226_v5 = vcvt.s32.f32 %v5327_v14 }
0x3ac6   :  { %v2012_v56 = vadd.f32 %v2011_v26, %v5308_v32  ;;  %v2283_v42 = vmul.f32 0.6931472, %v3832_v41 }
0x3ac7   :  { %v2197_v58 = vmul.f32 %v2195_v15, %v2192_v17  ;;  %v3227_v48 = vsel %vm2745_vm10, 0.0, %v3226_v5 }
0x3ac8   :  { %v2284_v21 = vadd.f32 %v2283_v42, %v5310_v45  ;;  %v3101_v15 = vrot.slane %v3227_v48, 4 }
0x3ac9   :  { %v2198_v12 = vadd.f32 %v2197_v58, %v1926_v47  ;;  %v2028_v47 = vsub.f32 %v2012_v56, %v2024_v2 }
0x3acb   :  { %v2472_v11 = vadd.f32 %v2471_v24, %v2198_v12  ;;  %v2029_v25 = vmul.f32 %v5086_v35, %v2028_v47  ;;  %v2505_v35 = vmul.f32 %v5314_v38, %v2503_v13 }
0x3acd   :  { %v2732_v22 = vsel %vm2731_vm15, %v2472_v11, 0.0  ;;  %v2030_v53 = vadd.f32 %v2029_v25, %v4989_v59  ;;  %v2506_v59 = vadd.f32 %v2505_v35, %v5137_v29 }
0x3ace   :  { %v2733_v62 = vrot.slane %v2732_v22, 4 }
0x3acf   :  { %vm2507_vm1 = vcmp.ge.f32.partialorder %v2506_v59, 1.0 }
0x3ad0   :  { %v2734_v7 = vadd.f32 %v2733_v62, %v2732_v22  ;;  %v3215_v38 = vsel %vm2507_vm1, 1.0, %v5281_v50 }
0x3ad2   :  { %v2735_v55 = vrot.slane %v2734_v7, 2 }
0x3ad4   :  { %v2736_v52 = vadd.f32 %v2735_v55, %v2734_v7 }
0x3ad6   :  { %v2737_v39 = vrot.slane %v2736_v52, 1 }
0x3ad8   :  { %v2738_v37 = vadd.f32 %v2737_v39, %v2736_v52 }
0x3ada   :  { %v2744_v4 = vmul.f32 %v3830_v43, %v2738_v37 }
0x3adc   :  { %3078 = vrot.lane.b32.xlu1 %v2744_v4, %s3900_s2 }
0x3ade   :  { %v2695_v19 = vpop.xlane.xlu1 %2694 }
0x3adf   :  { %v2697_v54 = vrot.slane %v2695_v19, 4 }
0x3ae1   :  { %v2699_v17 = vsel %vm2513_vm4, %v2697_v54, 0.0 }
0x3ae2   :  { %v2700_v24 = vrot.slane %v2699_v17, 4 }
0x3ae4   :  { %v2296_v20 = vpop.xlane.xlu0 %2295  ;;  %v2701_v22 = vadd.f32 %v2700_v24, %v2699_v17 }
0x3ae5   :  { %v2300_v33 = vsub.f32 %v2284_v21, %v2296_v20 }
0x3ae6   :  { %v2702_v28 = vrot.slane %v2701_v22, 2 }
0x3ae7   :  { %v2301_v44 = vmul.f32 %v5094_v3, %v2300_v33  ;;  %v3834_v3 = vpop.eup %3833 }
0x3ae8   :  { %v2676_v0 = vpop.xlane.xlu0 %2675  ;;  %v2703_v26 = vadd.f32 %v2702_v28, %v2701_v22 }
0x3ae9   :  { %v2302_v31 = vadd.f32 %v2301_v44, %v2030_v53 }
0x3aea   :  { %v2704_v41 = vrot.slane %v2703_v26, 1 }
0x3aeb   :  { %v2721_v32 = vsel %vm2712_vm9, %v2302_v31, 0.0  ;;  %v5328_v31 = vld [vmem:[#allocation6_spill] sm:$0xff]  ;;  %vm5329_vm9 = vcmask 261120  }
0x3aec   :  { %v2722_v16 = vrot.slane %v2721_v32, 4  ;;  %v2923_v30 = vpop.permute.xlu0 %2922  ;;  %v2705_v21 = vadd.f32 %v2704_v41, %v2703_v26 }
0x3aed   :  { %vm2925_vm6 = vcmp.gt.f32.partialorder %v5042_v40, %v2923_v30  ;;  %v3229_v40 = vcvt.s32.f32 %v3228_v61 }
0x3aee   :  { %v2723_v10 = vadd.f32 %v2722_v16, %v2721_v32  ;;  %v3243_v49 = vsel %vm2925_vm6, 1.0, %v5281_v50  ;;  %v2677_v50 = vsel %vm2513_vm4, %v2676_v0, 0.0  ;;  %v3089_v0 = vsub.s32 0, %v5328_v31 }
0x3aef   :  { %v3096_v9 = vrot.slane %v3243_v49, 4  ;;  %v3230_v57 = vsel %vm2751_vm14, %v3229_v40, 0.0  ;;  %v2678_v34 = vrot.slane %v2677_v50, 4 }
0x3af0   :  { %v2724_v18 = vrot.slane %v2723_v10, 2  ;;  %v3106_v1 = vrot.slane %v3230_v57, 4 }
0x3af1   :  { %v3664_v29 = vpack.i.bf16 %v3096_v9, %v3215_v38  ;;  %v2679_v11 = vadd.f32 %v2678_v34, %v2677_v50 }
0x3af2   :  { %v2725_v45 = vadd.f32 %v2724_v18, %v2723_v10 }
0x3af3   :  { %v2680_v7 = vrot.slane %v2679_v11, 2 }
0x3af4   :  { %v2726_v23 = vrot.slane %v2725_v45, 1 }
0x3af5   :  { %v2681_v39 = vadd.f32 %v2680_v7, %v2679_v11 }
0x3af6   :  { %v2727_v2 = vadd.f32 %v2726_v23, %v2725_v45 }
0x3af7   :  { %v2682_v4 = vrot.slane %v2681_v39, 1 }
0x3af8   :  { %v2729_v27 = vmul.f32 %v3834_v3, %v2727_v2 }
0x3af9   :  { %v2683_v47 = vadd.f32 %v2682_v4, %v2681_v39 }
0x3afa   :  { %3074 = vrot.lane.b32.xlu0 %v2729_v27, %s3887_s21 }
0x3afb   :  { %v2706_v33 = vadd.f32 %v2705_v21, %v2683_v47 }
0x3afd   :  { %v2707_v44 = vmul.f32 0.0078125, %v2706_v33 }
0x3afe   :  { %3665 = vrot.lane.b32.xlu0 %v3664_v29, %s3871_s10 }
0x3b02   :  { %3102 = vrot.lane.b32.xlu0 %v3101_v15, %s3901_s4 }
0x3b06   :  { %3107 = vrot.lane.b32.xlu0 %v3106_v1, %s3902_s5 }
0x3b1d   :  { %v3042_v6 = vpop.xlane.xlu0 %3041 }
0x3b1e   :  { %v3043_v51 = vsel %vm2513_vm4, %v3042_v6, 0.0 }
0x3b1f   :  { %v3044_v58 = vrot.slane %v3043_v51, 4 }
0x3b21   :  { %v3063_v8 = vpop.xlane.xlu0 %3062  ;;  %v3045_v46 = vadd.f32 %v3044_v58, %v3043_v51 }
0x3b22   :  { %v3064_v60 = vsel %vm2513_vm4, %v3063_v8, 0.0  ;;  %vm3081_vm4 = vcmask 7168  }
0x3b23   :  { %v3065_v36 = vrot.slane %v3064_v60, 4  ;;  %v3046_v55 = vrot.slane %v3045_v46, 2 }
0x3b25   :  { %v3066_v12 = vadd.f32 %v3065_v36, %v3064_v60  ;;  %v3047_v43 = vadd.f32 %v3046_v55, %v3045_v46 }
0x3b27   :  { %v3067_v62 = vrot.slane %v3066_v12, 2  ;;  %v3048_v56 = vrot.slane %v3047_v43, 1 }
0x3b29   :  { %v3068_v52 = vadd.f32 %v3067_v62, %v3066_v12  ;;  %v3049_v25 = vadd.f32 %v3048_v56, %v3047_v43 }
0x3b2b   :  { %v3069_v37 = vrot.slane %v3068_v52, 1 }
0x3b2d   :  { %v3070_v42 = vadd.f32 %v3069_v37, %v3068_v52 }
0x3b2f   :  { %v3071_v20 = vadd.f32 %v3070_v42, %v3049_v25 }
0x3b31   :  { %v3072_v53 = vmul.f32 0.0078125, %v3071_v20 }
0x3b4e   :  { %v3079_v13 = vpop.permute.xlu1 %3078 }
0x3b6c   :  { %v3075_v32 = vpop.permute.xlu0 %3074 }
0x3b6d   :  { %v3082_v16 = vsel %vm3081_vm4, %v3075_v32, %v3072_v53 }
0x3b6e   :  { %v3084_v10 = vsel %vm3083_vm3, %v3082_v16, %v2707_v44 }
0x3b6f   :  { %v3086_v30 = vsel %vm3085_vm7, %v3084_v10, %v3079_v13 }
0x3b70   :  { %v3090_v35 = vrot.slane %v3086_v30, %v3089_v0  ;;  %v3666_v18 = vpop.permute.xlu0 %3665 }
0x3b71   :  { %v3667_v45 = vunpack.i.l.bf16 %v3666_v18  ;;  %v3668_v23 = vunpack.i.h.bf16 %v3666_v18 }
0x3b72   :  { %3111 = vrot.lane.b32.xlu0 %v3090_v35, %s3903_s6 }
0x3b73   :  { %v3114_v3 = vsel %vm5329_vm9, %v5112_v63, %v3667_v45 }
0x3b74   :  { %v3103_v59 = vpop.permute.xlu0 %3102  ;;  %v3116_v49 = vsel %vm3115_vm12, %v3114_v3, %v3668_v23 }
0x3b75   :  { %v3117_v2 = vsel %vm5330_vm13, %v3116_v49, %v3103_v59 }
0x3b78   :  { %v3108_v61 = vpop.permute.xlu0 %3107 }
0x3b79   :  { %v3119_v9 = vsel %vm3118_vm0, %v3117_v2, %v3108_v61 }
0x3be4   :  { %v3112_v27 = vpop.permute.xlu0 %3111 }
0x3be5   :  { %v3121_v14 = vsel %vm3120_vm11, %v3119_v9, %v3112_v27 }
0x3be6   :  { %v3123_v5 = vsel %vm3122_vm8, %v3121_v14, 0.0 }
0x3be7   :  { %3124 = vst [vmem:[%s5192_s3 - $0x4] sm:$0xf0] %v3123_v5 }
0x3be8   :  { %3129 = vsyncpa [#allocation3], 1 }

</bundles_post_ra>
